<compile_context>
chip_gen: v6e
topology: v6e:2x2x1
jax: 0.10.0
libtpu: 0.0.40
codegen_flags: <defaults>
</compile_context>

<pallas_src>
import numpy as np
import jax
import jax.numpy as jnp
from jax.experimental import pallas as pl
from jax.experimental.pallas import tpu as pltpu

START_TAG = "<START>"
STOP_TAG = "<STOP>"

NP_TAGS = 8          # padded tag count (sublane axis)
LANE_TB = 128        # dialogs per grid step (lane axis)
NEG_REAL = -10000.0  # value used by the torch module for START/STOP constraints
NEG_PAD = -1.0e7     # value for padded tags (never selected)

# packed-parameter row offsets (stacked along the sublane axis; 24 rows total)
_TRANS_R = 0                  # rows [0, 8)  : transitions^T  [prev, next]
_MULT_R = NP_TAGS             # rows [8, 16) : softmax'd multiplier^T, diag=-1
_COLS_R = 2 * NP_TAGS         # rows [16,24) : per-prev-tag columns:
#   col 0: weight_for_emo_shift_in_activate
#   col 1: weight_for_emo_with_shift_out_activate
#   col 2: weight_for_emo_no_shift_out_activate
#   col 3: bias_in_activate_with_shift (replicated)   col 4: ..._no_shift (replicated)
_PACK_ROWS = 3 * NP_TAGS


# --------------------------------------------------------------------------
# Pallas kernel: lane-batched Viterbi recursion + backtrack (TB dialogs/step)
# --------------------------------------------------------------------------
def make_viterbi_kernel(T, NT, TB, start_ix, stop_ix):
    NP = NP_TAGS

    def kernel(bias_ref, feats_ref, pk_ref, score_ref, path_ref):
        # ---- loop-invariant constants (hoisted; JAX does not CSE broadcasts) --
        sub_mat = jax.lax.broadcasted_iota(jnp.int32, (NP, TB), 0)   # sublane idx
        np_fill = jnp.full((NP, TB), NP, jnp.int32)
        vit_pad = jnp.full((NP, TB), NEG_PAD, jnp.float32)

        pk = pk_ref[...]                              # (24, 8), resident, one load
        trans_T = pk[_TRANS_R:_TRANS_R + NP, :]       # [prev (sublane), next (lane)]
        mult_T = pk[_MULT_R:_MULT_R + NP, :]
        cols = pk[_COLS_R:_COLS_R + NP, :]
        w_in = cols[:, 0:1]                           # (NP, 1) prev-indexed columns
        w_with = cols[:, 1:2]
        w_no = cols[:, 2:3]
        b_with = cols[:, 3:4]
        b_no = cols[:, 4:5]
        trans_cols = [trans_T[:, n:n + 1] for n in range(NT)]   # hoisted slices
        mult_cols = [mult_T[:, n:n + 1] for n in range(NT)]
        trans_stop = trans_T[:, stop_ix:stop_ix + 1]

        # init_vvars: 0 at START, -10000 at real tags, -1e7 at padded prev tags
        fv = jnp.where(sub_mat == start_ix, 0.0,
                       jnp.where(sub_mat < NT, NEG_REAL, NEG_PAD)).astype(jnp.float32)

        # ---- Viterbi forward recursion, all TB dialogs in lockstep on lanes ----
        # TODO(synk): for long dialogs (T > ~16) switch both loops to
        #             lax.fori_loop (small unroll) + a VMEM backpointer scratch;
        #             static unroll + register-resident bp is fine at T=8.
        bps = []
        for t in range(T):
            bias_t = bias_ref[t:t + 1, :]                          # (1, TB)
            shift = bias_t > 0.5
            w_sel = jnp.where(shift, w_with, w_no)                 # (NP, TB)
            b_sel = jnp.where(shift, b_with, b_no)                 # (NP, TB)
            vec = w_sel * jnp.tanh(bias_t * w_in + b_sel)          # one EUP tanh/step
            vit = vit_pad
            bp_t = np_fill
            for n in range(NT):                                    # 6 real next tags
                ts = trans_cols[n] + vec * mult_cols[n]            # (NP, TB)
                cand = fv + ts
                vit_n = jnp.max(cand, axis=0, keepdims=True)       # (1, TB)
                bp_n = jnp.min(jnp.where(cand == vit_n, sub_mat, np_fill),
                               axis=0, keepdims=True)              # (1, TB) int32
                vit = jnp.where(sub_mat == n, vit_n, vit)
                bp_t = jnp.where(sub_mat == n, bp_n, bp_t)
            bps.append(bp_t)                                       # register-resident
            fv = vit + feats_ref[t]                                # (NP, TB)

        # ---- terminal step ----
        terminal = fv + trans_stop
        best_score = jnp.max(terminal, axis=0, keepdims=True)      # (1, TB)
        best = jnp.min(jnp.where(terminal == best_score, sub_mat, np_fill),
                       axis=0, keepdims=True)                      # (1, TB) int32
        score_ref[...] = best_score                                # lane-dense store

        # ---- backtrack: one sublane reduce per step, shared by all TB dialogs --
        path_rows = [None] * T
        path_rows[T - 1] = best
        for t in range(T - 1, 0, -1):
            best = jnp.min(jnp.where(sub_mat == best, bps[t], np_fill),
                           axis=0, keepdims=True)
            path_rows[t - 1] = best
        row_t = jax.lax.broadcasted_iota(jnp.int32, (T, TB), 0)
        path = jnp.zeros((T, TB), jnp.int32)
        for t in range(T):
            path = jnp.where(row_t == t, path_rows[t], path)
        path_ref[...] = path                                       # single (T,TB) store
        # TODO(synk): torch asserts the final backpointer equals START; not checked
        #             in-kernel (a NaN input would also silently yield bp == NP).

    return kernel


# --------------------------------------------------------------------------
# Wrapper: parameter packing + lane-batched pallas_call
# --------------------------------------------------------------------------
def pack_crf_params(params, emo_to_ix):
    NT = len(emo_to_ix)
    k = NT - 2
    NP = NP_TAGS
    trans = params["transitions"].astype(jnp.float32)
    # softmax over dim 0, then diagonal := -1 (replicates the in-place
    # `multiplier_row.data[next_tag] = -1` mutation in the torch module).
    ms = jax.nn.softmax(params["multiplier"].astype(jnp.float32), axis=0)
    ms = ms.at[jnp.arange(k), jnp.arange(k)].set(-1.0)

    trans_T = jnp.full((NP, NP), NEG_PAD, jnp.float32).at[:NT, :NT].set(trans.T)
    mult_T = jnp.zeros((NP, NP), jnp.float32).at[:k, :k].set(ms.T)
    cols = jnp.zeros((NP, NP), jnp.float32)
    cols = cols.at[:k, 0].set(params["weight_for_emo_shift_in_activate"].astype(jnp.float32))
    cols = cols.at[:k, 1].set(params["weight_for_emo_with_shift_out_activate"].astype(jnp.float32))
    cols = cols.at[:k, 2].set(params["weight_for_emo_no_shift_out_activate"].astype(jnp.float32))
    cols = cols.at[:, 3].set(params["bias_in_activate_with_shift"].reshape(()).astype(jnp.float32))
    cols = cols.at[:, 4].set(params["bias_in_activate_no_shift"].reshape(()).astype(jnp.float32))
    return jnp.concatenate([trans_T, mult_T, cols], axis=0)        # (24, 8)


def crf_viterbi_forward_batch(feats_b, bias_b, params, emo_to_ix, tb=LANE_TB):
    """feats_b: (B, T, NT) emission feats, bias_b: (B, T) emo-shift bias values."""
    NT = len(emo_to_ix)
    NP = NP_TAGS
    start_ix = emo_to_ix[START_TAG]
    stop_ix = emo_to_ix[STOP_TAG]
    B, T, _ = feats_b.shape

    G = max(1, pl.cdiv(B, tb))
    B_pad = G * tb

    feats_p = jnp.zeros((B_pad, T, NP), jnp.float32)
    feats_p = feats_p.at[:B, :, :NT].set(feats_b.astype(jnp.float32))
    bias_p = jnp.zeros((B_pad, T), jnp.float32).at[:B].set(bias_b.astype(jnp.float32))

    # layout plumbing (host side): dialogs -> lane axis
    feats_lane = jnp.transpose(feats_p.reshape(G, tb, T, NP), (0, 2, 3, 1))  # (G,T,NP,TB)
    bias_lane = jnp.transpose(bias_p.reshape(G, tb, T), (0, 2, 1))           # (G,T,TB)
    packed = pack_crf_params(params, emo_to_ix)

    kernel = make_viterbi_kernel(T, NT, tb, start_ix, stop_ix)
    score, path = pl.pallas_call(
        kernel,
        grid=(G,),
        out_shape=(jax.ShapeDtypeStruct((G, 1, tb), jnp.float32),
                   jax.ShapeDtypeStruct((G, T, tb), jnp.int32)),
        in_specs=[
            pl.BlockSpec((None, T, tb), lambda g: (g, 0, 0)),          # bias (VMEM)
            pl.BlockSpec((None, T, NP, tb), lambda g: (g, 0, 0, 0)),   # feats (VMEM)
            pl.BlockSpec((_PACK_ROWS, NP), lambda g: (0, 0)),          # params, resident
        ],
        out_specs=(pl.BlockSpec((None, 1, tb), lambda g: (g, 0, 0)),   # score (lane-dense)
                   pl.BlockSpec((None, T, tb), lambda g: (g, 0, 0))),  # path  (lane-dense)
        compiler_params=pltpu.CompilerParams(
            dimension_semantics=("parallel",)),     # dialog tiles split across TCs on v7x
    )(bias_lane, feats_lane, packed)

    scores = score.reshape(B_pad)[:B]
    paths = jnp.transpose(path, (0, 2, 1)).reshape(B_pad, T)[:B]
    return scores, paths


# --------------------------------------------------------------------------
# Glue mirroring the torch module's __init__ / _get_pretrain_model_features
# --------------------------------------------------------------------------
def init_crf_params(key, emo_to_ix):
    NT = len(emo_to_ix)
    k = NT - 2
    ks = jax.random.split(key, 7)
    transitions = jax.random.normal(ks[0], (NT, NT), jnp.float32)
    transitions = transitions.at[emo_to_ix[START_TAG], :].set(-10000.0)
    transitions = transitions.at[:, emo_to_ix[STOP_TAG]].set(-10000.0)
    multiplier = jax.random.normal(ks[6], (k, k), jnp.float32)
    multiplier = multiplier.at[jnp.arange(k), jnp.arange(k)].set(-10000.0)
    return {
        "transitions": transitions,
        "weight_for_emo_shift_in_activate": jax.random.normal(ks[1], (k,), jnp.float32),
        "bias_in_activate_no_shift": jax.random.normal(ks[2], (1,), jnp.float32),
        "bias_in_activate_with_shift": jax.random.normal(ks[3], (1,), jnp.float32),
        "weight_for_emo_with_shift_out_activate": jax.random.normal(ks[4], (k,), jnp.float32),
        "weight_for_emo_no_shift_out_activate": jax.random.normal(ks[5], (k,), jnp.float32),
        "multiplier": multiplier,
    }


def get_pretrain_model_features(sentence, out_table, NT):
    # TODO(synk): torch builds feats as float64 via numpy; TPU Pallas computes in float32.
    T = sentence.shape[0]
    feats_emo = out_table[sentence]                       # (T, NT-2): out_dict lookup
    idx = jnp.arange(T)
    col_s = jnp.where(idx == 0, 3.0, -3.0)[:, None]       # second-to-last tag column
    col_e = jnp.where(idx == T - 1, 3.0, -3.0)[:, None]   # last tag column
    return jnp.concatenate([feats_emo, col_s, col_e], axis=1).astype(jnp.float32)


# --------------------------------------------------------------------------
# Pure numpy reference (mirrors torch _viterbi_decode exactly, in float32)
# --------------------------------------------------------------------------
def ref_viterbi(feats, bias_vals, p, emo_to_ix):
    NT = len(emo_to_ix)
    k = NT - 2
    T = feats.shape[0]
    trans = np.asarray(p["transitions"], np.float32)
    m = np.asarray(p["multiplier"], np.float32)
    me = np.exp(m - m.max(axis=0, keepdims=True))
    ms = me / me.sum(axis=0, keepdims=True)
    np.fill_diagonal(ms, -1.0)
    w_in = np.asarray(p["weight_for_emo_shift_in_activate"], np.float32)
    b_no = float(p["bias_in_activate_no_shift"][0])
    b_with = float(p["bias_in_activate_with_shift"][0])
    w_with = np.asarray(p["weight_for_emo_with_shift_out_activate"], np.float32)
    w_no = np.asarray(p["weight_for_emo_no_shift_out_activate"], np.float32)

    fv = np.full((NT,), -10000.0, np.float32)
    fv[emo_to_ix[START_TAG]] = 0.0
    backpointers = []
    for i in range(T):
        bias = float(bias_vals[i])
        if bias > 0.5:
            vec4 = w_with * np.tanh(np.float32(bias) * w_in + np.float32(b_with))
        else:
            vec4 = w_no * np.tanh(np.float32(bias) * w_in + np.float32(b_no))
        vec = np.concatenate([vec4, np.zeros(2, np.float32)])
        bptrs = np.zeros(NT, np.int32)
        vit = np.zeros(NT, np.float32)
        for nt_ in range(NT):
            if nt_ < k:
                mrow = np.concatenate([ms[nt_], np.zeros(2, np.float32)])
                ts = trans[nt_] + vec * mrow
            else:
                ts = trans[nt_]
            nv = fv + ts
            best_id = int(np.argmax(nv))
            bptrs[nt_] = best_id
            vit[nt_] = nv[best_id]
        fv = vit + np.asarray(feats[i], np.float32)
        backpointers.append(bptrs)
    terminal = fv + trans[emo_to_ix[STOP_TAG]]
    best = int(np.argmax(terminal))
    score = terminal[best]
    path = [best]
    for bptrs in reversed(backpointers):
        best = int(bptrs[best])
        path.append(best)
    start = path.pop()
    assert start == emo_to_ix[START_TAG]
    path.reverse()
    return np.float32(score), np.asarray(path, np.int32)


# --------------------------------------------------------------------------
if __name__ == "__main__":
    emo_to_ix = {"ang": 0, "hap": 1, "neu": 2, "sad": 3, START_TAG: 4, STOP_TAG: 5}
    NT = len(emo_to_ix)
    B = 200        # dialogs (padded to 256 -> grid of 2 lane-batched steps)
    T = 8          # utterances per dialog
    vocab = 12     # number of distinct utterances

    key = jax.random.PRNGKey(0)
    kp, ko, kb, ks, kd = jax.random.split(key, 5)
    params = init_crf_params(kp, emo_to_ix)

    # synthetic stand-ins for out_dict / bias_dict / ix_to_utt lookups
    out_table = 0.5 * jax.random.normal(ko, (vocab, NT - 2), jnp.float32)
    bias_table = jax.random.uniform(kb, (vocab,), jnp.float32)

    sentences = jax.random.randint(ks, (B, T), 0, vocab)   # utterance indices
    dialogs = jax.random.randint(kd, (B, T), 0, vocab)     # keys into bias_dict

    feats_b = jax.vmap(lambda s: get_pretrain_model_features(s, out_table, NT))(sentences)
    bias_b = bias_table[dialogs]

    scores, paths = crf_viterbi_forward_batch(feats_b, bias_b, params, emo_to_ix)
    scores, paths = jax.block_until_ready((scores, paths))

    params_np = {k: np.asarray(v) for k, v in params.items()}
    feats_np = np.asarray(feats_b)
    bias_np = np.asarray(bias_b)
    scores_np = np.asarray(scores)
    paths_np = np.asarray(paths)
    for d in range(B):
        ref_score, ref_path = ref_viterbi(feats_np[d], bias_np[d], params_np, emo_to_ix)
        assert abs(float(scores_np[d]) - float(ref_score)) < 1e-3, (
            d, float(scores_np[d]), float(ref_score))
        assert np.array_equal(paths_np[d], ref_path), (d, paths_np[d], ref_path)
    print("KERNEL_OK")
</pallas_src>

<mosaic_0001>
module attributes {stable_mosaic.version = 11 : i64} {
  func.func @kernel(%arg0: i32, %arg1: memref<1x8x128xf32, #tpu.memory_space<vmem>>, %arg2: memref<1x8x8x128xf32, #tpu.memory_space<vmem>>, %arg3: memref<24x8xf32, #tpu.memory_space<vmem>>, %arg4: memref<1x1x128xf32, #tpu.memory_space<vmem>>, %arg5: memref<1x8x128xi32, #tpu.memory_space<vmem>>) attributes {dimension_semantics = [#tpu.dimension_semantics<parallel>], iteration_bounds = array<i64: 2>, scalar_prefetch = 0 : i64, scratch_operands = 0 : i64, tpu.core_type = #tpu.core_type<tc>, window_params = [{transform_indices = @transform_0, window_bounds = array<i64: 1, 8, 128>}, {transform_indices = @transform_1, window_bounds = array<i64: 1, 8, 8, 128>}, {pipeline_mode = #tpu.pipeline_mode<synchronous>, transform_indices = @transform_2, window_bounds = array<i64: 24, 8>}, {transform_indices = @transform_3, window_bounds = array<i64: 1, 1, 128>}, {transform_indices = @transform_4, window_bounds = array<i64: 1, 8, 128>}]} {
    %0 = tpu.iota {dimensions = array<i32: 0>} : vector<8x128xi32>
    %c8_i32 = arith.constant 8 : i32
    %1 = vector.broadcast %c8_i32 : i32 to vector<8x128xi32>
    %cst = arith.constant -1.000000e+07 : f32
    %2 = vector.broadcast %cst : f32 to vector<8x128xf32>
    %c0 = arith.constant 0 : index
    %c0_0 = arith.constant 0 : index
    %3 = vector.load %arg3[%c0, %c0_0] : memref<24x8xf32, #tpu.memory_space<vmem>>, vector<24x8xf32>
    %4 = vector.extract_strided_slice %3 {offsets = [0, 0], sizes = [8, 8], strides = [1, 1]} : vector<24x8xf32> to vector<8x8xf32>
    %5 = vector.extract_strided_slice %3 {offsets = [8, 0], sizes = [8, 8], strides = [1, 1]} : vector<24x8xf32> to vector<8x8xf32>
    %6 = vector.extract_strided_slice %3 {offsets = [16, 0], sizes = [8, 8], strides = [1, 1]} : vector<24x8xf32> to vector<8x8xf32>
    %7 = vector.extract_strided_slice %6 {offsets = [0, 0], sizes = [8, 1], strides = [1, 1]} : vector<8x8xf32> to vector<8x1xf32>
    %8 = vector.extract_strided_slice %6 {offsets = [0, 1], sizes = [8, 1], strides = [1, 1]} : vector<8x8xf32> to vector<8x1xf32>
    %9 = vector.extract_strided_slice %6 {offsets = [0, 2], sizes = [8, 1], strides = [1, 1]} : vector<8x8xf32> to vector<8x1xf32>
    %10 = vector.extract_strided_slice %6 {offsets = [0, 3], sizes = [8, 1], strides = [1, 1]} : vector<8x8xf32> to vector<8x1xf32>
    %11 = vector.extract_strided_slice %6 {offsets = [0, 4], sizes = [8, 1], strides = [1, 1]} : vector<8x8xf32> to vector<8x1xf32>
    %12 = vector.extract_strided_slice %4 {offsets = [0, 0], sizes = [8, 1], strides = [1, 1]} : vector<8x8xf32> to vector<8x1xf32>
    %13 = vector.extract_strided_slice %4 {offsets = [0, 1], sizes = [8, 1], strides = [1, 1]} : vector<8x8xf32> to vector<8x1xf32>
    %14 = vector.extract_strided_slice %4 {offsets = [0, 2], sizes = [8, 1], strides = [1, 1]} : vector<8x8xf32> to vector<8x1xf32>
    %15 = vector.extract_strided_slice %4 {offsets = [0, 3], sizes = [8, 1], strides = [1, 1]} : vector<8x8xf32> to vector<8x1xf32>
    %16 = vector.extract_strided_slice %4 {offsets = [0, 4], sizes = [8, 1], strides = [1, 1]} : vector<8x8xf32> to vector<8x1xf32>
    %17 = vector.extract_strided_slice %4 {offsets = [0, 5], sizes = [8, 1], strides = [1, 1]} : vector<8x8xf32> to vector<8x1xf32>
    %18 = vector.extract_strided_slice %5 {offsets = [0, 0], sizes = [8, 1], strides = [1, 1]} : vector<8x8xf32> to vector<8x1xf32>
    %19 = vector.extract_strided_slice %5 {offsets = [0, 1], sizes = [8, 1], strides = [1, 1]} : vector<8x8xf32> to vector<8x1xf32>
    %20 = vector.extract_strided_slice %5 {offsets = [0, 2], sizes = [8, 1], strides = [1, 1]} : vector<8x8xf32> to vector<8x1xf32>
    %21 = vector.extract_strided_slice %5 {offsets = [0, 3], sizes = [8, 1], strides = [1, 1]} : vector<8x8xf32> to vector<8x1xf32>
    %22 = vector.extract_strided_slice %5 {offsets = [0, 4], sizes = [8, 1], strides = [1, 1]} : vector<8x8xf32> to vector<8x1xf32>
    %23 = vector.extract_strided_slice %5 {offsets = [0, 5], sizes = [8, 1], strides = [1, 1]} : vector<8x8xf32> to vector<8x1xf32>
    %24 = vector.extract_strided_slice %4 {offsets = [0, 5], sizes = [8, 1], strides = [1, 1]} : vector<8x8xf32> to vector<8x1xf32>
    %c4_i32 = arith.constant 4 : i32
    %25 = vector.broadcast %c4_i32 : i32 to vector<8x128xi32>
    %26 = arith.cmpi eq, %0, %25 : vector<8x128xi32>
    %c6_i32 = arith.constant 6 : i32
    %27 = vector.broadcast %c6_i32 : i32 to vector<8x128xi32>
    %28 = arith.cmpi slt, %0, %27 : vector<8x128xi32>
    %cst_1 = arith.constant -1.000000e+04 : f32
    %cst_2 = arith.constant -1.000000e+07 : f32
    %29 = vector.broadcast %cst_1 : f32 to vector<8x128xf32>
    %30 = vector.broadcast %cst_2 : f32 to vector<8x128xf32>
    %31 = arith.select %28, %29, %30 : vector<8x128xi1>, vector<8x128xf32>
    %cst_3 = arith.constant 0.000000e+00 : f32
    %32 = vector.broadcast %cst_3 : f32 to vector<8x128xf32>
    %33 = arith.select %26, %32, %31 : vector<8x128xi1>, vector<8x128xf32>
    %c0_4 = arith.constant 0 : index
    %c0_5 = arith.constant 0 : index
    %c0_6 = arith.constant 0 : index
    %34 = vector.load %arg1[%c0_4, %c0_5, %c0_6] : memref<1x8x128xf32, #tpu.memory_space<vmem>>, vector<1x1x128xf32>
    %35 = vector.shape_cast %34 : vector<1x1x128xf32> to vector<1x128xf32>
    %cst_7 = arith.constant 5.000000e-01 : f32
    %36 = vector.broadcast %cst_7 : f32 to vector<1x128xf32>
    %37 = arith.cmpf ogt, %35, %36 : vector<1x128xf32>
    %38 = vector.shape_cast %37 : vector<1x128xi1> to vector<1x128xi1>
    %39 = vector.broadcast %38 : vector<1x128xi1> to vector<8x128xi1>
    %40 = vector.shape_cast %8 : vector<8x1xf32> to vector<8x1xf32>
    %41 = vector.broadcast %40 : vector<8x1xf32> to vector<8x128xf32>
    %42 = vector.shape_cast %9 : vector<8x1xf32> to vector<8x1xf32>
    %43 = vector.broadcast %42 : vector<8x1xf32> to vector<8x128xf32>
    %44 = arith.select %39, %41, %43 : vector<8x128xi1>, vector<8x128xf32>
    %45 = vector.shape_cast %37 : vector<1x128xi1> to vector<1x128xi1>
    %46 = vector.broadcast %45 : vector<1x128xi1> to vector<8x128xi1>
    %47 = vector.shape_cast %10 : vector<8x1xf32> to vector<8x1xf32>
    %48 = vector.broadcast %47 : vector<8x1xf32> to vector<8x128xf32>
    %49 = vector.shape_cast %11 : vector<8x1xf32> to vector<8x1xf32>
    %50 = vector.broadcast %49 : vector<8x1xf32> to vector<8x128xf32>
    %51 = arith.select %46, %48, %50 : vector<8x128xi1>, vector<8x128xf32>
    %52 = vector.broadcast %35 : vector<1x128xf32> to vector<8x128xf32>
    %53 = vector.broadcast %7 : vector<8x1xf32> to vector<8x128xf32>
    %54 = arith.mulf %52, %53 : vector<8x128xf32>
    %55 = arith.addf %54, %51 : vector<8x128xf32>
    %56 = math.tanh %55 : vector<8x128xf32>
    %57 = arith.mulf %44, %56 : vector<8x128xf32>
    %58 = vector.broadcast %18 : vector<8x1xf32> to vector<8x128xf32>
    %59 = arith.mulf %57, %58 : vector<8x128xf32>
    %60 = vector.broadcast %12 : vector<8x1xf32> to vector<8x128xf32>
    %61 = arith.addf %60, %59 : vector<8x128xf32>
    %62 = arith.addf %33, %61 : vector<8x128xf32>
    %cst_8 = arith.constant dense<0xFF800000> : vector<128xf32>
    %63 = vector.multi_reduction <maximumf>, %62, %cst_8 [0] : vector<8x128xf32> to vector<128xf32>
    %64 = vector.shape_cast %63 : vector<128xf32> to vector<1x128xf32>
    %c0_i32 = arith.constant 0 : i32
    %65 = vector.broadcast %c0_i32 : i32 to vector<8x128xi32>
    %66 = arith.cmpi eq, %0, %65 : vector<8x128xi32>
    %67 = vector.shape_cast %64 : vector<1x128xf32> to vector<1x128xf32>
    %68 = vector.broadcast %67 : vector<1x128xf32> to vector<8x128xf32>
    %69 = arith.select %66, %68, %2 : vector<8x128xi1>, vector<8x128xf32>
    %70 = vector.broadcast %19 : vector<8x1xf32> to vector<8x128xf32>
    %71 = arith.mulf %57, %70 : vector<8x128xf32>
    %72 = vector.broadcast %13 : vector<8x1xf32> to vector<8x128xf32>
    %73 = arith.addf %72, %71 : vector<8x128xf32>
    %74 = arith.addf %33, %73 : vector<8x128xf32>
    %cst_9 = arith.constant dense<0xFF800000> : vector<128xf32>
    %75 = vector.multi_reduction <maximumf>, %74, %cst_9 [0] : vector<8x128xf32> to vector<128xf32>
    %76 = vector.shape_cast %75 : vector<128xf32> to vector<1x128xf32>
    %c1_i32 = arith.constant 1 : i32
    %77 = vector.broadcast %c1_i32 : i32 to vector<8x128xi32>
    %78 = arith.cmpi eq, %0, %77 : vector<8x128xi32>
    %79 = vector.shape_cast %76 : vector<1x128xf32> to vector<1x128xf32>
    %80 = vector.broadcast %79 : vector<1x128xf32> to vector<8x128xf32>
    %81 = arith.select %78, %80, %69 : vector<8x128xi1>, vector<8x128xf32>
    %82 = vector.broadcast %20 : vector<8x1xf32> to vector<8x128xf32>
    %83 = arith.mulf %57, %82 : vector<8x128xf32>
    %84 = vector.broadcast %14 : vector<8x1xf32> to vector<8x128xf32>
    %85 = arith.addf %84, %83 : vector<8x128xf32>
    %86 = arith.addf %33, %85 : vector<8x128xf32>
    %cst_10 = arith.constant dense<0xFF800000> : vector<128xf32>
    %87 = vector.multi_reduction <maximumf>, %86, %cst_10 [0] : vector<8x128xf32> to vector<128xf32>
    %88 = vector.shape_cast %87 : vector<128xf32> to vector<1x128xf32>
    %c2_i32 = arith.constant 2 : i32
    %89 = vector.broadcast %c2_i32 : i32 to vector<8x128xi32>
    %90 = arith.cmpi eq, %0, %89 : vector<8x128xi32>
    %91 = vector.shape_cast %88 : vector<1x128xf32> to vector<1x128xf32>
    %92 = vector.broadcast %91 : vector<1x128xf32> to vector<8x128xf32>
    %93 = arith.select %90, %92, %81 : vector<8x128xi1>, vector<8x128xf32>
    %94 = vector.broadcast %21 : vector<8x1xf32> to vector<8x128xf32>
    %95 = arith.mulf %57, %94 : vector<8x128xf32>
    %96 = vector.broadcast %15 : vector<8x1xf32> to vector<8x128xf32>
    %97 = arith.addf %96, %95 : vector<8x128xf32>
    %98 = arith.addf %33, %97 : vector<8x128xf32>
    %cst_11 = arith.constant dense<0xFF800000> : vector<128xf32>
    %99 = vector.multi_reduction <maximumf>, %98, %cst_11 [0] : vector<8x128xf32> to vector<128xf32>
    %100 = vector.shape_cast %99 : vector<128xf32> to vector<1x128xf32>
    %c3_i32 = arith.constant 3 : i32
    %101 = vector.broadcast %c3_i32 : i32 to vector<8x128xi32>
    %102 = arith.cmpi eq, %0, %101 : vector<8x128xi32>
    %103 = vector.shape_cast %100 : vector<1x128xf32> to vector<1x128xf32>
    %104 = vector.broadcast %103 : vector<1x128xf32> to vector<8x128xf32>
    %105 = arith.select %102, %104, %93 : vector<8x128xi1>, vector<8x128xf32>
    %106 = vector.broadcast %22 : vector<8x1xf32> to vector<8x128xf32>
    %107 = arith.mulf %57, %106 : vector<8x128xf32>
    %108 = vector.broadcast %16 : vector<8x1xf32> to vector<8x128xf32>
    %109 = arith.addf %108, %107 : vector<8x128xf32>
    %110 = arith.addf %33, %109 : vector<8x128xf32>
    %cst_12 = arith.constant dense<0xFF800000> : vector<128xf32>
    %111 = vector.multi_reduction <maximumf>, %110, %cst_12 [0] : vector<8x128xf32> to vector<128xf32>
    %112 = vector.shape_cast %111 : vector<128xf32> to vector<1x128xf32>
    %c4_i32_13 = arith.constant 4 : i32
    %113 = vector.broadcast %c4_i32_13 : i32 to vector<8x128xi32>
    %114 = arith.cmpi eq, %0, %113 : vector<8x128xi32>
    %115 = vector.shape_cast %112 : vector<1x128xf32> to vector<1x128xf32>
    %116 = vector.broadcast %115 : vector<1x128xf32> to vector<8x128xf32>
    %117 = arith.select %114, %116, %105 : vector<8x128xi1>, vector<8x128xf32>
    %118 = vector.broadcast %23 : vector<8x1xf32> to vector<8x128xf32>
    %119 = arith.mulf %57, %118 : vector<8x128xf32>
    %120 = vector.broadcast %17 : vector<8x1xf32> to vector<8x128xf32>
    %121 = arith.addf %120, %119 : vector<8x128xf32>
    %122 = arith.addf %33, %121 : vector<8x128xf32>
    %cst_14 = arith.constant dense<0xFF800000> : vector<128xf32>
    %123 = vector.multi_reduction <maximumf>, %122, %cst_14 [0] : vector<8x128xf32> to vector<128xf32>
    %124 = vector.shape_cast %123 : vector<128xf32> to vector<1x128xf32>
    %c5_i32 = arith.constant 5 : i32
    %125 = vector.broadcast %c5_i32 : i32 to vector<8x128xi32>
    %126 = arith.cmpi eq, %0, %125 : vector<8x128xi32>
    %127 = vector.shape_cast %124 : vector<1x128xf32> to vector<1x128xf32>
    %128 = vector.broadcast %127 : vector<1x128xf32> to vector<8x128xf32>
    %129 = arith.select %126, %128, %117 : vector<8x128xi1>, vector<8x128xf32>
    %c0_15 = arith.constant 0 : index
    %c0_16 = arith.constant 0 : index
    %c0_17 = arith.constant 0 : index
    %c0_18 = arith.constant 0 : index
    %130 = vector.load %arg2[%c0_15, %c0_16, %c0_17, %c0_18] : memref<1x8x8x128xf32, #tpu.memory_space<vmem>>, vector<1x1x8x128xf32>
    %131 = vector.shape_cast %130 : vector<1x1x8x128xf32> to vector<8x128xf32>
    %132 = arith.addf %129, %131 : vector<8x128xf32>
    %c0_19 = arith.constant 0 : index
    %c1 = arith.constant 1 : index
    %c0_20 = arith.constant 0 : index
    %133 = vector.load %arg1[%c0_19, %c1, %c0_20] : memref<1x8x128xf32, #tpu.memory_space<vmem>>, vector<1x1x128xf32>
    %134 = vector.shape_cast %133 : vector<1x1x128xf32> to vector<1x128xf32>
    %cst_21 = arith.constant 5.000000e-01 : f32
    %135 = vector.broadcast %cst_21 : f32 to vector<1x128xf32>
    %136 = arith.cmpf ogt, %134, %135 : vector<1x128xf32>
    %137 = vector.shape_cast %136 : vector<1x128xi1> to vector<1x128xi1>
    %138 = vector.broadcast %137 : vector<1x128xi1> to vector<8x128xi1>
    %139 = vector.shape_cast %8 : vector<8x1xf32> to vector<8x1xf32>
    %140 = vector.broadcast %139 : vector<8x1xf32> to vector<8x128xf32>
    %141 = vector.shape_cast %9 : vector<8x1xf32> to vector<8x1xf32>
    %142 = vector.broadcast %141 : vector<8x1xf32> to vector<8x128xf32>
    %143 = arith.select %138, %140, %142 : vector<8x128xi1>, vector<8x128xf32>
    %144 = vector.shape_cast %136 : vector<1x128xi1> to vector<1x128xi1>
    %145 = vector.broadcast %144 : vector<1x128xi1> to vector<8x128xi1>
    %146 = vector.shape_cast %10 : vector<8x1xf32> to vector<8x1xf32>
    %147 = vector.broadcast %146 : vector<8x1xf32> to vector<8x128xf32>
    %148 = vector.shape_cast %11 : vector<8x1xf32> to vector<8x1xf32>
    %149 = vector.broadcast %148 : vector<8x1xf32> to vector<8x128xf32>
    %150 = arith.select %145, %147, %149 : vector<8x128xi1>, vector<8x128xf32>
    %151 = vector.broadcast %134 : vector<1x128xf32> to vector<8x128xf32>
    %152 = vector.broadcast %7 : vector<8x1xf32> to vector<8x128xf32>
    %153 = arith.mulf %151, %152 : vector<8x128xf32>
    %154 = arith.addf %153, %150 : vector<8x128xf32>
    %155 = math.tanh %154 : vector<8x128xf32>
    %156 = arith.mulf %143, %155 : vector<8x128xf32>
    %157 = vector.broadcast %18 : vector<8x1xf32> to vector<8x128xf32>
    %158 = arith.mulf %156, %157 : vector<8x128xf32>
    %159 = vector.broadcast %12 : vector<8x1xf32> to vector<8x128xf32>
    %160 = arith.addf %159, %158 : vector<8x128xf32>
    %161 = arith.addf %132, %160 : vector<8x128xf32>
    %cst_22 = arith.constant dense<0xFF800000> : vector<128xf32>
    %162 = vector.multi_reduction <maximumf>, %161, %cst_22 [0] : vector<8x128xf32> to vector<128xf32>
    %163 = vector.shape_cast %162 : vector<128xf32> to vector<1x128xf32>
    %164 = vector.broadcast %163 : vector<1x128xf32> to vector<8x128xf32>
    %165 = arith.cmpf oeq, %161, %164 : vector<8x128xf32>
    %166 = arith.select %165, %0, %1 : vector<8x128xi1>, vector<8x128xi32>
    %cst_23 = arith.constant dense<2147483647> : vector<128xi32>
    %167 = vector.multi_reduction <minsi>, %166, %cst_23 [0] : vector<8x128xi32> to vector<128xi32>
    %168 = vector.shape_cast %167 : vector<128xi32> to vector<1x128xi32>
    %c0_i32_24 = arith.constant 0 : i32
    %169 = vector.broadcast %c0_i32_24 : i32 to vector<8x128xi32>
    %170 = arith.cmpi eq, %0, %169 : vector<8x128xi32>
    %171 = vector.shape_cast %163 : vector<1x128xf32> to vector<1x128xf32>
    %172 = vector.broadcast %171 : vector<1x128xf32> to vector<8x128xf32>
    %173 = arith.select %170, %172, %2 : vector<8x128xi1>, vector<8x128xf32>
    %c0_i32_25 = arith.constant 0 : i32
    %174 = vector.broadcast %c0_i32_25 : i32 to vector<8x128xi32>
    %175 = arith.cmpi eq, %0, %174 : vector<8x128xi32>
    %176 = vector.shape_cast %168 : vector<1x128xi32> to vector<1x128xi32>
    %177 = vector.broadcast %176 : vector<1x128xi32> to vector<8x128xi32>
    %178 = arith.select %175, %177, %1 : vector<8x128xi1>, vector<8x128xi32>
    %179 = vector.broadcast %19 : vector<8x1xf32> to vector<8x128xf32>
    %180 = arith.mulf %156, %179 : vector<8x128xf32>
    %181 = vector.broadcast %13 : vector<8x1xf32> to vector<8x128xf32>
    %182 = arith.addf %181, %180 : vector<8x128xf32>
    %183 = arith.addf %132, %182 : vector<8x128xf32>
    %cst_26 = arith.constant dense<0xFF800000> : vector<128xf32>
    %184 = vector.multi_reduction <maximumf>, %183, %cst_26 [0] : vector<8x128xf32> to vector<128xf32>
    %185 = vector.shape_cast %184 : vector<128xf32> to vector<1x128xf32>
    %186 = vector.broadcast %185 : vector<1x128xf32> to vector<8x128xf32>
    %187 = arith.cmpf oeq, %183, %186 : vector<8x128xf32>
    %188 = arith.select %187, %0, %1 : vector<8x128xi1>, vector<8x128xi32>
    %cst_27 = arith.constant dense<2147483647> : vector<128xi32>
    %189 = vector.multi_reduction <minsi>, %188, %cst_27 [0] : vector<8x128xi32> to vector<128xi32>
    %190 = vector.shape_cast %189 : vector<128xi32> to vector<1x128xi32>
    %c1_i32_28 = arith.constant 1 : i32
    %191 = vector.broadcast %c1_i32_28 : i32 to vector<8x128xi32>
    %192 = arith.cmpi eq, %0, %191 : vector<8x128xi32>
    %193 = vector.shape_cast %185 : vector<1x128xf32> to vector<1x128xf32>
    %194 = vector.broadcast %193 : vector<1x128xf32> to vector<8x128xf32>
    %195 = arith.select %192, %194, %173 : vector<8x128xi1>, vector<8x128xf32>
    %c1_i32_29 = arith.constant 1 : i32
    %196 = vector.broadcast %c1_i32_29 : i32 to vector<8x128xi32>
    %197 = arith.cmpi eq, %0, %196 : vector<8x128xi32>
    %198 = vector.shape_cast %190 : vector<1x128xi32> to vector<1x128xi32>
    %199 = vector.broadcast %198 : vector<1x128xi32> to vector<8x128xi32>
    %200 = arith.select %197, %199, %178 : vector<8x128xi1>, vector<8x128xi32>
    %201 = vector.broadcast %20 : vector<8x1xf32> to vector<8x128xf32>
    %202 = arith.mulf %156, %201 : vector<8x128xf32>
    %203 = vector.broadcast %14 : vector<8x1xf32> to vector<8x128xf32>
    %204 = arith.addf %203, %202 : vector<8x128xf32>
    %205 = arith.addf %132, %204 : vector<8x128xf32>
    %cst_30 = arith.constant dense<0xFF800000> : vector<128xf32>
    %206 = vector.multi_reduction <maximumf>, %205, %cst_30 [0] : vector<8x128xf32> to vector<128xf32>
    %207 = vector.shape_cast %206 : vector<128xf32> to vector<1x128xf32>
    %208 = vector.broadcast %207 : vector<1x128xf32> to vector<8x128xf32>
    %209 = arith.cmpf oeq, %205, %208 : vector<8x128xf32>
    %210 = arith.select %209, %0, %1 : vector<8x128xi1>, vector<8x128xi32>
    %cst_31 = arith.constant dense<2147483647> : vector<128xi32>
    %211 = vector.multi_reduction <minsi>, %210, %cst_31 [0] : vector<8x128xi32> to vector<128xi32>
    %212 = vector.shape_cast %211 : vector<128xi32> to vector<1x128xi32>
    %c2_i32_32 = arith.constant 2 : i32
    %213 = vector.broadcast %c2_i32_32 : i32 to vector<8x128xi32>
    %214 = arith.cmpi eq, %0, %213 : vector<8x128xi32>
    %215 = vector.shape_cast %207 : vector<1x128xf32> to vector<1x128xf32>
    %216 = vector.broadcast %215 : vector<1x128xf32> to vector<8x128xf32>
    %217 = arith.select %214, %216, %195 : vector<8x128xi1>, vector<8x128xf32>
    %c2_i32_33 = arith.constant 2 : i32
    %218 = vector.broadcast %c2_i32_33 : i32 to vector<8x128xi32>
    %219 = arith.cmpi eq, %0, %218 : vector<8x128xi32>
    %220 = vector.shape_cast %212 : vector<1x128xi32> to vector<1x128xi32>
    %221 = vector.broadcast %220 : vector<1x128xi32> to vector<8x128xi32>
    %222 = arith.select %219, %221, %200 : vector<8x128xi1>, vector<8x128xi32>
    %223 = vector.broadcast %21 : vector<8x1xf32> to vector<8x128xf32>
    %224 = arith.mulf %156, %223 : vector<8x128xf32>
    %225 = vector.broadcast %15 : vector<8x1xf32> to vector<8x128xf32>
    %226 = arith.addf %225, %224 : vector<8x128xf32>
    %227 = arith.addf %132, %226 : vector<8x128xf32>
    %cst_34 = arith.constant dense<0xFF800000> : vector<128xf32>
    %228 = vector.multi_reduction <maximumf>, %227, %cst_34 [0] : vector<8x128xf32> to vector<128xf32>
    %229 = vector.shape_cast %228 : vector<128xf32> to vector<1x128xf32>
    %230 = vector.broadcast %229 : vector<1x128xf32> to vector<8x128xf32>
    %231 = arith.cmpf oeq, %227, %230 : vector<8x128xf32>
    %232 = arith.select %231, %0, %1 : vector<8x128xi1>, vector<8x128xi32>
    %cst_35 = arith.constant dense<2147483647> : vector<128xi32>
    %233 = vector.multi_reduction <minsi>, %232, %cst_35 [0] : vector<8x128xi32> to vector<128xi32>
    %234 = vector.shape_cast %233 : vector<128xi32> to vector<1x128xi32>
    %c3_i32_36 = arith.constant 3 : i32
    %235 = vector.broadcast %c3_i32_36 : i32 to vector<8x128xi32>
    %236 = arith.cmpi eq, %0, %235 : vector<8x128xi32>
    %237 = vector.shape_cast %229 : vector<1x128xf32> to vector<1x128xf32>
    %238 = vector.broadcast %237 : vector<1x128xf32> to vector<8x128xf32>
    %239 = arith.select %236, %238, %217 : vector<8x128xi1>, vector<8x128xf32>
    %c3_i32_37 = arith.constant 3 : i32
    %240 = vector.broadcast %c3_i32_37 : i32 to vector<8x128xi32>
    %241 = arith.cmpi eq, %0, %240 : vector<8x128xi32>
    %242 = vector.shape_cast %234 : vector<1x128xi32> to vector<1x128xi32>
    %243 = vector.broadcast %242 : vector<1x128xi32> to vector<8x128xi32>
    %244 = arith.select %241, %243, %222 : vector<8x128xi1>, vector<8x128xi32>
    %245 = vector.broadcast %22 : vector<8x1xf32> to vector<8x128xf32>
    %246 = arith.mulf %156, %245 : vector<8x128xf32>
    %247 = vector.broadcast %16 : vector<8x1xf32> to vector<8x128xf32>
    %248 = arith.addf %247, %246 : vector<8x128xf32>
    %249 = arith.addf %132, %248 : vector<8x128xf32>
    %cst_38 = arith.constant dense<0xFF800000> : vector<128xf32>
    %250 = vector.multi_reduction <maximumf>, %249, %cst_38 [0] : vector<8x128xf32> to vector<128xf32>
    %251 = vector.shape_cast %250 : vector<128xf32> to vector<1x128xf32>
    %252 = vector.broadcast %251 : vector<1x128xf32> to vector<8x128xf32>
    %253 = arith.cmpf oeq, %249, %252 : vector<8x128xf32>
    %254 = arith.select %253, %0, %1 : vector<8x128xi1>, vector<8x128xi32>
    %cst_39 = arith.constant dense<2147483647> : vector<128xi32>
    %255 = vector.multi_reduction <minsi>, %254, %cst_39 [0] : vector<8x128xi32> to vector<128xi32>
    %256 = vector.shape_cast %255 : vector<128xi32> to vector<1x128xi32>
    %c4_i32_40 = arith.constant 4 : i32
    %257 = vector.broadcast %c4_i32_40 : i32 to vector<8x128xi32>
    %258 = arith.cmpi eq, %0, %257 : vector<8x128xi32>
    %259 = vector.shape_cast %251 : vector<1x128xf32> to vector<1x128xf32>
    %260 = vector.broadcast %259 : vector<1x128xf32> to vector<8x128xf32>
    %261 = arith.select %258, %260, %239 : vector<8x128xi1>, vector<8x128xf32>
    %c4_i32_41 = arith.constant 4 : i32
    %262 = vector.broadcast %c4_i32_41 : i32 to vector<8x128xi32>
    %263 = arith.cmpi eq, %0, %262 : vector<8x128xi32>
    %264 = vector.shape_cast %256 : vector<1x128xi32> to vector<1x128xi32>
    %265 = vector.broadcast %264 : vector<1x128xi32> to vector<8x128xi32>
    %266 = arith.select %263, %265, %244 : vector<8x128xi1>, vector<8x128xi32>
    %267 = vector.broadcast %23 : vector<8x1xf32> to vector<8x128xf32>
    %268 = arith.mulf %156, %267 : vector<8x128xf32>
    %269 = vector.broadcast %17 : vector<8x1xf32> to vector<8x128xf32>
    %270 = arith.addf %269, %268 : vector<8x128xf32>
    %271 = arith.addf %132, %270 : vector<8x128xf32>
    %cst_42 = arith.constant dense<0xFF800000> : vector<128xf32>
    %272 = vector.multi_reduction <maximumf>, %271, %cst_42 [0] : vector<8x128xf32> to vector<128xf32>
    %273 = vector.shape_cast %272 : vector<128xf32> to vector<1x128xf32>
    %274 = vector.broadcast %273 : vector<1x128xf32> to vector<8x128xf32>
    %275 = arith.cmpf oeq, %271, %274 : vector<8x128xf32>
    %276 = arith.select %275, %0, %1 : vector<8x128xi1>, vector<8x128xi32>
    %cst_43 = arith.constant dense<2147483647> : vector<128xi32>
    %277 = vector.multi_reduction <minsi>, %276, %cst_43 [0] : vector<8x128xi32> to vector<128xi32>
    %278 = vector.shape_cast %277 : vector<128xi32> to vector<1x128xi32>
    %c5_i32_44 = arith.constant 5 : i32
    %279 = vector.broadcast %c5_i32_44 : i32 to vector<8x128xi32>
    %280 = arith.cmpi eq, %0, %279 : vector<8x128xi32>
    %281 = vector.shape_cast %273 : vector<1x128xf32> to vector<1x128xf32>
    %282 = vector.broadcast %281 : vector<1x128xf32> to vector<8x128xf32>
    %283 = arith.select %280, %282, %261 : vector<8x128xi1>, vector<8x128xf32>
    %c5_i32_45 = arith.constant 5 : i32
    %284 = vector.broadcast %c5_i32_45 : i32 to vector<8x128xi32>
    %285 = arith.cmpi eq, %0, %284 : vector<8x128xi32>
    %286 = vector.shape_cast %278 : vector<1x128xi32> to vector<1x128xi32>
    %287 = vector.broadcast %286 : vector<1x128xi32> to vector<8x128xi32>
    %288 = arith.select %285, %287, %266 : vector<8x128xi1>, vector<8x128xi32>
    %c0_46 = arith.constant 0 : index
    %c1_47 = arith.constant 1 : index
    %c0_48 = arith.constant 0 : index
    %c0_49 = arith.constant 0 : index
    %289 = vector.load %arg2[%c0_46, %c1_47, %c0_48, %c0_49] : memref<1x8x8x128xf32, #tpu.memory_space<vmem>>, vector<1x1x8x128xf32>
    %290 = vector.shape_cast %289 : vector<1x1x8x128xf32> to vector<8x128xf32>
    %291 = arith.addf %283, %290 : vector<8x128xf32>
    %c0_50 = arith.constant 0 : index
    %c2 = arith.constant 2 : index
    %c0_51 = arith.constant 0 : index
    %292 = vector.load %arg1[%c0_50, %c2, %c0_51] : memref<1x8x128xf32, #tpu.memory_space<vmem>>, vector<1x1x128xf32>
    %293 = vector.shape_cast %292 : vector<1x1x128xf32> to vector<1x128xf32>
    %cst_52 = arith.constant 5.000000e-01 : f32
    %294 = vector.broadcast %cst_52 : f32 to vector<1x128xf32>
    %295 = arith.cmpf ogt, %293, %294 : vector<1x128xf32>
    %296 = vector.shape_cast %295 : vector<1x128xi1> to vector<1x128xi1>
    %297 = vector.broadcast %296 : vector<1x128xi1> to vector<8x128xi1>
    %298 = vector.shape_cast %8 : vector<8x1xf32> to vector<8x1xf32>
    %299 = vector.broadcast %298 : vector<8x1xf32> to vector<8x128xf32>
    %300 = vector.shape_cast %9 : vector<8x1xf32> to vector<8x1xf32>
    %301 = vector.broadcast %300 : vector<8x1xf32> to vector<8x128xf32>
    %302 = arith.select %297, %299, %301 : vector<8x128xi1>, vector<8x128xf32>
    %303 = vector.shape_cast %295 : vector<1x128xi1> to vector<1x128xi1>
    %304 = vector.broadcast %303 : vector<1x128xi1> to vector<8x128xi1>
    %305 = vector.shape_cast %10 : vector<8x1xf32> to vector<8x1xf32>
    %306 = vector.broadcast %305 : vector<8x1xf32> to vector<8x128xf32>
    %307 = vector.shape_cast %11 : vector<8x1xf32> to vector<8x1xf32>
    %308 = vector.broadcast %307 : vector<8x1xf32> to vector<8x128xf32>
    %309 = arith.select %304, %306, %308 : vector<8x128xi1>, vector<8x128xf32>
    %310 = vector.broadcast %293 : vector<1x128xf32> to vector<8x128xf32>
    %311 = vector.broadcast %7 : vector<8x1xf32> to vector<8x128xf32>
    %312 = arith.mulf %310, %311 : vector<8x128xf32>
    %313 = arith.addf %312, %309 : vector<8x128xf32>
    %314 = math.tanh %313 : vector<8x128xf32>
    %315 = arith.mulf %302, %314 : vector<8x128xf32>
    %316 = vector.broadcast %18 : vector<8x1xf32> to vector<8x128xf32>
    %317 = arith.mulf %315, %316 : vector<8x128xf32>
    %318 = vector.broadcast %12 : vector<8x1xf32> to vector<8x128xf32>
    %319 = arith.addf %318, %317 : vector<8x128xf32>
    %320 = arith.addf %291, %319 : vector<8x128xf32>
    %cst_53 = arith.constant dense<0xFF800000> : vector<128xf32>
    %321 = vector.multi_reduction <maximumf>, %320, %cst_53 [0] : vector<8x128xf32> to vector<128xf32>
    %322 = vector.shape_cast %321 : vector<128xf32> to vector<1x128xf32>
    %323 = vector.broadcast %322 : vector<1x128xf32> to vector<8x128xf32>
    %324 = arith.cmpf oeq, %320, %323 : vector<8x128xf32>
    %325 = arith.select %324, %0, %1 : vector<8x128xi1>, vector<8x128xi32>
    %cst_54 = arith.constant dense<2147483647> : vector<128xi32>
    %326 = vector.multi_reduction <minsi>, %325, %cst_54 [0] : vector<8x128xi32> to vector<128xi32>
    %327 = vector.shape_cast %326 : vector<128xi32> to vector<1x128xi32>
    %c0_i32_55 = arith.constant 0 : i32
    %328 = vector.broadcast %c0_i32_55 : i32 to vector<8x128xi32>
    %329 = arith.cmpi eq, %0, %328 : vector<8x128xi32>
    %330 = vector.shape_cast %322 : vector<1x128xf32> to vector<1x128xf32>
    %331 = vector.broadcast %330 : vector<1x128xf32> to vector<8x128xf32>
    %332 = arith.select %329, %331, %2 : vector<8x128xi1>, vector<8x128xf32>
    %c0_i32_56 = arith.constant 0 : i32
    %333 = vector.broadcast %c0_i32_56 : i32 to vector<8x128xi32>
    %334 = arith.cmpi eq, %0, %333 : vector<8x128xi32>
    %335 = vector.shape_cast %327 : vector<1x128xi32> to vector<1x128xi32>
    %336 = vector.broadcast %335 : vector<1x128xi32> to vector<8x128xi32>
    %337 = arith.select %334, %336, %1 : vector<8x128xi1>, vector<8x128xi32>
    %338 = vector.broadcast %19 : vector<8x1xf32> to vector<8x128xf32>
    %339 = arith.mulf %315, %338 : vector<8x128xf32>
    %340 = vector.broadcast %13 : vector<8x1xf32> to vector<8x128xf32>
    %341 = arith.addf %340, %339 : vector<8x128xf32>
    %342 = arith.addf %291, %341 : vector<8x128xf32>
    %cst_57 = arith.constant dense<0xFF800000> : vector<128xf32>
    %343 = vector.multi_reduction <maximumf>, %342, %cst_57 [0] : vector<8x128xf32> to vector<128xf32>
    %344 = vector.shape_cast %343 : vector<128xf32> to vector<1x128xf32>
    %345 = vector.broadcast %344 : vector<1x128xf32> to vector<8x128xf32>
    %346 = arith.cmpf oeq, %342, %345 : vector<8x128xf32>
    %347 = arith.select %346, %0, %1 : vector<8x128xi1>, vector<8x128xi32>
    %cst_58 = arith.constant dense<2147483647> : vector<128xi32>
    %348 = vector.multi_reduction <minsi>, %347, %cst_58 [0] : vector<8x128xi32> to vector<128xi32>
    %349 = vector.shape_cast %348 : vector<128xi32> to vector<1x128xi32>
    %c1_i32_59 = arith.constant 1 : i32
    %350 = vector.broadcast %c1_i32_59 : i32 to vector<8x128xi32>
    %351 = arith.cmpi eq, %0, %350 : vector<8x128xi32>
    %352 = vector.shape_cast %344 : vector<1x128xf32> to vector<1x128xf32>
    %353 = vector.broadcast %352 : vector<1x128xf32> to vector<8x128xf32>
    %354 = arith.select %351, %353, %332 : vector<8x128xi1>, vector<8x128xf32>
    %c1_i32_60 = arith.constant 1 : i32
    %355 = vector.broadcast %c1_i32_60 : i32 to vector<8x128xi32>
    %356 = arith.cmpi eq, %0, %355 : vector<8x128xi32>
    %357 = vector.shape_cast %349 : vector<1x128xi32> to vector<1x128xi32>
    %358 = vector.broadcast %357 : vector<1x128xi32> to vector<8x128xi32>
    %359 = arith.select %356, %358, %337 : vector<8x128xi1>, vector<8x128xi32>
    %360 = vector.broadcast %20 : vector<8x1xf32> to vector<8x128xf32>
    %361 = arith.mulf %315, %360 : vector<8x128xf32>
    %362 = vector.broadcast %14 : vector<8x1xf32> to vector<8x128xf32>
    %363 = arith.addf %362, %361 : vector<8x128xf32>
    %364 = arith.addf %291, %363 : vector<8x128xf32>
    %cst_61 = arith.constant dense<0xFF800000> : vector<128xf32>
    %365 = vector.multi_reduction <maximumf>, %364, %cst_61 [0] : vector<8x128xf32> to vector<128xf32>
    %366 = vector.shape_cast %365 : vector<128xf32> to vector<1x128xf32>
    %367 = vector.broadcast %366 : vector<1x128xf32> to vector<8x128xf32>
    %368 = arith.cmpf oeq, %364, %367 : vector<8x128xf32>
    %369 = arith.select %368, %0, %1 : vector<8x128xi1>, vector<8x128xi32>
    %cst_62 = arith.constant dense<2147483647> : vector<128xi32>
    %370 = vector.multi_reduction <minsi>, %369, %cst_62 [0] : vector<8x128xi32> to vector<128xi32>
    %371 = vector.shape_cast %370 : vector<128xi32> to vector<1x128xi32>
    %c2_i32_63 = arith.constant 2 : i32
    %372 = vector.broadcast %c2_i32_63 : i32 to vector<8x128xi32>
    %373 = arith.cmpi eq, %0, %372 : vector<8x128xi32>
    %374 = vector.shape_cast %366 : vector<1x128xf32> to vector<1x128xf32>
    %375 = vector.broadcast %374 : vector<1x128xf32> to vector<8x128xf32>
    %376 = arith.select %373, %375, %354 : vector<8x128xi1>, vector<8x128xf32>
    %c2_i32_64 = arith.constant 2 : i32
    %377 = vector.broadcast %c2_i32_64 : i32 to vector<8x128xi32>
    %378 = arith.cmpi eq, %0, %377 : vector<8x128xi32>
    %379 = vector.shape_cast %371 : vector<1x128xi32> to vector<1x128xi32>
    %380 = vector.broadcast %379 : vector<1x128xi32> to vector<8x128xi32>
    %381 = arith.select %378, %380, %359 : vector<8x128xi1>, vector<8x128xi32>
    %382 = vector.broadcast %21 : vector<8x1xf32> to vector<8x128xf32>
    %383 = arith.mulf %315, %382 : vector<8x128xf32>
    %384 = vector.broadcast %15 : vector<8x1xf32> to vector<8x128xf32>
    %385 = arith.addf %384, %383 : vector<8x128xf32>
    %386 = arith.addf %291, %385 : vector<8x128xf32>
    %cst_65 = arith.constant dense<0xFF800000> : vector<128xf32>
    %387 = vector.multi_reduction <maximumf>, %386, %cst_65 [0] : vector<8x128xf32> to vector<128xf32>
    %388 = vector.shape_cast %387 : vector<128xf32> to vector<1x128xf32>
    %389 = vector.broadcast %388 : vector<1x128xf32> to vector<8x128xf32>
    %390 = arith.cmpf oeq, %386, %389 : vector<8x128xf32>
    %391 = arith.select %390, %0, %1 : vector<8x128xi1>, vector<8x128xi32>
    %cst_66 = arith.constant dense<2147483647> : vector<128xi32>
    %392 = vector.multi_reduction <minsi>, %391, %cst_66 [0] : vector<8x128xi32> to vector<128xi32>
    %393 = vector.shape_cast %392 : vector<128xi32> to vector<1x128xi32>
    %c3_i32_67 = arith.constant 3 : i32
    %394 = vector.broadcast %c3_i32_67 : i32 to vector<8x128xi32>
    %395 = arith.cmpi eq, %0, %394 : vector<8x128xi32>
    %396 = vector.shape_cast %388 : vector<1x128xf32> to vector<1x128xf32>
    %397 = vector.broadcast %396 : vector<1x128xf32> to vector<8x128xf32>
    %398 = arith.select %395, %397, %376 : vector<8x128xi1>, vector<8x128xf32>
    %c3_i32_68 = arith.constant 3 : i32
    %399 = vector.broadcast %c3_i32_68 : i32 to vector<8x128xi32>
    %400 = arith.cmpi eq, %0, %399 : vector<8x128xi32>
    %401 = vector.shape_cast %393 : vector<1x128xi32> to vector<1x128xi32>
    %402 = vector.broadcast %401 : vector<1x128xi32> to vector<8x128xi32>
    %403 = arith.select %400, %402, %381 : vector<8x128xi1>, vector<8x128xi32>
    %404 = vector.broadcast %22 : vector<8x1xf32> to vector<8x128xf32>
    %405 = arith.mulf %315, %404 : vector<8x128xf32>
    %406 = vector.broadcast %16 : vector<8x1xf32> to vector<8x128xf32>
    %407 = arith.addf %406, %405 : vector<8x128xf32>
    %408 = arith.addf %291, %407 : vector<8x128xf32>
    %cst_69 = arith.constant dense<0xFF800000> : vector<128xf32>
    %409 = vector.multi_reduction <maximumf>, %408, %cst_69 [0] : vector<8x128xf32> to vector<128xf32>
    %410 = vector.shape_cast %409 : vector<128xf32> to vector<1x128xf32>
    %411 = vector.broadcast %410 : vector<1x128xf32> to vector<8x128xf32>
    %412 = arith.cmpf oeq, %408, %411 : vector<8x128xf32>
    %413 = arith.select %412, %0, %1 : vector<8x128xi1>, vector<8x128xi32>
    %cst_70 = arith.constant dense<2147483647> : vector<128xi32>
    %414 = vector.multi_reduction <minsi>, %413, %cst_70 [0] : vector<8x128xi32> to vector<128xi32>
    %415 = vector.shape_cast %414 : vector<128xi32> to vector<1x128xi32>
    %c4_i32_71 = arith.constant 4 : i32
    %416 = vector.broadcast %c4_i32_71 : i32 to vector<8x128xi32>
    %417 = arith.cmpi eq, %0, %416 : vector<8x128xi32>
    %418 = vector.shape_cast %410 : vector<1x128xf32> to vector<1x128xf32>
    %419 = vector.broadcast %418 : vector<1x128xf32> to vector<8x128xf32>
    %420 = arith.select %417, %419, %398 : vector<8x128xi1>, vector<8x128xf32>
    %c4_i32_72 = arith.constant 4 : i32
    %421 = vector.broadcast %c4_i32_72 : i32 to vector<8x128xi32>
    %422 = arith.cmpi eq, %0, %421 : vector<8x128xi32>
    %423 = vector.shape_cast %415 : vector<1x128xi32> to vector<1x128xi32>
    %424 = vector.broadcast %423 : vector<1x128xi32> to vector<8x128xi32>
    %425 = arith.select %422, %424, %403 : vector<8x128xi1>, vector<8x128xi32>
    %426 = vector.broadcast %23 : vector<8x1xf32> to vector<8x128xf32>
    %427 = arith.mulf %315, %426 : vector<8x128xf32>
    %428 = vector.broadcast %17 : vector<8x1xf32> to vector<8x128xf32>
    %429 = arith.addf %428, %427 : vector<8x128xf32>
    %430 = arith.addf %291, %429 : vector<8x128xf32>
    %cst_73 = arith.constant dense<0xFF800000> : vector<128xf32>
    %431 = vector.multi_reduction <maximumf>, %430, %cst_73 [0] : vector<8x128xf32> to vector<128xf32>
    %432 = vector.shape_cast %431 : vector<128xf32> to vector<1x128xf32>
    %433 = vector.broadcast %432 : vector<1x128xf32> to vector<8x128xf32>
    %434 = arith.cmpf oeq, %430, %433 : vector<8x128xf32>
    %435 = arith.select %434, %0, %1 : vector<8x128xi1>, vector<8x128xi32>
    %cst_74 = arith.constant dense<2147483647> : vector<128xi32>
    %436 = vector.multi_reduction <minsi>, %435, %cst_74 [0] : vector<8x128xi32> to vector<128xi32>
    %437 = vector.shape_cast %436 : vector<128xi32> to vector<1x128xi32>
    %c5_i32_75 = arith.constant 5 : i32
    %438 = vector.broadcast %c5_i32_75 : i32 to vector<8x128xi32>
    %439 = arith.cmpi eq, %0, %438 : vector<8x128xi32>
    %440 = vector.shape_cast %432 : vector<1x128xf32> to vector<1x128xf32>
    %441 = vector.broadcast %440 : vector<1x128xf32> to vector<8x128xf32>
    %442 = arith.select %439, %441, %420 : vector<8x128xi1>, vector<8x128xf32>
    %c5_i32_76 = arith.constant 5 : i32
    %443 = vector.broadcast %c5_i32_76 : i32 to vector<8x128xi32>
    %444 = arith.cmpi eq, %0, %443 : vector<8x128xi32>
    %445 = vector.shape_cast %437 : vector<1x128xi32> to vector<1x128xi32>
    %446 = vector.broadcast %445 : vector<1x128xi32> to vector<8x128xi32>
    %447 = arith.select %444, %446, %425 : vector<8x128xi1>, vector<8x128xi32>
    %c0_77 = arith.constant 0 : index
    %c2_78 = arith.constant 2 : index
    %c0_79 = arith.constant 0 : index
    %c0_80 = arith.constant 0 : index
    %448 = vector.load %arg2[%c0_77, %c2_78, %c0_79, %c0_80] : memref<1x8x8x128xf32, #tpu.memory_space<vmem>>, vector<1x1x8x128xf32>
    %449 = vector.shape_cast %448 : vector<1x1x8x128xf32> to vector<8x128xf32>
    %450 = arith.addf %442, %449 : vector<8x128xf32>
    %c0_81 = arith.constant 0 : index
    %c3 = arith.constant 3 : index
    %c0_82 = arith.constant 0 : index
    %451 = vector.load %arg1[%c0_81, %c3, %c0_82] : memref<1x8x128xf32, #tpu.memory_space<vmem>>, vector<1x1x128xf32>
    %452 = vector.shape_cast %451 : vector<1x1x128xf32> to vector<1x128xf32>
    %cst_83 = arith.constant 5.000000e-01 : f32
    %453 = vector.broadcast %cst_83 : f32 to vector<1x128xf32>
    %454 = arith.cmpf ogt, %452, %453 : vector<1x128xf32>
    %455 = vector.shape_cast %454 : vector<1x128xi1> to vector<1x128xi1>
    %456 = vector.broadcast %455 : vector<1x128xi1> to vector<8x128xi1>
    %457 = vector.shape_cast %8 : vector<8x1xf32> to vector<8x1xf32>
    %458 = vector.broadcast %457 : vector<8x1xf32> to vector<8x128xf32>
    %459 = vector.shape_cast %9 : vector<8x1xf32> to vector<8x1xf32>
    %460 = vector.broadcast %459 : vector<8x1xf32> to vector<8x128xf32>
    %461 = arith.select %456, %458, %460 : vector<8x128xi1>, vector<8x128xf32>
    %462 = vector.shape_cast %454 : vector<1x128xi1> to vector<1x128xi1>
    %463 = vector.broadcast %462 : vector<1x128xi1> to vector<8x128xi1>
    %464 = vector.shape_cast %10 : vector<8x1xf32> to vector<8x1xf32>
    %465 = vector.broadcast %464 : vector<8x1xf32> to vector<8x128xf32>
    %466 = vector.shape_cast %11 : vector<8x1xf32> to vector<8x1xf32>
    %467 = vector.broadcast %466 : vector<8x1xf32> to vector<8x128xf32>
    %468 = arith.select %463, %465, %467 : vector<8x128xi1>, vector<8x128xf32>
    %469 = vector.broadcast %452 : vector<1x128xf32> to vector<8x128xf32>
    %470 = vector.broadcast %7 : vector<8x1xf32> to vector<8x128xf32>
    %471 = arith.mulf %469, %470 : vector<8x128xf32>
    %472 = arith.addf %471, %468 : vector<8x128xf32>
    %473 = math.tanh %472 : vector<8x128xf32>
    %474 = arith.mulf %461, %473 : vector<8x128xf32>
    %475 = vector.broadcast %18 : vector<8x1xf32> to vector<8x128xf32>
    %476 = arith.mulf %474, %475 : vector<8x128xf32>
    %477 = vector.broadcast %12 : vector<8x1xf32> to vector<8x128xf32>
    %478 = arith.addf %477, %476 : vector<8x128xf32>
    %479 = arith.addf %450, %478 : vector<8x128xf32>
    %cst_84 = arith.constant dense<0xFF800000> : vector<128xf32>
    %480 = vector.multi_reduction <maximumf>, %479, %cst_84 [0] : vector<8x128xf32> to vector<128xf32>
    %481 = vector.shape_cast %480 : vector<128xf32> to vector<1x128xf32>
    %482 = vector.broadcast %481 : vector<1x128xf32> to vector<8x128xf32>
    %483 = arith.cmpf oeq, %479, %482 : vector<8x128xf32>
    %484 = arith.select %483, %0, %1 : vector<8x128xi1>, vector<8x128xi32>
    %cst_85 = arith.constant dense<2147483647> : vector<128xi32>
    %485 = vector.multi_reduction <minsi>, %484, %cst_85 [0] : vector<8x128xi32> to vector<128xi32>
    %486 = vector.shape_cast %485 : vector<128xi32> to vector<1x128xi32>
    %c0_i32_86 = arith.constant 0 : i32
    %487 = vector.broadcast %c0_i32_86 : i32 to vector<8x128xi32>
    %488 = arith.cmpi eq, %0, %487 : vector<8x128xi32>
    %489 = vector.shape_cast %481 : vector<1x128xf32> to vector<1x128xf32>
    %490 = vector.broadcast %489 : vector<1x128xf32> to vector<8x128xf32>
    %491 = arith.select %488, %490, %2 : vector<8x128xi1>, vector<8x128xf32>
    %c0_i32_87 = arith.constant 0 : i32
    %492 = vector.broadcast %c0_i32_87 : i32 to vector<8x128xi32>
    %493 = arith.cmpi eq, %0, %492 : vector<8x128xi32>
    %494 = vector.shape_cast %486 : vector<1x128xi32> to vector<1x128xi32>
    %495 = vector.broadcast %494 : vector<1x128xi32> to vector<8x128xi32>
    %496 = arith.select %493, %495, %1 : vector<8x128xi1>, vector<8x128xi32>
    %497 = vector.broadcast %19 : vector<8x1xf32> to vector<8x128xf32>
    %498 = arith.mulf %474, %497 : vector<8x128xf32>
    %499 = vector.broadcast %13 : vector<8x1xf32> to vector<8x128xf32>
    %500 = arith.addf %499, %498 : vector<8x128xf32>
    %501 = arith.addf %450, %500 : vector<8x128xf32>
    %cst_88 = arith.constant dense<0xFF800000> : vector<128xf32>
    %502 = vector.multi_reduction <maximumf>, %501, %cst_88 [0] : vector<8x128xf32> to vector<128xf32>
    %503 = vector.shape_cast %502 : vector<128xf32> to vector<1x128xf32>
    %504 = vector.broadcast %503 : vector<1x128xf32> to vector<8x128xf32>
    %505 = arith.cmpf oeq, %501, %504 : vector<8x128xf32>
    %506 = arith.select %505, %0, %1 : vector<8x128xi1>, vector<8x128xi32>
    %cst_89 = arith.constant dense<2147483647> : vector<128xi32>
    %507 = vector.multi_reduction <minsi>, %506, %cst_89 [0] : vector<8x128xi32> to vector<128xi32>
    %508 = vector.shape_cast %507 : vector<128xi32> to vector<1x128xi32>
    %c1_i32_90 = arith.constant 1 : i32
    %509 = vector.broadcast %c1_i32_90 : i32 to vector<8x128xi32>
    %510 = arith.cmpi eq, %0, %509 : vector<8x128xi32>
    %511 = vector.shape_cast %503 : vector<1x128xf32> to vector<1x128xf32>
    %512 = vector.broadcast %511 : vector<1x128xf32> to vector<8x128xf32>
    %513 = arith.select %510, %512, %491 : vector<8x128xi1>, vector<8x128xf32>
    %c1_i32_91 = arith.constant 1 : i32
    %514 = vector.broadcast %c1_i32_91 : i32 to vector<8x128xi32>
    %515 = arith.cmpi eq, %0, %514 : vector<8x128xi32>
    %516 = vector.shape_cast %508 : vector<1x128xi32> to vector<1x128xi32>
    %517 = vector.broadcast %516 : vector<1x128xi32> to vector<8x128xi32>
    %518 = arith.select %515, %517, %496 : vector<8x128xi1>, vector<8x128xi32>
    %519 = vector.broadcast %20 : vector<8x1xf32> to vector<8x128xf32>
    %520 = arith.mulf %474, %519 : vector<8x128xf32>
    %521 = vector.broadcast %14 : vector<8x1xf32> to vector<8x128xf32>
    %522 = arith.addf %521, %520 : vector<8x128xf32>
    %523 = arith.addf %450, %522 : vector<8x128xf32>
    %cst_92 = arith.constant dense<0xFF800000> : vector<128xf32>
    %524 = vector.multi_reduction <maximumf>, %523, %cst_92 [0] : vector<8x128xf32> to vector<128xf32>
    %525 = vector.shape_cast %524 : vector<128xf32> to vector<1x128xf32>
    %526 = vector.broadcast %525 : vector<1x128xf32> to vector<8x128xf32>
    %527 = arith.cmpf oeq, %523, %526 : vector<8x128xf32>
    %528 = arith.select %527, %0, %1 : vector<8x128xi1>, vector<8x128xi32>
    %cst_93 = arith.constant dense<2147483647> : vector<128xi32>
    %529 = vector.multi_reduction <minsi>, %528, %cst_93 [0] : vector<8x128xi32> to vector<128xi32>
    %530 = vector.shape_cast %529 : vector<128xi32> to vector<1x128xi32>
    %c2_i32_94 = arith.constant 2 : i32
    %531 = vector.broadcast %c2_i32_94 : i32 to vector<8x128xi32>
    %532 = arith.cmpi eq, %0, %531 : vector<8x128xi32>
    %533 = vector.shape_cast %525 : vector<1x128xf32> to vector<1x128xf32>
    %534 = vector.broadcast %533 : vector<1x128xf32> to vector<8x128xf32>
    %535 = arith.select %532, %534, %513 : vector<8x128xi1>, vector<8x128xf32>
    %c2_i32_95 = arith.constant 2 : i32
    %536 = vector.broadcast %c2_i32_95 : i32 to vector<8x128xi32>
    %537 = arith.cmpi eq, %0, %536 : vector<8x128xi32>
    %538 = vector.shape_cast %530 : vector<1x128xi32> to vector<1x128xi32>
    %539 = vector.broadcast %538 : vector<1x128xi32> to vector<8x128xi32>
    %540 = arith.select %537, %539, %518 : vector<8x128xi1>, vector<8x128xi32>
    %541 = vector.broadcast %21 : vector<8x1xf32> to vector<8x128xf32>
    %542 = arith.mulf %474, %541 : vector<8x128xf32>
    %543 = vector.broadcast %15 : vector<8x1xf32> to vector<8x128xf32>
    %544 = arith.addf %543, %542 : vector<8x128xf32>
    %545 = arith.addf %450, %544 : vector<8x128xf32>
    %cst_96 = arith.constant dense<0xFF800000> : vector<128xf32>
    %546 = vector.multi_reduction <maximumf>, %545, %cst_96 [0] : vector<8x128xf32> to vector<128xf32>
    %547 = vector.shape_cast %546 : vector<128xf32> to vector<1x128xf32>
    %548 = vector.broadcast %547 : vector<1x128xf32> to vector<8x128xf32>
    %549 = arith.cmpf oeq, %545, %548 : vector<8x128xf32>
    %550 = arith.select %549, %0, %1 : vector<8x128xi1>, vector<8x128xi32>
    %cst_97 = arith.constant dense<2147483647> : vector<128xi32>
    %551 = vector.multi_reduction <minsi>, %550, %cst_97 [0] : vector<8x128xi32> to vector<128xi32>
    %552 = vector.shape_cast %551 : vector<128xi32> to vector<1x128xi32>
    %c3_i32_98 = arith.constant 3 : i32
    %553 = vector.broadcast %c3_i32_98 : i32 to vector<8x128xi32>
    %554 = arith.cmpi eq, %0, %553 : vector<8x128xi32>
    %555 = vector.shape_cast %547 : vector<1x128xf32> to vector<1x128xf32>
    %556 = vector.broadcast %555 : vector<1x128xf32> to vector<8x128xf32>
    %557 = arith.select %554, %556, %535 : vector<8x128xi1>, vector<8x128xf32>
    %c3_i32_99 = arith.constant 3 : i32
    %558 = vector.broadcast %c3_i32_99 : i32 to vector<8x128xi32>
    %559 = arith.cmpi eq, %0, %558 : vector<8x128xi32>
    %560 = vector.shape_cast %552 : vector<1x128xi32> to vector<1x128xi32>
    %561 = vector.broadcast %560 : vector<1x128xi32> to vector<8x128xi32>
    %562 = arith.select %559, %561, %540 : vector<8x128xi1>, vector<8x128xi32>
    %563 = vector.broadcast %22 : vector<8x1xf32> to vector<8x128xf32>
    %564 = arith.mulf %474, %563 : vector<8x128xf32>
    %565 = vector.broadcast %16 : vector<8x1xf32> to vector<8x128xf32>
    %566 = arith.addf %565, %564 : vector<8x128xf32>
    %567 = arith.addf %450, %566 : vector<8x128xf32>
    %cst_100 = arith.constant dense<0xFF800000> : vector<128xf32>
    %568 = vector.multi_reduction <maximumf>, %567, %cst_100 [0] : vector<8x128xf32> to vector<128xf32>
    %569 = vector.shape_cast %568 : vector<128xf32> to vector<1x128xf32>
    %570 = vector.broadcast %569 : vector<1x128xf32> to vector<8x128xf32>
    %571 = arith.cmpf oeq, %567, %570 : vector<8x128xf32>
    %572 = arith.select %571, %0, %1 : vector<8x128xi1>, vector<8x128xi32>
    %cst_101 = arith.constant dense<2147483647> : vector<128xi32>
    %573 = vector.multi_reduction <minsi>, %572, %cst_101 [0] : vector<8x128xi32> to vector<128xi32>
    %574 = vector.shape_cast %573 : vector<128xi32> to vector<1x128xi32>
    %c4_i32_102 = arith.constant 4 : i32
    %575 = vector.broadcast %c4_i32_102 : i32 to vector<8x128xi32>
    %576 = arith.cmpi eq, %0, %575 : vector<8x128xi32>
    %577 = vector.shape_cast %569 : vector<1x128xf32> to vector<1x128xf32>
    %578 = vector.broadcast %577 : vector<1x128xf32> to vector<8x128xf32>
    %579 = arith.select %576, %578, %557 : vector<8x128xi1>, vector<8x128xf32>
    %c4_i32_103 = arith.constant 4 : i32
    %580 = vector.broadcast %c4_i32_103 : i32 to vector<8x128xi32>
    %581 = arith.cmpi eq, %0, %580 : vector<8x128xi32>
    %582 = vector.shape_cast %574 : vector<1x128xi32> to vector<1x128xi32>
    %583 = vector.broadcast %582 : vector<1x128xi32> to vector<8x128xi32>
    %584 = arith.select %581, %583, %562 : vector<8x128xi1>, vector<8x128xi32>
    %585 = vector.broadcast %23 : vector<8x1xf32> to vector<8x128xf32>
    %586 = arith.mulf %474, %585 : vector<8x128xf32>
    %587 = vector.broadcast %17 : vector<8x1xf32> to vector<8x128xf32>
    %588 = arith.addf %587, %586 : vector<8x128xf32>
    %589 = arith.addf %450, %588 : vector<8x128xf32>
    %cst_104 = arith.constant dense<0xFF800000> : vector<128xf32>
    %590 = vector.multi_reduction <maximumf>, %589, %cst_104 [0] : vector<8x128xf32> to vector<128xf32>
    %591 = vector.shape_cast %590 : vector<128xf32> to vector<1x128xf32>
    %592 = vector.broadcast %591 : vector<1x128xf32> to vector<8x128xf32>
    %593 = arith.cmpf oeq, %589, %592 : vector<8x128xf32>
    %594 = arith.select %593, %0, %1 : vector<8x128xi1>, vector<8x128xi32>
    %cst_105 = arith.constant dense<2147483647> : vector<128xi32>
    %595 = vector.multi_reduction <minsi>, %594, %cst_105 [0] : vector<8x128xi32> to vector<128xi32>
    %596 = vector.shape_cast %595 : vector<128xi32> to vector<1x128xi32>
    %c5_i32_106 = arith.constant 5 : i32
    %597 = vector.broadcast %c5_i32_106 : i32 to vector<8x128xi32>
    %598 = arith.cmpi eq, %0, %597 : vector<8x128xi32>
    %599 = vector.shape_cast %591 : vector<1x128xf32> to vector<1x128xf32>
    %600 = vector.broadcast %599 : vector<1x128xf32> to vector<8x128xf32>
    %601 = arith.select %598, %600, %579 : vector<8x128xi1>, vector<8x128xf32>
    %c5_i32_107 = arith.constant 5 : i32
    %602 = vector.broadcast %c5_i32_107 : i32 to vector<8x128xi32>
    %603 = arith.cmpi eq, %0, %602 : vector<8x128xi32>
    %604 = vector.shape_cast %596 : vector<1x128xi32> to vector<1x128xi32>
    %605 = vector.broadcast %604 : vector<1x128xi32> to vector<8x128xi32>
    %606 = arith.select %603, %605, %584 : vector<8x128xi1>, vector<8x128xi32>
    %c0_108 = arith.constant 0 : index
    %c3_109 = arith.constant 3 : index
    %c0_110 = arith.constant 0 : index
    %c0_111 = arith.constant 0 : index
    %607 = vector.load %arg2[%c0_108, %c3_109, %c0_110, %c0_111] : memref<1x8x8x128xf32, #tpu.memory_space<vmem>>, vector<1x1x8x128xf32>
    %608 = vector.shape_cast %607 : vector<1x1x8x128xf32> to vector<8x128xf32>
    %609 = arith.addf %601, %608 : vector<8x128xf32>
    %c0_112 = arith.constant 0 : index
    %c4 = arith.constant 4 : index
    %c0_113 = arith.constant 0 : index
    %610 = vector.load %arg1[%c0_112, %c4, %c0_113] : memref<1x8x128xf32, #tpu.memory_space<vmem>>, vector<1x1x128xf32>
    %611 = vector.shape_cast %610 : vector<1x1x128xf32> to vector<1x128xf32>
    %cst_114 = arith.constant 5.000000e-01 : f32
    %612 = vector.broadcast %cst_114 : f32 to vector<1x128xf32>
    %613 = arith.cmpf ogt, %611, %612 : vector<1x128xf32>
    %614 = vector.shape_cast %613 : vector<1x128xi1> to vector<1x128xi1>
    %615 = vector.broadcast %614 : vector<1x128xi1> to vector<8x128xi1>
    %616 = vector.shape_cast %8 : vector<8x1xf32> to vector<8x1xf32>
    %617 = vector.broadcast %616 : vector<8x1xf32> to vector<8x128xf32>
    %618 = vector.shape_cast %9 : vector<8x1xf32> to vector<8x1xf32>
    %619 = vector.broadcast %618 : vector<8x1xf32> to vector<8x128xf32>
    %620 = arith.select %615, %617, %619 : vector<8x128xi1>, vector<8x128xf32>
    %621 = vector.shape_cast %613 : vector<1x128xi1> to vector<1x128xi1>
    %622 = vector.broadcast %621 : vector<1x128xi1> to vector<8x128xi1>
    %623 = vector.shape_cast %10 : vector<8x1xf32> to vector<8x1xf32>
    %624 = vector.broadcast %623 : vector<8x1xf32> to vector<8x128xf32>
    %625 = vector.shape_cast %11 : vector<8x1xf32> to vector<8x1xf32>
    %626 = vector.broadcast %625 : vector<8x1xf32> to vector<8x128xf32>
    %627 = arith.select %622, %624, %626 : vector<8x128xi1>, vector<8x128xf32>
    %628 = vector.broadcast %611 : vector<1x128xf32> to vector<8x128xf32>
    %629 = vector.broadcast %7 : vector<8x1xf32> to vector<8x128xf32>
    %630 = arith.mulf %628, %629 : vector<8x128xf32>
    %631 = arith.addf %630, %627 : vector<8x128xf32>
    %632 = math.tanh %631 : vector<8x128xf32>
    %633 = arith.mulf %620, %632 : vector<8x128xf32>
    %634 = vector.broadcast %18 : vector<8x1xf32> to vector<8x128xf32>
    %635 = arith.mulf %633, %634 : vector<8x128xf32>
    %636 = vector.broadcast %12 : vector<8x1xf32> to vector<8x128xf32>
    %637 = arith.addf %636, %635 : vector<8x128xf32>
    %638 = arith.addf %609, %637 : vector<8x128xf32>
    %cst_115 = arith.constant dense<0xFF800000> : vector<128xf32>
    %639 = vector.multi_reduction <maximumf>, %638, %cst_115 [0] : vector<8x128xf32> to vector<128xf32>
    %640 = vector.shape_cast %639 : vector<128xf32> to vector<1x128xf32>
    %641 = vector.broadcast %640 : vector<1x128xf32> to vector<8x128xf32>
    %642 = arith.cmpf oeq, %638, %641 : vector<8x128xf32>
    %643 = arith.select %642, %0, %1 : vector<8x128xi1>, vector<8x128xi32>
    %cst_116 = arith.constant dense<2147483647> : vector<128xi32>
    %644 = vector.multi_reduction <minsi>, %643, %cst_116 [0] : vector<8x128xi32> to vector<128xi32>
    %645 = vector.shape_cast %644 : vector<128xi32> to vector<1x128xi32>
    %c0_i32_117 = arith.constant 0 : i32
    %646 = vector.broadcast %c0_i32_117 : i32 to vector<8x128xi32>
    %647 = arith.cmpi eq, %0, %646 : vector<8x128xi32>
    %648 = vector.shape_cast %640 : vector<1x128xf32> to vector<1x128xf32>
    %649 = vector.broadcast %648 : vector<1x128xf32> to vector<8x128xf32>
    %650 = arith.select %647, %649, %2 : vector<8x128xi1>, vector<8x128xf32>
    %c0_i32_118 = arith.constant 0 : i32
    %651 = vector.broadcast %c0_i32_118 : i32 to vector<8x128xi32>
    %652 = arith.cmpi eq, %0, %651 : vector<8x128xi32>
    %653 = vector.shape_cast %645 : vector<1x128xi32> to vector<1x128xi32>
    %654 = vector.broadcast %653 : vector<1x128xi32> to vector<8x128xi32>
    %655 = arith.select %652, %654, %1 : vector<8x128xi1>, vector<8x128xi32>
    %656 = vector.broadcast %19 : vector<8x1xf32> to vector<8x128xf32>
    %657 = arith.mulf %633, %656 : vector<8x128xf32>
    %658 = vector.broadcast %13 : vector<8x1xf32> to vector<8x128xf32>
    %659 = arith.addf %658, %657 : vector<8x128xf32>
    %660 = arith.addf %609, %659 : vector<8x128xf32>
    %cst_119 = arith.constant dense<0xFF800000> : vector<128xf32>
    %661 = vector.multi_reduction <maximumf>, %660, %cst_119 [0] : vector<8x128xf32> to vector<128xf32>
    %662 = vector.shape_cast %661 : vector<128xf32> to vector<1x128xf32>
    %663 = vector.broadcast %662 : vector<1x128xf32> to vector<8x128xf32>
    %664 = arith.cmpf oeq, %660, %663 : vector<8x128xf32>
    %665 = arith.select %664, %0, %1 : vector<8x128xi1>, vector<8x128xi32>
    %cst_120 = arith.constant dense<2147483647> : vector<128xi32>
    %666 = vector.multi_reduction <minsi>, %665, %cst_120 [0] : vector<8x128xi32> to vector<128xi32>
    %667 = vector.shape_cast %666 : vector<128xi32> to vector<1x128xi32>
    %c1_i32_121 = arith.constant 1 : i32
    %668 = vector.broadcast %c1_i32_121 : i32 to vector<8x128xi32>
    %669 = arith.cmpi eq, %0, %668 : vector<8x128xi32>
    %670 = vector.shape_cast %662 : vector<1x128xf32> to vector<1x128xf32>
    %671 = vector.broadcast %670 : vector<1x128xf32> to vector<8x128xf32>
    %672 = arith.select %669, %671, %650 : vector<8x128xi1>, vector<8x128xf32>
    %c1_i32_122 = arith.constant 1 : i32
    %673 = vector.broadcast %c1_i32_122 : i32 to vector<8x128xi32>
    %674 = arith.cmpi eq, %0, %673 : vector<8x128xi32>
    %675 = vector.shape_cast %667 : vector<1x128xi32> to vector<1x128xi32>
    %676 = vector.broadcast %675 : vector<1x128xi32> to vector<8x128xi32>
    %677 = arith.select %674, %676, %655 : vector<8x128xi1>, vector<8x128xi32>
    %678 = vector.broadcast %20 : vector<8x1xf32> to vector<8x128xf32>
    %679 = arith.mulf %633, %678 : vector<8x128xf32>
    %680 = vector.broadcast %14 : vector<8x1xf32> to vector<8x128xf32>
    %681 = arith.addf %680, %679 : vector<8x128xf32>
    %682 = arith.addf %609, %681 : vector<8x128xf32>
    %cst_123 = arith.constant dense<0xFF800000> : vector<128xf32>
    %683 = vector.multi_reduction <maximumf>, %682, %cst_123 [0] : vector<8x128xf32> to vector<128xf32>
    %684 = vector.shape_cast %683 : vector<128xf32> to vector<1x128xf32>
    %685 = vector.broadcast %684 : vector<1x128xf32> to vector<8x128xf32>
    %686 = arith.cmpf oeq, %682, %685 : vector<8x128xf32>
    %687 = arith.select %686, %0, %1 : vector<8x128xi1>, vector<8x128xi32>
    %cst_124 = arith.constant dense<2147483647> : vector<128xi32>
    %688 = vector.multi_reduction <minsi>, %687, %cst_124 [0] : vector<8x128xi32> to vector<128xi32>
    %689 = vector.shape_cast %688 : vector<128xi32> to vector<1x128xi32>
    %c2_i32_125 = arith.constant 2 : i32
    %690 = vector.broadcast %c2_i32_125 : i32 to vector<8x128xi32>
    %691 = arith.cmpi eq, %0, %690 : vector<8x128xi32>
    %692 = vector.shape_cast %684 : vector<1x128xf32> to vector<1x128xf32>
    %693 = vector.broadcast %692 : vector<1x128xf32> to vector<8x128xf32>
    %694 = arith.select %691, %693, %672 : vector<8x128xi1>, vector<8x128xf32>
    %c2_i32_126 = arith.constant 2 : i32
    %695 = vector.broadcast %c2_i32_126 : i32 to vector<8x128xi32>
    %696 = arith.cmpi eq, %0, %695 : vector<8x128xi32>
    %697 = vector.shape_cast %689 : vector<1x128xi32> to vector<1x128xi32>
    %698 = vector.broadcast %697 : vector<1x128xi32> to vector<8x128xi32>
    %699 = arith.select %696, %698, %677 : vector<8x128xi1>, vector<8x128xi32>
    %700 = vector.broadcast %21 : vector<8x1xf32> to vector<8x128xf32>
    %701 = arith.mulf %633, %700 : vector<8x128xf32>
    %702 = vector.broadcast %15 : vector<8x1xf32> to vector<8x128xf32>
    %703 = arith.addf %702, %701 : vector<8x128xf32>
    %704 = arith.addf %609, %703 : vector<8x128xf32>
    %cst_127 = arith.constant dense<0xFF800000> : vector<128xf32>
    %705 = vector.multi_reduction <maximumf>, %704, %cst_127 [0] : vector<8x128xf32> to vector<128xf32>
    %706 = vector.shape_cast %705 : vector<128xf32> to vector<1x128xf32>
    %707 = vector.broadcast %706 : vector<1x128xf32> to vector<8x128xf32>
    %708 = arith.cmpf oeq, %704, %707 : vector<8x128xf32>
    %709 = arith.select %708, %0, %1 : vector<8x128xi1>, vector<8x128xi32>
    %cst_128 = arith.constant dense<2147483647> : vector<128xi32>
    %710 = vector.multi_reduction <minsi>, %709, %cst_128 [0] : vector<8x128xi32> to vector<128xi32>
    %711 = vector.shape_cast %710 : vector<128xi32> to vector<1x128xi32>
    %c3_i32_129 = arith.constant 3 : i32
    %712 = vector.broadcast %c3_i32_129 : i32 to vector<8x128xi32>
    %713 = arith.cmpi eq, %0, %712 : vector<8x128xi32>
    %714 = vector.shape_cast %706 : vector<1x128xf32> to vector<1x128xf32>
    %715 = vector.broadcast %714 : vector<1x128xf32> to vector<8x128xf32>
    %716 = arith.select %713, %715, %694 : vector<8x128xi1>, vector<8x128xf32>
    %c3_i32_130 = arith.constant 3 : i32
    %717 = vector.broadcast %c3_i32_130 : i32 to vector<8x128xi32>
    %718 = arith.cmpi eq, %0, %717 : vector<8x128xi32>
    %719 = vector.shape_cast %711 : vector<1x128xi32> to vector<1x128xi32>
    %720 = vector.broadcast %719 : vector<1x128xi32> to vector<8x128xi32>
    %721 = arith.select %718, %720, %699 : vector<8x128xi1>, vector<8x128xi32>
    %722 = vector.broadcast %22 : vector<8x1xf32> to vector<8x128xf32>
    %723 = arith.mulf %633, %722 : vector<8x128xf32>
    %724 = vector.broadcast %16 : vector<8x1xf32> to vector<8x128xf32>
    %725 = arith.addf %724, %723 : vector<8x128xf32>
    %726 = arith.addf %609, %725 : vector<8x128xf32>
    %cst_131 = arith.constant dense<0xFF800000> : vector<128xf32>
    %727 = vector.multi_reduction <maximumf>, %726, %cst_131 [0] : vector<8x128xf32> to vector<128xf32>
    %728 = vector.shape_cast %727 : vector<128xf32> to vector<1x128xf32>
    %729 = vector.broadcast %728 : vector<1x128xf32> to vector<8x128xf32>
    %730 = arith.cmpf oeq, %726, %729 : vector<8x128xf32>
    %731 = arith.select %730, %0, %1 : vector<8x128xi1>, vector<8x128xi32>
    %cst_132 = arith.constant dense<2147483647> : vector<128xi32>
    %732 = vector.multi_reduction <minsi>, %731, %cst_132 [0] : vector<8x128xi32> to vector<128xi32>
    %733 = vector.shape_cast %732 : vector<128xi32> to vector<1x128xi32>
    %c4_i32_133 = arith.constant 4 : i32
    %734 = vector.broadcast %c4_i32_133 : i32 to vector<8x128xi32>
    %735 = arith.cmpi eq, %0, %734 : vector<8x128xi32>
    %736 = vector.shape_cast %728 : vector<1x128xf32> to vector<1x128xf32>
    %737 = vector.broadcast %736 : vector<1x128xf32> to vector<8x128xf32>
    %738 = arith.select %735, %737, %716 : vector<8x128xi1>, vector<8x128xf32>
    %c4_i32_134 = arith.constant 4 : i32
    %739 = vector.broadcast %c4_i32_134 : i32 to vector<8x128xi32>
    %740 = arith.cmpi eq, %0, %739 : vector<8x128xi32>
    %741 = vector.shape_cast %733 : vector<1x128xi32> to vector<1x128xi32>
    %742 = vector.broadcast %741 : vector<1x128xi32> to vector<8x128xi32>
    %743 = arith.select %740, %742, %721 : vector<8x128xi1>, vector<8x128xi32>
    %744 = vector.broadcast %23 : vector<8x1xf32> to vector<8x128xf32>
    %745 = arith.mulf %633, %744 : vector<8x128xf32>
    %746 = vector.broadcast %17 : vector<8x1xf32> to vector<8x128xf32>
    %747 = arith.addf %746, %745 : vector<8x128xf32>
    %748 = arith.addf %609, %747 : vector<8x128xf32>
    %cst_135 = arith.constant dense<0xFF800000> : vector<128xf32>
    %749 = vector.multi_reduction <maximumf>, %748, %cst_135 [0] : vector<8x128xf32> to vector<128xf32>
    %750 = vector.shape_cast %749 : vector<128xf32> to vector<1x128xf32>
    %751 = vector.broadcast %750 : vector<1x128xf32> to vector<8x128xf32>
    %752 = arith.cmpf oeq, %748, %751 : vector<8x128xf32>
    %753 = arith.select %752, %0, %1 : vector<8x128xi1>, vector<8x128xi32>
    %cst_136 = arith.constant dense<2147483647> : vector<128xi32>
    %754 = vector.multi_reduction <minsi>, %753, %cst_136 [0] : vector<8x128xi32> to vector<128xi32>
    %755 = vector.shape_cast %754 : vector<128xi32> to vector<1x128xi32>
    %c5_i32_137 = arith.constant 5 : i32
    %756 = vector.broadcast %c5_i32_137 : i32 to vector<8x128xi32>
    %757 = arith.cmpi eq, %0, %756 : vector<8x128xi32>
    %758 = vector.shape_cast %750 : vector<1x128xf32> to vector<1x128xf32>
    %759 = vector.broadcast %758 : vector<1x128xf32> to vector<8x128xf32>
    %760 = arith.select %757, %759, %738 : vector<8x128xi1>, vector<8x128xf32>
    %c5_i32_138 = arith.constant 5 : i32
    %761 = vector.broadcast %c5_i32_138 : i32 to vector<8x128xi32>
    %762 = arith.cmpi eq, %0, %761 : vector<8x128xi32>
    %763 = vector.shape_cast %755 : vector<1x128xi32> to vector<1x128xi32>
    %764 = vector.broadcast %763 : vector<1x128xi32> to vector<8x128xi32>
    %765 = arith.select %762, %764, %743 : vector<8x128xi1>, vector<8x128xi32>
    %c0_139 = arith.constant 0 : index
    %c4_140 = arith.constant 4 : index
    %c0_141 = arith.constant 0 : index
    %c0_142 = arith.constant 0 : index
    %766 = vector.load %arg2[%c0_139, %c4_140, %c0_141, %c0_142] : memref<1x8x8x128xf32, #tpu.memory_space<vmem>>, vector<1x1x8x128xf32>
    %767 = vector.shape_cast %766 : vector<1x1x8x128xf32> to vector<8x128xf32>
    %768 = arith.addf %760, %767 : vector<8x128xf32>
    %c0_143 = arith.constant 0 : index
    %c5 = arith.constant 5 : index
    %c0_144 = arith.constant 0 : index
    %769 = vector.load %arg1[%c0_143, %c5, %c0_144] : memref<1x8x128xf32, #tpu.memory_space<vmem>>, vector<1x1x128xf32>
    %770 = vector.shape_cast %769 : vector<1x1x128xf32> to vector<1x128xf32>
    %cst_145 = arith.constant 5.000000e-01 : f32
    %771 = vector.broadcast %cst_145 : f32 to vector<1x128xf32>
    %772 = arith.cmpf ogt, %770, %771 : vector<1x128xf32>
    %773 = vector.shape_cast %772 : vector<1x128xi1> to vector<1x128xi1>
    %774 = vector.broadcast %773 : vector<1x128xi1> to vector<8x128xi1>
    %775 = vector.shape_cast %8 : vector<8x1xf32> to vector<8x1xf32>
    %776 = vector.broadcast %775 : vector<8x1xf32> to vector<8x128xf32>
    %777 = vector.shape_cast %9 : vector<8x1xf32> to vector<8x1xf32>
    %778 = vector.broadcast %777 : vector<8x1xf32> to vector<8x128xf32>
    %779 = arith.select %774, %776, %778 : vector<8x128xi1>, vector<8x128xf32>
    %780 = vector.shape_cast %772 : vector<1x128xi1> to vector<1x128xi1>
    %781 = vector.broadcast %780 : vector<1x128xi1> to vector<8x128xi1>
    %782 = vector.shape_cast %10 : vector<8x1xf32> to vector<8x1xf32>
    %783 = vector.broadcast %782 : vector<8x1xf32> to vector<8x128xf32>
    %784 = vector.shape_cast %11 : vector<8x1xf32> to vector<8x1xf32>
    %785 = vector.broadcast %784 : vector<8x1xf32> to vector<8x128xf32>
    %786 = arith.select %781, %783, %785 : vector<8x128xi1>, vector<8x128xf32>
    %787 = vector.broadcast %770 : vector<1x128xf32> to vector<8x128xf32>
    %788 = vector.broadcast %7 : vector<8x1xf32> to vector<8x128xf32>
    %789 = arith.mulf %787, %788 : vector<8x128xf32>
    %790 = arith.addf %789, %786 : vector<8x128xf32>
    %791 = math.tanh %790 : vector<8x128xf32>
    %792 = arith.mulf %779, %791 : vector<8x128xf32>
    %793 = vector.broadcast %18 : vector<8x1xf32> to vector<8x128xf32>
    %794 = arith.mulf %792, %793 : vector<8x128xf32>
    %795 = vector.broadcast %12 : vector<8x1xf32> to vector<8x128xf32>
    %796 = arith.addf %795, %794 : vector<8x128xf32>
    %797 = arith.addf %768, %796 : vector<8x128xf32>
    %cst_146 = arith.constant dense<0xFF800000> : vector<128xf32>
    %798 = vector.multi_reduction <maximumf>, %797, %cst_146 [0] : vector<8x128xf32> to vector<128xf32>
    %799 = vector.shape_cast %798 : vector<128xf32> to vector<1x128xf32>
    %800 = vector.broadcast %799 : vector<1x128xf32> to vector<8x128xf32>
    %801 = arith.cmpf oeq, %797, %800 : vector<8x128xf32>
    %802 = arith.select %801, %0, %1 : vector<8x128xi1>, vector<8x128xi32>
    %cst_147 = arith.constant dense<2147483647> : vector<128xi32>
    %803 = vector.multi_reduction <minsi>, %802, %cst_147 [0] : vector<8x128xi32> to vector<128xi32>
    %804 = vector.shape_cast %803 : vector<128xi32> to vector<1x128xi32>
    %c0_i32_148 = arith.constant 0 : i32
    %805 = vector.broadcast %c0_i32_148 : i32 to vector<8x128xi32>
    %806 = arith.cmpi eq, %0, %805 : vector<8x128xi32>
    %807 = vector.shape_cast %799 : vector<1x128xf32> to vector<1x128xf32>
    %808 = vector.broadcast %807 : vector<1x128xf32> to vector<8x128xf32>
    %809 = arith.select %806, %808, %2 : vector<8x128xi1>, vector<8x128xf32>
    %c0_i32_149 = arith.constant 0 : i32
    %810 = vector.broadcast %c0_i32_149 : i32 to vector<8x128xi32>
    %811 = arith.cmpi eq, %0, %810 : vector<8x128xi32>
    %812 = vector.shape_cast %804 : vector<1x128xi32> to vector<1x128xi32>
    %813 = vector.broadcast %812 : vector<1x128xi32> to vector<8x128xi32>
    %814 = arith.select %811, %813, %1 : vector<8x128xi1>, vector<8x128xi32>
    %815 = vector.broadcast %19 : vector<8x1xf32> to vector<8x128xf32>
    %816 = arith.mulf %792, %815 : vector<8x128xf32>
    %817 = vector.broadcast %13 : vector<8x1xf32> to vector<8x128xf32>
    %818 = arith.addf %817, %816 : vector<8x128xf32>
    %819 = arith.addf %768, %818 : vector<8x128xf32>
    %cst_150 = arith.constant dense<0xFF800000> : vector<128xf32>
    %820 = vector.multi_reduction <maximumf>, %819, %cst_150 [0] : vector<8x128xf32> to vector<128xf32>
    %821 = vector.shape_cast %820 : vector<128xf32> to vector<1x128xf32>
    %822 = vector.broadcast %821 : vector<1x128xf32> to vector<8x128xf32>
    %823 = arith.cmpf oeq, %819, %822 : vector<8x128xf32>
    %824 = arith.select %823, %0, %1 : vector<8x128xi1>, vector<8x128xi32>
    %cst_151 = arith.constant dense<2147483647> : vector<128xi32>
    %825 = vector.multi_reduction <minsi>, %824, %cst_151 [0] : vector<8x128xi32> to vector<128xi32>
    %826 = vector.shape_cast %825 : vector<128xi32> to vector<1x128xi32>
    %c1_i32_152 = arith.constant 1 : i32
    %827 = vector.broadcast %c1_i32_152 : i32 to vector<8x128xi32>
    %828 = arith.cmpi eq, %0, %827 : vector<8x128xi32>
    %829 = vector.shape_cast %821 : vector<1x128xf32> to vector<1x128xf32>
    %830 = vector.broadcast %829 : vector<1x128xf32> to vector<8x128xf32>
    %831 = arith.select %828, %830, %809 : vector<8x128xi1>, vector<8x128xf32>
    %c1_i32_153 = arith.constant 1 : i32
    %832 = vector.broadcast %c1_i32_153 : i32 to vector<8x128xi32>
    %833 = arith.cmpi eq, %0, %832 : vector<8x128xi32>
    %834 = vector.shape_cast %826 : vector<1x128xi32> to vector<1x128xi32>
    %835 = vector.broadcast %834 : vector<1x128xi32> to vector<8x128xi32>
    %836 = arith.select %833, %835, %814 : vector<8x128xi1>, vector<8x128xi32>
    %837 = vector.broadcast %20 : vector<8x1xf32> to vector<8x128xf32>
    %838 = arith.mulf %792, %837 : vector<8x128xf32>
    %839 = vector.broadcast %14 : vector<8x1xf32> to vector<8x128xf32>
    %840 = arith.addf %839, %838 : vector<8x128xf32>
    %841 = arith.addf %768, %840 : vector<8x128xf32>
    %cst_154 = arith.constant dense<0xFF800000> : vector<128xf32>
    %842 = vector.multi_reduction <maximumf>, %841, %cst_154 [0] : vector<8x128xf32> to vector<128xf32>
    %843 = vector.shape_cast %842 : vector<128xf32> to vector<1x128xf32>
    %844 = vector.broadcast %843 : vector<1x128xf32> to vector<8x128xf32>
    %845 = arith.cmpf oeq, %841, %844 : vector<8x128xf32>
    %846 = arith.select %845, %0, %1 : vector<8x128xi1>, vector<8x128xi32>
    %cst_155 = arith.constant dense<2147483647> : vector<128xi32>
    %847 = vector.multi_reduction <minsi>, %846, %cst_155 [0] : vector<8x128xi32> to vector<128xi32>
    %848 = vector.shape_cast %847 : vector<128xi32> to vector<1x128xi32>
    %c2_i32_156 = arith.constant 2 : i32
    %849 = vector.broadcast %c2_i32_156 : i32 to vector<8x128xi32>
    %850 = arith.cmpi eq, %0, %849 : vector<8x128xi32>
    %851 = vector.shape_cast %843 : vector<1x128xf32> to vector<1x128xf32>
    %852 = vector.broadcast %851 : vector<1x128xf32> to vector<8x128xf32>
    %853 = arith.select %850, %852, %831 : vector<8x128xi1>, vector<8x128xf32>
    %c2_i32_157 = arith.constant 2 : i32
    %854 = vector.broadcast %c2_i32_157 : i32 to vector<8x128xi32>
    %855 = arith.cmpi eq, %0, %854 : vector<8x128xi32>
    %856 = vector.shape_cast %848 : vector<1x128xi32> to vector<1x128xi32>
    %857 = vector.broadcast %856 : vector<1x128xi32> to vector<8x128xi32>
    %858 = arith.select %855, %857, %836 : vector<8x128xi1>, vector<8x128xi32>
    %859 = vector.broadcast %21 : vector<8x1xf32> to vector<8x128xf32>
    %860 = arith.mulf %792, %859 : vector<8x128xf32>
    %861 = vector.broadcast %15 : vector<8x1xf32> to vector<8x128xf32>
    %862 = arith.addf %861, %860 : vector<8x128xf32>
    %863 = arith.addf %768, %862 : vector<8x128xf32>
    %cst_158 = arith.constant dense<0xFF800000> : vector<128xf32>
    %864 = vector.multi_reduction <maximumf>, %863, %cst_158 [0] : vector<8x128xf32> to vector<128xf32>
    %865 = vector.shape_cast %864 : vector<128xf32> to vector<1x128xf32>
    %866 = vector.broadcast %865 : vector<1x128xf32> to vector<8x128xf32>
    %867 = arith.cmpf oeq, %863, %866 : vector<8x128xf32>
    %868 = arith.select %867, %0, %1 : vector<8x128xi1>, vector<8x128xi32>
    %cst_159 = arith.constant dense<2147483647> : vector<128xi32>
    %869 = vector.multi_reduction <minsi>, %868, %cst_159 [0] : vector<8x128xi32> to vector<128xi32>
    %870 = vector.shape_cast %869 : vector<128xi32> to vector<1x128xi32>
    %c3_i32_160 = arith.constant 3 : i32
    %871 = vector.broadcast %c3_i32_160 : i32 to vector<8x128xi32>
    %872 = arith.cmpi eq, %0, %871 : vector<8x128xi32>
    %873 = vector.shape_cast %865 : vector<1x128xf32> to vector<1x128xf32>
    %874 = vector.broadcast %873 : vector<1x128xf32> to vector<8x128xf32>
    %875 = arith.select %872, %874, %853 : vector<8x128xi1>, vector<8x128xf32>
    %c3_i32_161 = arith.constant 3 : i32
    %876 = vector.broadcast %c3_i32_161 : i32 to vector<8x128xi32>
    %877 = arith.cmpi eq, %0, %876 : vector<8x128xi32>
    %878 = vector.shape_cast %870 : vector<1x128xi32> to vector<1x128xi32>
    %879 = vector.broadcast %878 : vector<1x128xi32> to vector<8x128xi32>
    %880 = arith.select %877, %879, %858 : vector<8x128xi1>, vector<8x128xi32>
    %881 = vector.broadcast %22 : vector<8x1xf32> to vector<8x128xf32>
    %882 = arith.mulf %792, %881 : vector<8x128xf32>
    %883 = vector.broadcast %16 : vector<8x1xf32> to vector<8x128xf32>
    %884 = arith.addf %883, %882 : vector<8x128xf32>
    %885 = arith.addf %768, %884 : vector<8x128xf32>
    %cst_162 = arith.constant dense<0xFF800000> : vector<128xf32>
    %886 = vector.multi_reduction <maximumf>, %885, %cst_162 [0] : vector<8x128xf32> to vector<128xf32>
    %887 = vector.shape_cast %886 : vector<128xf32> to vector<1x128xf32>
    %888 = vector.broadcast %887 : vector<1x128xf32> to vector<8x128xf32>
    %889 = arith.cmpf oeq, %885, %888 : vector<8x128xf32>
    %890 = arith.select %889, %0, %1 : vector<8x128xi1>, vector<8x128xi32>
    %cst_163 = arith.constant dense<2147483647> : vector<128xi32>
    %891 = vector.multi_reduction <minsi>, %890, %cst_163 [0] : vector<8x128xi32> to vector<128xi32>
    %892 = vector.shape_cast %891 : vector<128xi32> to vector<1x128xi32>
    %c4_i32_164 = arith.constant 4 : i32
    %893 = vector.broadcast %c4_i32_164 : i32 to vector<8x128xi32>
    %894 = arith.cmpi eq, %0, %893 : vector<8x128xi32>
    %895 = vector.shape_cast %887 : vector<1x128xf32> to vector<1x128xf32>
    %896 = vector.broadcast %895 : vector<1x128xf32> to vector<8x128xf32>
    %897 = arith.select %894, %896, %875 : vector<8x128xi1>, vector<8x128xf32>
    %c4_i32_165 = arith.constant 4 : i32
    %898 = vector.broadcast %c4_i32_165 : i32 to vector<8x128xi32>
    %899 = arith.cmpi eq, %0, %898 : vector<8x128xi32>
    %900 = vector.shape_cast %892 : vector<1x128xi32> to vector<1x128xi32>
    %901 = vector.broadcast %900 : vector<1x128xi32> to vector<8x128xi32>
    %902 = arith.select %899, %901, %880 : vector<8x128xi1>, vector<8x128xi32>
    %903 = vector.broadcast %23 : vector<8x1xf32> to vector<8x128xf32>
    %904 = arith.mulf %792, %903 : vector<8x128xf32>
    %905 = vector.broadcast %17 : vector<8x1xf32> to vector<8x128xf32>
    %906 = arith.addf %905, %904 : vector<8x128xf32>
    %907 = arith.addf %768, %906 : vector<8x128xf32>
    %cst_166 = arith.constant dense<0xFF800000> : vector<128xf32>
    %908 = vector.multi_reduction <maximumf>, %907, %cst_166 [0] : vector<8x128xf32> to vector<128xf32>
    %909 = vector.shape_cast %908 : vector<128xf32> to vector<1x128xf32>
    %910 = vector.broadcast %909 : vector<1x128xf32> to vector<8x128xf32>
    %911 = arith.cmpf oeq, %907, %910 : vector<8x128xf32>
    %912 = arith.select %911, %0, %1 : vector<8x128xi1>, vector<8x128xi32>
    %cst_167 = arith.constant dense<2147483647> : vector<128xi32>
    %913 = vector.multi_reduction <minsi>, %912, %cst_167 [0] : vector<8x128xi32> to vector<128xi32>
    %914 = vector.shape_cast %913 : vector<128xi32> to vector<1x128xi32>
    %c5_i32_168 = arith.constant 5 : i32
    %915 = vector.broadcast %c5_i32_168 : i32 to vector<8x128xi32>
    %916 = arith.cmpi eq, %0, %915 : vector<8x128xi32>
    %917 = vector.shape_cast %909 : vector<1x128xf32> to vector<1x128xf32>
    %918 = vector.broadcast %917 : vector<1x128xf32> to vector<8x128xf32>
    %919 = arith.select %916, %918, %897 : vector<8x128xi1>, vector<8x128xf32>
    %c5_i32_169 = arith.constant 5 : i32
    %920 = vector.broadcast %c5_i32_169 : i32 to vector<8x128xi32>
    %921 = arith.cmpi eq, %0, %920 : vector<8x128xi32>
    %922 = vector.shape_cast %914 : vector<1x128xi32> to vector<1x128xi32>
    %923 = vector.broadcast %922 : vector<1x128xi32> to vector<8x128xi32>
    %924 = arith.select %921, %923, %902 : vector<8x128xi1>, vector<8x128xi32>
    %c0_170 = arith.constant 0 : index
    %c5_171 = arith.constant 5 : index
    %c0_172 = arith.constant 0 : index
    %c0_173 = arith.constant 0 : index
    %925 = vector.load %arg2[%c0_170, %c5_171, %c0_172, %c0_173] : memref<1x8x8x128xf32, #tpu.memory_space<vmem>>, vector<1x1x8x128xf32>
    %926 = vector.shape_cast %925 : vector<1x1x8x128xf32> to vector<8x128xf32>
    %927 = arith.addf %919, %926 : vector<8x128xf32>
    %c0_174 = arith.constant 0 : index
    %c6 = arith.constant 6 : index
    %c0_175 = arith.constant 0 : index
    %928 = vector.load %arg1[%c0_174, %c6, %c0_175] : memref<1x8x128xf32, #tpu.memory_space<vmem>>, vector<1x1x128xf32>
    %929 = vector.shape_cast %928 : vector<1x1x128xf32> to vector<1x128xf32>
    %cst_176 = arith.constant 5.000000e-01 : f32
    %930 = vector.broadcast %cst_176 : f32 to vector<1x128xf32>
    %931 = arith.cmpf ogt, %929, %930 : vector<1x128xf32>
    %932 = vector.shape_cast %931 : vector<1x128xi1> to vector<1x128xi1>
    %933 = vector.broadcast %932 : vector<1x128xi1> to vector<8x128xi1>
    %934 = vector.shape_cast %8 : vector<8x1xf32> to vector<8x1xf32>
    %935 = vector.broadcast %934 : vector<8x1xf32> to vector<8x128xf32>
    %936 = vector.shape_cast %9 : vector<8x1xf32> to vector<8x1xf32>
    %937 = vector.broadcast %936 : vector<8x1xf32> to vector<8x128xf32>
    %938 = arith.select %933, %935, %937 : vector<8x128xi1>, vector<8x128xf32>
    %939 = vector.shape_cast %931 : vector<1x128xi1> to vector<1x128xi1>
    %940 = vector.broadcast %939 : vector<1x128xi1> to vector<8x128xi1>
    %941 = vector.shape_cast %10 : vector<8x1xf32> to vector<8x1xf32>
    %942 = vector.broadcast %941 : vector<8x1xf32> to vector<8x128xf32>
    %943 = vector.shape_cast %11 : vector<8x1xf32> to vector<8x1xf32>
    %944 = vector.broadcast %943 : vector<8x1xf32> to vector<8x128xf32>
    %945 = arith.select %940, %942, %944 : vector<8x128xi1>, vector<8x128xf32>
    %946 = vector.broadcast %929 : vector<1x128xf32> to vector<8x128xf32>
    %947 = vector.broadcast %7 : vector<8x1xf32> to vector<8x128xf32>
    %948 = arith.mulf %946, %947 : vector<8x128xf32>
    %949 = arith.addf %948, %945 : vector<8x128xf32>
    %950 = math.tanh %949 : vector<8x128xf32>
    %951 = arith.mulf %938, %950 : vector<8x128xf32>
    %952 = vector.broadcast %18 : vector<8x1xf32> to vector<8x128xf32>
    %953 = arith.mulf %951, %952 : vector<8x128xf32>
    %954 = vector.broadcast %12 : vector<8x1xf32> to vector<8x128xf32>
    %955 = arith.addf %954, %953 : vector<8x128xf32>
    %956 = arith.addf %927, %955 : vector<8x128xf32>
    %cst_177 = arith.constant dense<0xFF800000> : vector<128xf32>
    %957 = vector.multi_reduction <maximumf>, %956, %cst_177 [0] : vector<8x128xf32> to vector<128xf32>
    %958 = vector.shape_cast %957 : vector<128xf32> to vector<1x128xf32>
    %959 = vector.broadcast %958 : vector<1x128xf32> to vector<8x128xf32>
    %960 = arith.cmpf oeq, %956, %959 : vector<8x128xf32>
    %961 = arith.select %960, %0, %1 : vector<8x128xi1>, vector<8x128xi32>
    %cst_178 = arith.constant dense<2147483647> : vector<128xi32>
    %962 = vector.multi_reduction <minsi>, %961, %cst_178 [0] : vector<8x128xi32> to vector<128xi32>
    %963 = vector.shape_cast %962 : vector<128xi32> to vector<1x128xi32>
    %c0_i32_179 = arith.constant 0 : i32
    %964 = vector.broadcast %c0_i32_179 : i32 to vector<8x128xi32>
    %965 = arith.cmpi eq, %0, %964 : vector<8x128xi32>
    %966 = vector.shape_cast %958 : vector<1x128xf32> to vector<1x128xf32>
    %967 = vector.broadcast %966 : vector<1x128xf32> to vector<8x128xf32>
    %968 = arith.select %965, %967, %2 : vector<8x128xi1>, vector<8x128xf32>
    %c0_i32_180 = arith.constant 0 : i32
    %969 = vector.broadcast %c0_i32_180 : i32 to vector<8x128xi32>
    %970 = arith.cmpi eq, %0, %969 : vector<8x128xi32>
    %971 = vector.shape_cast %963 : vector<1x128xi32> to vector<1x128xi32>
    %972 = vector.broadcast %971 : vector<1x128xi32> to vector<8x128xi32>
    %973 = arith.select %970, %972, %1 : vector<8x128xi1>, vector<8x128xi32>
    %974 = vector.broadcast %19 : vector<8x1xf32> to vector<8x128xf32>
    %975 = arith.mulf %951, %974 : vector<8x128xf32>
    %976 = vector.broadcast %13 : vector<8x1xf32> to vector<8x128xf32>
    %977 = arith.addf %976, %975 : vector<8x128xf32>
    %978 = arith.addf %927, %977 : vector<8x128xf32>
    %cst_181 = arith.constant dense<0xFF800000> : vector<128xf32>
    %979 = vector.multi_reduction <maximumf>, %978, %cst_181 [0] : vector<8x128xf32> to vector<128xf32>
    %980 = vector.shape_cast %979 : vector<128xf32> to vector<1x128xf32>
    %981 = vector.broadcast %980 : vector<1x128xf32> to vector<8x128xf32>
    %982 = arith.cmpf oeq, %978, %981 : vector<8x128xf32>
    %983 = arith.select %982, %0, %1 : vector<8x128xi1>, vector<8x128xi32>
    %cst_182 = arith.constant dense<2147483647> : vector<128xi32>
    %984 = vector.multi_reduction <minsi>, %983, %cst_182 [0] : vector<8x128xi32> to vector<128xi32>
    %985 = vector.shape_cast %984 : vector<128xi32> to vector<1x128xi32>
    %c1_i32_183 = arith.constant 1 : i32
    %986 = vector.broadcast %c1_i32_183 : i32 to vector<8x128xi32>
    %987 = arith.cmpi eq, %0, %986 : vector<8x128xi32>
    %988 = vector.shape_cast %980 : vector<1x128xf32> to vector<1x128xf32>
    %989 = vector.broadcast %988 : vector<1x128xf32> to vector<8x128xf32>
    %990 = arith.select %987, %989, %968 : vector<8x128xi1>, vector<8x128xf32>
    %c1_i32_184 = arith.constant 1 : i32
    %991 = vector.broadcast %c1_i32_184 : i32 to vector<8x128xi32>
    %992 = arith.cmpi eq, %0, %991 : vector<8x128xi32>
    %993 = vector.shape_cast %985 : vector<1x128xi32> to vector<1x128xi32>
    %994 = vector.broadcast %993 : vector<1x128xi32> to vector<8x128xi32>
    %995 = arith.select %992, %994, %973 : vector<8x128xi1>, vector<8x128xi32>
    %996 = vector.broadcast %20 : vector<8x1xf32> to vector<8x128xf32>
    %997 = arith.mulf %951, %996 : vector<8x128xf32>
    %998 = vector.broadcast %14 : vector<8x1xf32> to vector<8x128xf32>
    %999 = arith.addf %998, %997 : vector<8x128xf32>
    %1000 = arith.addf %927, %999 : vector<8x128xf32>
    %cst_185 = arith.constant dense<0xFF800000> : vector<128xf32>
    %1001 = vector.multi_reduction <maximumf>, %1000, %cst_185 [0] : vector<8x128xf32> to vector<128xf32>
    %1002 = vector.shape_cast %1001 : vector<128xf32> to vector<1x128xf32>
    %1003 = vector.broadcast %1002 : vector<1x128xf32> to vector<8x128xf32>
    %1004 = arith.cmpf oeq, %1000, %1003 : vector<8x128xf32>
    %1005 = arith.select %1004, %0, %1 : vector<8x128xi1>, vector<8x128xi32>
    %cst_186 = arith.constant dense<2147483647> : vector<128xi32>
    %1006 = vector.multi_reduction <minsi>, %1005, %cst_186 [0] : vector<8x128xi32> to vector<128xi32>
    %1007 = vector.shape_cast %1006 : vector<128xi32> to vector<1x128xi32>
    %c2_i32_187 = arith.constant 2 : i32
    %1008 = vector.broadcast %c2_i32_187 : i32 to vector<8x128xi32>
    %1009 = arith.cmpi eq, %0, %1008 : vector<8x128xi32>
    %1010 = vector.shape_cast %1002 : vector<1x128xf32> to vector<1x128xf32>
    %1011 = vector.broadcast %1010 : vector<1x128xf32> to vector<8x128xf32>
    %1012 = arith.select %1009, %1011, %990 : vector<8x128xi1>, vector<8x128xf32>
    %c2_i32_188 = arith.constant 2 : i32
    %1013 = vector.broadcast %c2_i32_188 : i32 to vector<8x128xi32>
    %1014 = arith.cmpi eq, %0, %1013 : vector<8x128xi32>
    %1015 = vector.shape_cast %1007 : vector<1x128xi32> to vector<1x128xi32>
    %1016 = vector.broadcast %1015 : vector<1x128xi32> to vector<8x128xi32>
    %1017 = arith.select %1014, %1016, %995 : vector<8x128xi1>, vector<8x128xi32>
    %1018 = vector.broadcast %21 : vector<8x1xf32> to vector<8x128xf32>
    %1019 = arith.mulf %951, %1018 : vector<8x128xf32>
    %1020 = vector.broadcast %15 : vector<8x1xf32> to vector<8x128xf32>
    %1021 = arith.addf %1020, %1019 : vector<8x128xf32>
    %1022 = arith.addf %927, %1021 : vector<8x128xf32>
    %cst_189 = arith.constant dense<0xFF800000> : vector<128xf32>
    %1023 = vector.multi_reduction <maximumf>, %1022, %cst_189 [0] : vector<8x128xf32> to vector<128xf32>
    %1024 = vector.shape_cast %1023 : vector<128xf32> to vector<1x128xf32>
    %1025 = vector.broadcast %1024 : vector<1x128xf32> to vector<8x128xf32>
    %1026 = arith.cmpf oeq, %1022, %1025 : vector<8x128xf32>
    %1027 = arith.select %1026, %0, %1 : vector<8x128xi1>, vector<8x128xi32>
    %cst_190 = arith.constant dense<2147483647> : vector<128xi32>
    %1028 = vector.multi_reduction <minsi>, %1027, %cst_190 [0] : vector<8x128xi32> to vector<128xi32>
    %1029 = vector.shape_cast %1028 : vector<128xi32> to vector<1x128xi32>
    %c3_i32_191 = arith.constant 3 : i32
    %1030 = vector.broadcast %c3_i32_191 : i32 to vector<8x128xi32>
    %1031 = arith.cmpi eq, %0, %1030 : vector<8x128xi32>
    %1032 = vector.shape_cast %1024 : vector<1x128xf32> to vector<1x128xf32>
    %1033 = vector.broadcast %1032 : vector<1x128xf32> to vector<8x128xf32>
    %1034 = arith.select %1031, %1033, %1012 : vector<8x128xi1>, vector<8x128xf32>
    %c3_i32_192 = arith.constant 3 : i32
    %1035 = vector.broadcast %c3_i32_192 : i32 to vector<8x128xi32>
    %1036 = arith.cmpi eq, %0, %1035 : vector<8x128xi32>
    %1037 = vector.shape_cast %1029 : vector<1x128xi32> to vector<1x128xi32>
    %1038 = vector.broadcast %1037 : vector<1x128xi32> to vector<8x128xi32>
    %1039 = arith.select %1036, %1038, %1017 : vector<8x128xi1>, vector<8x128xi32>
    %1040 = vector.broadcast %22 : vector<8x1xf32> to vector<8x128xf32>
    %1041 = arith.mulf %951, %1040 : vector<8x128xf32>
    %1042 = vector.broadcast %16 : vector<8x1xf32> to vector<8x128xf32>
    %1043 = arith.addf %1042, %1041 : vector<8x128xf32>
    %1044 = arith.addf %927, %1043 : vector<8x128xf32>
    %cst_193 = arith.constant dense<0xFF800000> : vector<128xf32>
    %1045 = vector.multi_reduction <maximumf>, %1044, %cst_193 [0] : vector<8x128xf32> to vector<128xf32>
    %1046 = vector.shape_cast %1045 : vector<128xf32> to vector<1x128xf32>
    %1047 = vector.broadcast %1046 : vector<1x128xf32> to vector<8x128xf32>
    %1048 = arith.cmpf oeq, %1044, %1047 : vector<8x128xf32>
    %1049 = arith.select %1048, %0, %1 : vector<8x128xi1>, vector<8x128xi32>
    %cst_194 = arith.constant dense<2147483647> : vector<128xi32>
    %1050 = vector.multi_reduction <minsi>, %1049, %cst_194 [0] : vector<8x128xi32> to vector<128xi32>
    %1051 = vector.shape_cast %1050 : vector<128xi32> to vector<1x128xi32>
    %c4_i32_195 = arith.constant 4 : i32
    %1052 = vector.broadcast %c4_i32_195 : i32 to vector<8x128xi32>
    %1053 = arith.cmpi eq, %0, %1052 : vector<8x128xi32>
    %1054 = vector.shape_cast %1046 : vector<1x128xf32> to vector<1x128xf32>
    %1055 = vector.broadcast %1054 : vector<1x128xf32> to vector<8x128xf32>
    %1056 = arith.select %1053, %1055, %1034 : vector<8x128xi1>, vector<8x128xf32>
    %c4_i32_196 = arith.constant 4 : i32
    %1057 = vector.broadcast %c4_i32_196 : i32 to vector<8x128xi32>
    %1058 = arith.cmpi eq, %0, %1057 : vector<8x128xi32>
    %1059 = vector.shape_cast %1051 : vector<1x128xi32> to vector<1x128xi32>
    %1060 = vector.broadcast %1059 : vector<1x128xi32> to vector<8x128xi32>
    %1061 = arith.select %1058, %1060, %1039 : vector<8x128xi1>, vector<8x128xi32>
    %1062 = vector.broadcast %23 : vector<8x1xf32> to vector<8x128xf32>
    %1063 = arith.mulf %951, %1062 : vector<8x128xf32>
    %1064 = vector.broadcast %17 : vector<8x1xf32> to vector<8x128xf32>
    %1065 = arith.addf %1064, %1063 : vector<8x128xf32>
    %1066 = arith.addf %927, %1065 : vector<8x128xf32>
    %cst_197 = arith.constant dense<0xFF800000> : vector<128xf32>
    %1067 = vector.multi_reduction <maximumf>, %1066, %cst_197 [0] : vector<8x128xf32> to vector<128xf32>
    %1068 = vector.shape_cast %1067 : vector<128xf32> to vector<1x128xf32>
    %1069 = vector.broadcast %1068 : vector<1x128xf32> to vector<8x128xf32>
    %1070 = arith.cmpf oeq, %1066, %1069 : vector<8x128xf32>
    %1071 = arith.select %1070, %0, %1 : vector<8x128xi1>, vector<8x128xi32>
    %cst_198 = arith.constant dense<2147483647> : vector<128xi32>
    %1072 = vector.multi_reduction <minsi>, %1071, %cst_198 [0] : vector<8x128xi32> to vector<128xi32>
    %1073 = vector.shape_cast %1072 : vector<128xi32> to vector<1x128xi32>
    %c5_i32_199 = arith.constant 5 : i32
    %1074 = vector.broadcast %c5_i32_199 : i32 to vector<8x128xi32>
    %1075 = arith.cmpi eq, %0, %1074 : vector<8x128xi32>
    %1076 = vector.shape_cast %1068 : vector<1x128xf32> to vector<1x128xf32>
    %1077 = vector.broadcast %1076 : vector<1x128xf32> to vector<8x128xf32>
    %1078 = arith.select %1075, %1077, %1056 : vector<8x128xi1>, vector<8x128xf32>
    %c5_i32_200 = arith.constant 5 : i32
    %1079 = vector.broadcast %c5_i32_200 : i32 to vector<8x128xi32>
    %1080 = arith.cmpi eq, %0, %1079 : vector<8x128xi32>
    %1081 = vector.shape_cast %1073 : vector<1x128xi32> to vector<1x128xi32>
    %1082 = vector.broadcast %1081 : vector<1x128xi32> to vector<8x128xi32>
    %1083 = arith.select %1080, %1082, %1061 : vector<8x128xi1>, vector<8x128xi32>
    %c0_201 = arith.constant 0 : index
    %c6_202 = arith.constant 6 : index
    %c0_203 = arith.constant 0 : index
    %c0_204 = arith.constant 0 : index
    %1084 = vector.load %arg2[%c0_201, %c6_202, %c0_203, %c0_204] : memref<1x8x8x128xf32, #tpu.memory_space<vmem>>, vector<1x1x8x128xf32>
    %1085 = vector.shape_cast %1084 : vector<1x1x8x128xf32> to vector<8x128xf32>
    %1086 = arith.addf %1078, %1085 : vector<8x128xf32>
    %c0_205 = arith.constant 0 : index
    %c7 = arith.constant 7 : index
    %c0_206 = arith.constant 0 : index
    %1087 = vector.load %arg1[%c0_205, %c7, %c0_206] : memref<1x8x128xf32, #tpu.memory_space<vmem>>, vector<1x1x128xf32>
    %1088 = vector.shape_cast %1087 : vector<1x1x128xf32> to vector<1x128xf32>
    %cst_207 = arith.constant 5.000000e-01 : f32
    %1089 = vector.broadcast %cst_207 : f32 to vector<1x128xf32>
    %1090 = arith.cmpf ogt, %1088, %1089 : vector<1x128xf32>
    %1091 = vector.shape_cast %1090 : vector<1x128xi1> to vector<1x128xi1>
    %1092 = vector.broadcast %1091 : vector<1x128xi1> to vector<8x128xi1>
    %1093 = vector.shape_cast %8 : vector<8x1xf32> to vector<8x1xf32>
    %1094 = vector.broadcast %1093 : vector<8x1xf32> to vector<8x128xf32>
    %1095 = vector.shape_cast %9 : vector<8x1xf32> to vector<8x1xf32>
    %1096 = vector.broadcast %1095 : vector<8x1xf32> to vector<8x128xf32>
    %1097 = arith.select %1092, %1094, %1096 : vector<8x128xi1>, vector<8x128xf32>
    %1098 = vector.shape_cast %1090 : vector<1x128xi1> to vector<1x128xi1>
    %1099 = vector.broadcast %1098 : vector<1x128xi1> to vector<8x128xi1>
    %1100 = vector.shape_cast %10 : vector<8x1xf32> to vector<8x1xf32>
    %1101 = vector.broadcast %1100 : vector<8x1xf32> to vector<8x128xf32>
    %1102 = vector.shape_cast %11 : vector<8x1xf32> to vector<8x1xf32>
    %1103 = vector.broadcast %1102 : vector<8x1xf32> to vector<8x128xf32>
    %1104 = arith.select %1099, %1101, %1103 : vector<8x128xi1>, vector<8x128xf32>
    %1105 = vector.broadcast %1088 : vector<1x128xf32> to vector<8x128xf32>
    %1106 = vector.broadcast %7 : vector<8x1xf32> to vector<8x128xf32>
    %1107 = arith.mulf %1105, %1106 : vector<8x128xf32>
    %1108 = arith.addf %1107, %1104 : vector<8x128xf32>
    %1109 = math.tanh %1108 : vector<8x128xf32>
    %1110 = arith.mulf %1097, %1109 : vector<8x128xf32>
    %1111 = vector.broadcast %18 : vector<8x1xf32> to vector<8x128xf32>
    %1112 = arith.mulf %1110, %1111 : vector<8x128xf32>
    %1113 = vector.broadcast %12 : vector<8x1xf32> to vector<8x128xf32>
    %1114 = arith.addf %1113, %1112 : vector<8x128xf32>
    %1115 = arith.addf %1086, %1114 : vector<8x128xf32>
    %cst_208 = arith.constant dense<0xFF800000> : vector<128xf32>
    %1116 = vector.multi_reduction <maximumf>, %1115, %cst_208 [0] : vector<8x128xf32> to vector<128xf32>
    %1117 = vector.shape_cast %1116 : vector<128xf32> to vector<1x128xf32>
    %1118 = vector.broadcast %1117 : vector<1x128xf32> to vector<8x128xf32>
    %1119 = arith.cmpf oeq, %1115, %1118 : vector<8x128xf32>
    %1120 = arith.select %1119, %0, %1 : vector<8x128xi1>, vector<8x128xi32>
    %cst_209 = arith.constant dense<2147483647> : vector<128xi32>
    %1121 = vector.multi_reduction <minsi>, %1120, %cst_209 [0] : vector<8x128xi32> to vector<128xi32>
    %1122 = vector.shape_cast %1121 : vector<128xi32> to vector<1x128xi32>
    %c0_i32_210 = arith.constant 0 : i32
    %1123 = vector.broadcast %c0_i32_210 : i32 to vector<8x128xi32>
    %1124 = arith.cmpi eq, %0, %1123 : vector<8x128xi32>
    %1125 = vector.shape_cast %1117 : vector<1x128xf32> to vector<1x128xf32>
    %1126 = vector.broadcast %1125 : vector<1x128xf32> to vector<8x128xf32>
    %1127 = arith.select %1124, %1126, %2 : vector<8x128xi1>, vector<8x128xf32>
    %c0_i32_211 = arith.constant 0 : i32
    %1128 = vector.broadcast %c0_i32_211 : i32 to vector<8x128xi32>
    %1129 = arith.cmpi eq, %0, %1128 : vector<8x128xi32>
    %1130 = vector.shape_cast %1122 : vector<1x128xi32> to vector<1x128xi32>
    %1131 = vector.broadcast %1130 : vector<1x128xi32> to vector<8x128xi32>
    %1132 = arith.select %1129, %1131, %1 : vector<8x128xi1>, vector<8x128xi32>
    %1133 = vector.broadcast %19 : vector<8x1xf32> to vector<8x128xf32>
    %1134 = arith.mulf %1110, %1133 : vector<8x128xf32>
    %1135 = vector.broadcast %13 : vector<8x1xf32> to vector<8x128xf32>
    %1136 = arith.addf %1135, %1134 : vector<8x128xf32>
    %1137 = arith.addf %1086, %1136 : vector<8x128xf32>
    %cst_212 = arith.constant dense<0xFF800000> : vector<128xf32>
    %1138 = vector.multi_reduction <maximumf>, %1137, %cst_212 [0] : vector<8x128xf32> to vector<128xf32>
    %1139 = vector.shape_cast %1138 : vector<128xf32> to vector<1x128xf32>
    %1140 = vector.broadcast %1139 : vector<1x128xf32> to vector<8x128xf32>
    %1141 = arith.cmpf oeq, %1137, %1140 : vector<8x128xf32>
    %1142 = arith.select %1141, %0, %1 : vector<8x128xi1>, vector<8x128xi32>
    %cst_213 = arith.constant dense<2147483647> : vector<128xi32>
    %1143 = vector.multi_reduction <minsi>, %1142, %cst_213 [0] : vector<8x128xi32> to vector<128xi32>
    %1144 = vector.shape_cast %1143 : vector<128xi32> to vector<1x128xi32>
    %c1_i32_214 = arith.constant 1 : i32
    %1145 = vector.broadcast %c1_i32_214 : i32 to vector<8x128xi32>
    %1146 = arith.cmpi eq, %0, %1145 : vector<8x128xi32>
    %1147 = vector.shape_cast %1139 : vector<1x128xf32> to vector<1x128xf32>
    %1148 = vector.broadcast %1147 : vector<1x128xf32> to vector<8x128xf32>
    %1149 = arith.select %1146, %1148, %1127 : vector<8x128xi1>, vector<8x128xf32>
    %c1_i32_215 = arith.constant 1 : i32
    %1150 = vector.broadcast %c1_i32_215 : i32 to vector<8x128xi32>
    %1151 = arith.cmpi eq, %0, %1150 : vector<8x128xi32>
    %1152 = vector.shape_cast %1144 : vector<1x128xi32> to vector<1x128xi32>
    %1153 = vector.broadcast %1152 : vector<1x128xi32> to vector<8x128xi32>
    %1154 = arith.select %1151, %1153, %1132 : vector<8x128xi1>, vector<8x128xi32>
    %1155 = vector.broadcast %20 : vector<8x1xf32> to vector<8x128xf32>
    %1156 = arith.mulf %1110, %1155 : vector<8x128xf32>
    %1157 = vector.broadcast %14 : vector<8x1xf32> to vector<8x128xf32>
    %1158 = arith.addf %1157, %1156 : vector<8x128xf32>
    %1159 = arith.addf %1086, %1158 : vector<8x128xf32>
    %cst_216 = arith.constant dense<0xFF800000> : vector<128xf32>
    %1160 = vector.multi_reduction <maximumf>, %1159, %cst_216 [0] : vector<8x128xf32> to vector<128xf32>
    %1161 = vector.shape_cast %1160 : vector<128xf32> to vector<1x128xf32>
    %1162 = vector.broadcast %1161 : vector<1x128xf32> to vector<8x128xf32>
    %1163 = arith.cmpf oeq, %1159, %1162 : vector<8x128xf32>
    %1164 = arith.select %1163, %0, %1 : vector<8x128xi1>, vector<8x128xi32>
    %cst_217 = arith.constant dense<2147483647> : vector<128xi32>
    %1165 = vector.multi_reduction <minsi>, %1164, %cst_217 [0] : vector<8x128xi32> to vector<128xi32>
    %1166 = vector.shape_cast %1165 : vector<128xi32> to vector<1x128xi32>
    %c2_i32_218 = arith.constant 2 : i32
    %1167 = vector.broadcast %c2_i32_218 : i32 to vector<8x128xi32>
    %1168 = arith.cmpi eq, %0, %1167 : vector<8x128xi32>
    %1169 = vector.shape_cast %1161 : vector<1x128xf32> to vector<1x128xf32>
    %1170 = vector.broadcast %1169 : vector<1x128xf32> to vector<8x128xf32>
    %1171 = arith.select %1168, %1170, %1149 : vector<8x128xi1>, vector<8x128xf32>
    %c2_i32_219 = arith.constant 2 : i32
    %1172 = vector.broadcast %c2_i32_219 : i32 to vector<8x128xi32>
    %1173 = arith.cmpi eq, %0, %1172 : vector<8x128xi32>
    %1174 = vector.shape_cast %1166 : vector<1x128xi32> to vector<1x128xi32>
    %1175 = vector.broadcast %1174 : vector<1x128xi32> to vector<8x128xi32>
    %1176 = arith.select %1173, %1175, %1154 : vector<8x128xi1>, vector<8x128xi32>
    %1177 = vector.broadcast %21 : vector<8x1xf32> to vector<8x128xf32>
    %1178 = arith.mulf %1110, %1177 : vector<8x128xf32>
    %1179 = vector.broadcast %15 : vector<8x1xf32> to vector<8x128xf32>
    %1180 = arith.addf %1179, %1178 : vector<8x128xf32>
    %1181 = arith.addf %1086, %1180 : vector<8x128xf32>
    %cst_220 = arith.constant dense<0xFF800000> : vector<128xf32>
    %1182 = vector.multi_reduction <maximumf>, %1181, %cst_220 [0] : vector<8x128xf32> to vector<128xf32>
    %1183 = vector.shape_cast %1182 : vector<128xf32> to vector<1x128xf32>
    %1184 = vector.broadcast %1183 : vector<1x128xf32> to vector<8x128xf32>
    %1185 = arith.cmpf oeq, %1181, %1184 : vector<8x128xf32>
    %1186 = arith.select %1185, %0, %1 : vector<8x128xi1>, vector<8x128xi32>
    %cst_221 = arith.constant dense<2147483647> : vector<128xi32>
    %1187 = vector.multi_reduction <minsi>, %1186, %cst_221 [0] : vector<8x128xi32> to vector<128xi32>
    %1188 = vector.shape_cast %1187 : vector<128xi32> to vector<1x128xi32>
    %c3_i32_222 = arith.constant 3 : i32
    %1189 = vector.broadcast %c3_i32_222 : i32 to vector<8x128xi32>
    %1190 = arith.cmpi eq, %0, %1189 : vector<8x128xi32>
    %1191 = vector.shape_cast %1183 : vector<1x128xf32> to vector<1x128xf32>
    %1192 = vector.broadcast %1191 : vector<1x128xf32> to vector<8x128xf32>
    %1193 = arith.select %1190, %1192, %1171 : vector<8x128xi1>, vector<8x128xf32>
    %c3_i32_223 = arith.constant 3 : i32
    %1194 = vector.broadcast %c3_i32_223 : i32 to vector<8x128xi32>
    %1195 = arith.cmpi eq, %0, %1194 : vector<8x128xi32>
    %1196 = vector.shape_cast %1188 : vector<1x128xi32> to vector<1x128xi32>
    %1197 = vector.broadcast %1196 : vector<1x128xi32> to vector<8x128xi32>
    %1198 = arith.select %1195, %1197, %1176 : vector<8x128xi1>, vector<8x128xi32>
    %1199 = vector.broadcast %22 : vector<8x1xf32> to vector<8x128xf32>
    %1200 = arith.mulf %1110, %1199 : vector<8x128xf32>
    %1201 = vector.broadcast %16 : vector<8x1xf32> to vector<8x128xf32>
    %1202 = arith.addf %1201, %1200 : vector<8x128xf32>
    %1203 = arith.addf %1086, %1202 : vector<8x128xf32>
    %cst_224 = arith.constant dense<0xFF800000> : vector<128xf32>
    %1204 = vector.multi_reduction <maximumf>, %1203, %cst_224 [0] : vector<8x128xf32> to vector<128xf32>
    %1205 = vector.shape_cast %1204 : vector<128xf32> to vector<1x128xf32>
    %1206 = vector.broadcast %1205 : vector<1x128xf32> to vector<8x128xf32>
    %1207 = arith.cmpf oeq, %1203, %1206 : vector<8x128xf32>
    %1208 = arith.select %1207, %0, %1 : vector<8x128xi1>, vector<8x128xi32>
    %cst_225 = arith.constant dense<2147483647> : vector<128xi32>
    %1209 = vector.multi_reduction <minsi>, %1208, %cst_225 [0] : vector<8x128xi32> to vector<128xi32>
    %1210 = vector.shape_cast %1209 : vector<128xi32> to vector<1x128xi32>
    %c4_i32_226 = arith.constant 4 : i32
    %1211 = vector.broadcast %c4_i32_226 : i32 to vector<8x128xi32>
    %1212 = arith.cmpi eq, %0, %1211 : vector<8x128xi32>
    %1213 = vector.shape_cast %1205 : vector<1x128xf32> to vector<1x128xf32>
    %1214 = vector.broadcast %1213 : vector<1x128xf32> to vector<8x128xf32>
    %1215 = arith.select %1212, %1214, %1193 : vector<8x128xi1>, vector<8x128xf32>
    %c4_i32_227 = arith.constant 4 : i32
    %1216 = vector.broadcast %c4_i32_227 : i32 to vector<8x128xi32>
    %1217 = arith.cmpi eq, %0, %1216 : vector<8x128xi32>
    %1218 = vector.shape_cast %1210 : vector<1x128xi32> to vector<1x128xi32>
    %1219 = vector.broadcast %1218 : vector<1x128xi32> to vector<8x128xi32>
    %1220 = arith.select %1217, %1219, %1198 : vector<8x128xi1>, vector<8x128xi32>
    %1221 = vector.broadcast %23 : vector<8x1xf32> to vector<8x128xf32>
    %1222 = arith.mulf %1110, %1221 : vector<8x128xf32>
    %1223 = vector.broadcast %17 : vector<8x1xf32> to vector<8x128xf32>
    %1224 = arith.addf %1223, %1222 : vector<8x128xf32>
    %1225 = arith.addf %1086, %1224 : vector<8x128xf32>
    %cst_228 = arith.constant dense<0xFF800000> : vector<128xf32>
    %1226 = vector.multi_reduction <maximumf>, %1225, %cst_228 [0] : vector<8x128xf32> to vector<128xf32>
    %1227 = vector.shape_cast %1226 : vector<128xf32> to vector<1x128xf32>
    %1228 = vector.broadcast %1227 : vector<1x128xf32> to vector<8x128xf32>
    %1229 = arith.cmpf oeq, %1225, %1228 : vector<8x128xf32>
    %1230 = arith.select %1229, %0, %1 : vector<8x128xi1>, vector<8x128xi32>
    %cst_229 = arith.constant dense<2147483647> : vector<128xi32>
    %1231 = vector.multi_reduction <minsi>, %1230, %cst_229 [0] : vector<8x128xi32> to vector<128xi32>
    %1232 = vector.shape_cast %1231 : vector<128xi32> to vector<1x128xi32>
    %c5_i32_230 = arith.constant 5 : i32
    %1233 = vector.broadcast %c5_i32_230 : i32 to vector<8x128xi32>
    %1234 = arith.cmpi eq, %0, %1233 : vector<8x128xi32>
    %1235 = vector.shape_cast %1227 : vector<1x128xf32> to vector<1x128xf32>
    %1236 = vector.broadcast %1235 : vector<1x128xf32> to vector<8x128xf32>
    %1237 = arith.select %1234, %1236, %1215 : vector<8x128xi1>, vector<8x128xf32>
    %c5_i32_231 = arith.constant 5 : i32
    %1238 = vector.broadcast %c5_i32_231 : i32 to vector<8x128xi32>
    %1239 = arith.cmpi eq, %0, %1238 : vector<8x128xi32>
    %1240 = vector.shape_cast %1232 : vector<1x128xi32> to vector<1x128xi32>
    %1241 = vector.broadcast %1240 : vector<1x128xi32> to vector<8x128xi32>
    %1242 = arith.select %1239, %1241, %1220 : vector<8x128xi1>, vector<8x128xi32>
    %c0_232 = arith.constant 0 : index
    %c7_233 = arith.constant 7 : index
    %c0_234 = arith.constant 0 : index
    %c0_235 = arith.constant 0 : index
    %1243 = vector.load %arg2[%c0_232, %c7_233, %c0_234, %c0_235] : memref<1x8x8x128xf32, #tpu.memory_space<vmem>>, vector<1x1x8x128xf32>
    %1244 = vector.shape_cast %1243 : vector<1x1x8x128xf32> to vector<8x128xf32>
    %1245 = arith.addf %1237, %1244 : vector<8x128xf32>
    %1246 = vector.broadcast %24 : vector<8x1xf32> to vector<8x128xf32>
    %1247 = arith.addf %1245, %1246 : vector<8x128xf32>
    %cst_236 = arith.constant dense<0xFF800000> : vector<128xf32>
    %1248 = vector.multi_reduction <maximumf>, %1247, %cst_236 [0] : vector<8x128xf32> to vector<128xf32>
    %1249 = vector.shape_cast %1248 : vector<128xf32> to vector<1x128xf32>
    %1250 = vector.broadcast %1249 : vector<1x128xf32> to vector<8x128xf32>
    %1251 = arith.cmpf oeq, %1247, %1250 : vector<8x128xf32>
    %1252 = arith.select %1251, %0, %1 : vector<8x128xi1>, vector<8x128xi32>
    %cst_237 = arith.constant dense<2147483647> : vector<128xi32>
    %1253 = vector.multi_reduction <minsi>, %1252, %cst_237 [0] : vector<8x128xi32> to vector<128xi32>
    %1254 = vector.shape_cast %1253 : vector<128xi32> to vector<1x128xi32>
    %c0_238 = arith.constant 0 : index
    %c0_239 = arith.constant 0 : index
    %c0_240 = arith.constant 0 : index
    %1255 = vector.load %arg4[%c0_238, %c0_239, %c0_240] : memref<1x1x128xf32, #tpu.memory_space<vmem>>, vector<1x1x128xf32>
    %1256 = vector.shape_cast %1255 : vector<1x1x128xf32> to vector<1x128xf32>
    %1257 = vector.shape_cast %1249 : vector<1x128xf32> to vector<1x1x128xf32>
    tpu.vector_store %arg4[%c0_238, %c0_239, %c0_240], %1257 {strides = array<i32>} : memref<1x1x128xf32, #tpu.memory_space<vmem>>, vector<1x1x128xf32>,
    %1258 = vector.broadcast %1254 : vector<1x128xi32> to vector<8x128xi32>
    %1259 = arith.cmpi eq, %0, %1258 : vector<8x128xi32>
    %1260 = arith.select %1259, %1242, %1 : vector<8x128xi1>, vector<8x128xi32>
    %cst_241 = arith.constant dense<2147483647> : vector<128xi32>
    %1261 = vector.multi_reduction <minsi>, %1260, %cst_241 [0] : vector<8x128xi32> to vector<128xi32>
    %1262 = vector.shape_cast %1261 : vector<128xi32> to vector<1x128xi32>
    %1263 = vector.broadcast %1262 : vector<1x128xi32> to vector<8x128xi32>
    %1264 = arith.cmpi eq, %0, %1263 : vector<8x128xi32>
    %1265 = arith.select %1264, %1083, %1 : vector<8x128xi1>, vector<8x128xi32>
    %cst_242 = arith.constant dense<2147483647> : vector<128xi32>
    %1266 = vector.multi_reduction <minsi>, %1265, %cst_242 [0] : vector<8x128xi32> to vector<128xi32>
    %1267 = vector.shape_cast %1266 : vector<128xi32> to vector<1x128xi32>
    %1268 = vector.broadcast %1267 : vector<1x128xi32> to vector<8x128xi32>
    %1269 = arith.cmpi eq, %0, %1268 : vector<8x128xi32>
    %1270 = arith.select %1269, %924, %1 : vector<8x128xi1>, vector<8x128xi32>
    %cst_243 = arith.constant dense<2147483647> : vector<128xi32>
    %1271 = vector.multi_reduction <minsi>, %1270, %cst_243 [0] : vector<8x128xi32> to vector<128xi32>
    %1272 = vector.shape_cast %1271 : vector<128xi32> to vector<1x128xi32>
    %1273 = vector.broadcast %1272 : vector<1x128xi32> to vector<8x128xi32>
    %1274 = arith.cmpi eq, %0, %1273 : vector<8x128xi32>
    %1275 = arith.select %1274, %765, %1 : vector<8x128xi1>, vector<8x128xi32>
    %cst_244 = arith.constant dense<2147483647> : vector<128xi32>
    %1276 = vector.multi_reduction <minsi>, %1275, %cst_244 [0] : vector<8x128xi32> to vector<128xi32>
    %1277 = vector.shape_cast %1276 : vector<128xi32> to vector<1x128xi32>
    %1278 = vector.broadcast %1277 : vector<1x128xi32> to vector<8x128xi32>
    %1279 = arith.cmpi eq, %0, %1278 : vector<8x128xi32>
    %1280 = arith.select %1279, %606, %1 : vector<8x128xi1>, vector<8x128xi32>
    %cst_245 = arith.constant dense<2147483647> : vector<128xi32>
    %1281 = vector.multi_reduction <minsi>, %1280, %cst_245 [0] : vector<8x128xi32> to vector<128xi32>
    %1282 = vector.shape_cast %1281 : vector<128xi32> to vector<1x128xi32>
    %1283 = vector.broadcast %1282 : vector<1x128xi32> to vector<8x128xi32>
    %1284 = arith.cmpi eq, %0, %1283 : vector<8x128xi32>
    %1285 = arith.select %1284, %447, %1 : vector<8x128xi1>, vector<8x128xi32>
    %cst_246 = arith.constant dense<2147483647> : vector<128xi32>
    %1286 = vector.multi_reduction <minsi>, %1285, %cst_246 [0] : vector<8x128xi32> to vector<128xi32>
    %1287 = vector.shape_cast %1286 : vector<128xi32> to vector<1x128xi32>
    %1288 = vector.broadcast %1287 : vector<1x128xi32> to vector<8x128xi32>
    %1289 = arith.cmpi eq, %0, %1288 : vector<8x128xi32>
    %1290 = arith.select %1289, %288, %1 : vector<8x128xi1>, vector<8x128xi32>
    %cst_247 = arith.constant dense<2147483647> : vector<128xi32>
    %1291 = vector.multi_reduction <minsi>, %1290, %cst_247 [0] : vector<8x128xi32> to vector<128xi32>
    %1292 = vector.shape_cast %1291 : vector<128xi32> to vector<1x128xi32>
    %1293 = tpu.iota {dimensions = array<i32: 0>} : vector<8x128xi32>
    %c0_i32_248 = arith.constant 0 : i32
    %1294 = vector.broadcast %c0_i32_248 : i32 to vector<8x128xi32>
    %c0_i32_249 = arith.constant 0 : i32
    %1295 = vector.broadcast %c0_i32_249 : i32 to vector<8x128xi32>
    %1296 = arith.cmpi eq, %1293, %1295 : vector<8x128xi32>
    %1297 = vector.shape_cast %1292 : vector<1x128xi32> to vector<1x128xi32>
    %1298 = vector.broadcast %1297 : vector<1x128xi32> to vector<8x128xi32>
    %1299 = arith.select %1296, %1298, %1294 : vector<8x128xi1>, vector<8x128xi32>
    %c1_i32_250 = arith.constant 1 : i32
    %1300 = vector.broadcast %c1_i32_250 : i32 to vector<8x128xi32>
    %1301 = arith.cmpi eq, %1293, %1300 : vector<8x128xi32>
    %1302 = vector.shape_cast %1287 : vector<1x128xi32> to vector<1x128xi32>
    %1303 = vector.broadcast %1302 : vector<1x128xi32> to vector<8x128xi32>
    %1304 = arith.select %1301, %1303, %1299 : vector<8x128xi1>, vector<8x128xi32>
    %c2_i32_251 = arith.constant 2 : i32
    %1305 = vector.broadcast %c2_i32_251 : i32 to vector<8x128xi32>
    %1306 = arith.cmpi eq, %1293, %1305 : vector<8x128xi32>
    %1307 = vector.shape_cast %1282 : vector<1x128xi32> to vector<1x128xi32>
    %1308 = vector.broadcast %1307 : vector<1x128xi32> to vector<8x128xi32>
    %1309 = arith.select %1306, %1308, %1304 : vector<8x128xi1>, vector<8x128xi32>
    %c3_i32_252 = arith.constant 3 : i32
    %1310 = vector.broadcast %c3_i32_252 : i32 to vector<8x128xi32>
    %1311 = arith.cmpi eq, %1293, %1310 : vector<8x128xi32>
    %1312 = vector.shape_cast %1277 : vector<1x128xi32> to vector<1x128xi32>
    %1313 = vector.broadcast %1312 : vector<1x128xi32> to vector<8x128xi32>
    %1314 = arith.select %1311, %1313, %1309 : vector<8x128xi1>, vector<8x128xi32>
    %c4_i32_253 = arith.constant 4 : i32
    %1315 = vector.broadcast %c4_i32_253 : i32 to vector<8x128xi32>
    %1316 = arith.cmpi eq, %1293, %1315 : vector<8x128xi32>
    %1317 = vector.shape_cast %1272 : vector<1x128xi32> to vector<1x128xi32>
    %1318 = vector.broadcast %1317 : vector<1x128xi32> to vector<8x128xi32>
    %1319 = arith.select %1316, %1318, %1314 : vector<8x128xi1>, vector<8x128xi32>
    %c5_i32_254 = arith.constant 5 : i32
    %1320 = vector.broadcast %c5_i32_254 : i32 to vector<8x128xi32>
    %1321 = arith.cmpi eq, %1293, %1320 : vector<8x128xi32>
    %1322 = vector.shape_cast %1267 : vector<1x128xi32> to vector<1x128xi32>
    %1323 = vector.broadcast %1322 : vector<1x128xi32> to vector<8x128xi32>
    %1324 = arith.select %1321, %1323, %1319 : vector<8x128xi1>, vector<8x128xi32>
    %c6_i32_255 = arith.constant 6 : i32
    %1325 = vector.broadcast %c6_i32_255 : i32 to vector<8x128xi32>
    %1326 = arith.cmpi eq, %1293, %1325 : vector<8x128xi32>
    %1327 = vector.shape_cast %1262 : vector<1x128xi32> to vector<1x128xi32>
    %1328 = vector.broadcast %1327 : vector<1x128xi32> to vector<8x128xi32>
    %1329 = arith.select %1326, %1328, %1324 : vector<8x128xi1>, vector<8x128xi32>
    %c7_i32 = arith.constant 7 : i32
    %1330 = vector.broadcast %c7_i32 : i32 to vector<8x128xi32>
    %1331 = arith.cmpi eq, %1293, %1330 : vector<8x128xi32>
    %1332 = vector.shape_cast %1254 : vector<1x128xi32> to vector<1x128xi32>
    %1333 = vector.broadcast %1332 : vector<1x128xi32> to vector<8x128xi32>
    %1334 = arith.select %1331, %1333, %1329 : vector<8x128xi1>, vector<8x128xi32>
    %c0_256 = arith.constant 0 : index
    %c0_257 = arith.constant 0 : index
    %c0_258 = arith.constant 0 : index
    %1335 = vector.load %arg5[%c0_256, %c0_257, %c0_258] : memref<1x8x128xi32, #tpu.memory_space<vmem>>, vector<1x8x128xi32>
    %1336 = vector.shape_cast %1335 : vector<1x8x128xi32> to vector<8x128xi32>
    %1337 = vector.shape_cast %1334 : vector<8x128xi32> to vector<1x8x128xi32>
    tpu.vector_store %arg5[%c0_256, %c0_257, %c0_258], %1337 {strides = array<i32>} : memref<1x8x128xi32, #tpu.memory_space<vmem>>, vector<1x8x128xi32>,
    return
  }
  func.func @transform_0(%arg0: i32) -> (i32, i32, i32) {
    %c0_i32 = arith.constant 0 : i32
    %c0_i32_0 = arith.constant 0 : i32
    %c0_i32_1 = arith.constant 0 : i32
    return %arg0, %c0_i32, %c0_i32_0 : i32, i32, i32
  }
  func.func @transform_1(%arg0: i32) -> (i32, i32, i32, i32) {
    %c0_i32 = arith.constant 0 : i32
    %c0_i32_0 = arith.constant 0 : i32
    %c0_i32_1 = arith.constant 0 : i32
    %c0_i32_2 = arith.constant 0 : i32
    return %arg0, %c0_i32, %c0_i32_0, %c0_i32_1 : i32, i32, i32, i32
  }
  func.func @transform_2(%arg0: i32) -> (i32, i32) {
    %c0_i32 = arith.constant 0 : i32
    %c0_i32_0 = arith.constant 0 : i32
    %c0_i32_1 = arith.constant 0 : i32
    return %c0_i32, %c0_i32_0 : i32, i32
  }
  func.func @transform_3(%arg0: i32) -> (i32, i32, i32) {
    %c0_i32 = arith.constant 0 : i32
    %c0_i32_0 = arith.constant 0 : i32
    %c0_i32_1 = arith.constant 0 : i32
    return %arg0, %c0_i32, %c0_i32_0 : i32, i32, i32
  }
  func.func @transform_4(%arg0: i32) -> (i32, i32, i32) {
    %c0_i32 = arith.constant 0 : i32
    %c0_i32_0 = arith.constant 0 : i32
    %c0_i32_1 = arith.constant 0 : i32
    return %arg0, %c0_i32, %c0_i32_0 : i32, i32, i32
  }
}

</mosaic_0001>

<bundles_post_ra>
// kernel: tpu_custom_call.1
= control target key start
LH: loop header
LB: loop body
LE: loop exit
PB: predicated region body
PF: predicated region fallthrough
CT: control target
= control target key end

     0   :  { %10 = vsyncpa [#allocation3], 0  ;;  %s3548_s0 = inlined_call_operand.vmem [shape: f32[2,8,128], index: 0, kind: input, shape index: {}]   ;;  %s3549_s1 = inlined_call_operand.hbm [shape: f32[2,8,8,128], index: 1, kind: input, shape index: {}]   ;;  %s3550_s2 = inlined_call_operand.vmem [shape: f32[24,8], index: 2, kind: input, shape index: {}]   ;;  %s3551_s3 = inlined_call_operand.hbm [shape: f32[2,1,128], index: 3, kind: output, shape index: {0}]   ;;  %s3552_s4 = inlined_call_operand.hbm [shape: s32[2,8,128], index: 4, kind: output, shape index: {1}]  }
   0x1   :  { %12 = vsyncpa [#allocation3 + $0x1], 0 }
   0x2   :  { %13 = vsyncpa [#allocation4], 0 }
   0x3   :  { %15 = vsyncpa [#allocation4 + $0x1], 0 }
   0x4   :  { %16 = vsyncpa [#allocation7], 0 }
   0x5   :  { %18 = vsyncpa [#allocation7 + $0x1], 0  ;;  %s2003_s15 = smov 0   ;;  %s2005_s16 = smov 0  }
   0x6   :  { %s2007_s17 = smov 0   ;;  %s2009_s18 = smov 0  }
   0x7 LB: > { %s2024_s19 = sadd.s32 4294967295, %s1964_s18   ;;  %s1727_s20 = sadd.s32 4294967294, %s1964_s18   ;;  %s1964_s18 = sphi %s2009_s18, %s3696_s18   ;;  %s1960_s17 = sphi %s2007_s17, %s3695_s17   ;;  %s1956_s16 = sphi %s2005_s16, %s3694_s16   ;;  %s1952_s15 = sphi %s2003_s15, %s3693_s15  }
   0x8   : > { %s2028_s21 = sadd.s32 1, %s1964_s18   ;;  %s57_s22 = sadd.s32 1, %s1960_s17 }
   0x9   : > { %s54_s23 = ssub.s32 %s1964_s18, %s2028_s21  ;;  %p64_p0 = scmp.ne.s32.totalorder %s1960_s17, %s1956_s16 }
   0xa   : > { %p55_p1 = scmp.eq.s32.totalorder %s54_s23, 0  ;;  %p65_p2 = scmp.eq.s32.totalorder %s1964_s18, 0 }
   0xb   : > { %p70_p3 = scmp.ne.s32.totalorder %s1956_s16, %s1952_s15  ;;  %p71_p4 = scmp.eq.s32.totalorder %s2024_s19, 0 }
   0xc   : > { %s2040_s24 = scalar_select %p55_p1, %s1960_s17, %s57_s22  }
   0xd   : > { %p2042_p5 = por %p65_p2, %p64_p0  ;;  %p2046_p6 = por %p71_p4, %p70_p3 }
   0xe   : > { %p115_p7 = scmp.eq.s32.totalorder %s2024_s19, 1  ;;  %p121_p8 = scmp.eq.s32.totalorder %s1727_s20, 1 }
   0xf   : > { %s3570_s26 = scalar_select %p2046_p6, 1, 0 }
  0x10   : > { %p1767_p10 = scmp.lt.s32.totalorder %s1964_s18, 2  ;;  %p2053_p11 = por %p115_p7, %p64_p0 }
  0x11   : > { %p2057_p12 = por %p121_p8, %p70_p3  ;;  %s177_s29 = sand.u32 1, %s1960_s17  }
  0x12   : > { %s3571_s27 = scalar_select %p2053_p11, 1, 0 }
  0x13   : > { %s3572_s28 = scalar_select %p2057_p12, 1, 0 }
  0x14   : > { %s1749_s30 = sshll.u32 %s1964_s18, 10  ;;  %s1730_s5 = sshll.u32 %s177_s29, 6 }
  0x15   : > { %s2066_s8 = scalar_lea.hbm %s3549_s1, %s1749_s30  ;;  %s181_s9 = scalar_lea.vmem [#allocation2], %s1730_s5 }
  0x16   : > { %s188_s10 = sshll.u32 %s181_s9, 4  ;;  %p2070_p13 = pnand %p1767_p10, %p2042_p5  ;;  %s2074_s10 = int_to_ptr.vmem [resolvable:$true] %s188_s10 }
  0x17   : > { %s2076_s12 = scalar_lea.sflag [#allocation3], %s177_s29  ;;  %s1842_s13 = scalar_lea.hbm %s2066_s8, 1024 }
  0x18   : > { %p1843_p0 = scmp.ne.s32.totalorder %s2066_s8, %s1842_s13  ;;  %p1844_p1 = pneg %p2070_p13 }
  0x19   : > { %s1847_s22 = scalar_lea.hbm %s3549_s1, 2048  ;;  %p1848_p4 = scmp.lt.s32.totalorder %s2066_s8, %s3549_s1 }
  0x1a   : > { %p1845_p2 = pnand %p1844_p1, %p1843_p0  ;;  %p1849_p5 = scmp.lt.s32.totalorder %s1847_s22, %s1842_s13 }
  0x1c   : > { %p1846_p3 = pneg %p1845_p2  ;;  %p1850_p7 = por %p1849_p5, %p1848_p4 }
  0x1e   : > { %p1851_p8 = pnand %p1850_p7, %p1846_p3 }
  0x20   : > { %1854 = shalt.err (!%p1851_p8)
}
  0x21   : > { %s1855_s29 = scalar_lea.vmem %s2074_s10, 1024  ;;  %s1966_s30 = smov [#allocation2]  }
  0x22   : > { %p1856_p10 = scmp.ne.s32.totalorder %s2074_s10, %s1855_s29  ;;  %s1860_s5 = sshll.u32 %s1966_s30, 4  ;;  %s1861_s5 = int_to_ptr.vmem [resolvable:$false] %s1860_s5 }
  0x23   : > { %s1862_s6 = scalar_lea.vmem %s1861_s5, 2048  ;;  %p1863_p2 = scmp.lt.s32.totalorder %s2074_s10, %s1861_s5 }
  0x24   : > { %p1858_p9 = pnand %p1856_p10, %p1844_p1  ;;  %p1864_p12 = scmp.lt.s32.totalorder %s1862_s6, %s1855_s29 }
  0x26   : > { %p1859_p0 = pneg %p1858_p9  ;;  %p1865_p11 = por %p1864_p12, %p1863_p2 }
  0x28   : > { %p1866_p6 = pnand %p1865_p11, %p1859_p0 }
  0x2a   : > { %1869 = shalt.err (!%p1866_p6)
}
  0x2b   : > { %s1967_s7 = smov 128   ;;  %s1968_s9 = smov 8  }
  0x2c   : > { %1759 = dma.hbm_to_vmem [thread:$0]  (!%p2070_p13), %s2066_s8, 1024, %s2074_s10, %s2076_s12, %s1967_s7, %s1967_s7, %s1968_s9  }
  0x2d   : > { %p1733_p9 = scmp.ge.s32.totalorder %s1964_s18, 1  ;;  %p196_p1 = scmp.lt.s32.totalorder %s1964_s18, 3 }
  0x2f   : > { %p197_p3 = pnand %p1733_p9, %p196_p1 }
  0x31   : > { %200 = sbr.rel (%p197_p3) target bundleno = 604 (0x25c), region = 32 }
  0x36   : > { %s2100_s13 = sand.u32 1, %s1956_s16   ;;  %p3574_p6 = scmp.ne.s32.totalorder %s3570_s26, 0 }
  0x37   : > { %s1734_s14 = sshll.u32 %s2100_s13, 6  ;;  %s203_s20 = scalar_lea.sflag [#allocation3], %s2100_s13 }
  0x38   : > { %s2104_s22 = scalar_lea.vmem [#allocation2], %s1734_s14 }
  0x39   : > { %1939 = dma.done.wait (%p3574_p6), %s203_s20, 1024  }
  0x3a   : > { %1941 = vsyncadd (%p3574_p6), %s203_s20, 4294966272  ;;  %p239_p11 = scmp.lt.s32.totalorder %s2024_s19, 1  ;;  %v1969_v0 = vmov 4   ;;  %v1970_v1 = vmov 0   ;;  %v243_v2 = vlaneseq  ;;  %v247_v5 = vld [vmem:[%s3550_s2 + $0x10] sm:$0xff]  ;;  %v1971_v14 = vmov 1  }
  0x3b   : > { %1812 = vset.pattern.permute.xlu1 %v1969_v0  ;;  %1810 = vset.pattern.permute.xlu0 %v1970_v1  ;;  %v1972_v15 = vmov 3   ;;  %v1973_v24 = vmov 2   ;;  %v246_v25 = vld [vmem:[%s3550_s2 + $0x8] sm:$0xff]  ;;  %v245_v30 = vld [vmem:[%s3550_s2] sm:$0xff]  ;;  %v1974_v31 = vmov 5   ;;  %s1745_s7 = sshll.u32 %s2024_s19, 4 }
  0x3c   : > { %s240_s8 = scalar_select %p239_p11, %s2024_s19, 1  ;;  %v2114_v3 = vshrl.u32 %v243_v2, 7  ;;  %275 = vperm.xlu1 %1812, %v247_v5   ;;  %284 = vperm.xlu0 %1810, %v247_v5  }
  0x3d   : > { %s231_s9 = scalar_lea.vmem [#allocation5], %s2100_s13  ;;  %p3671_p13 = scmp.ne.s32.totalorder %s3571_s27, 0 }
  0x3e   : > { %s1736_s10 = sshll.u32 %s240_s8, 3  ;;  %v2122_v4 = vsub.s32 0, %v2114_v3  ;;  %vm249_vm15 = vcmp.lt.s32.totalorder %v2114_v3, 6  ;;  %s1604_s14 = sshll.u32 %s231_s9, 4  ;;  %s3304_s14 = int_to_ptr.vmem [resolvable:$true] %s1604_s14 }
  0x3f   : > { %s2119_s23 = scalar_lea.vmem %s3548_s0, %s1736_s10  ;;  %s3302_s8 = scalar_lea.hbm %s3551_s3, %s1745_s7 }
  0x40   : > { %v2128_v6 = vld [vmem:[%s2119_s23 + $0x3] sm:$0x1]  ;;  %v2131_v7 = vld [vmem:[%s2119_s23 + $0x4] sm:$0x1]  ;;  %v2137_v9 = vld [vmem:[%s2119_s23 + $0x5] sm:$0x1]  ;;  %1813 = vset.pattern.permute.xlu1 %v1971_v14  ;;  %1811 = vset.pattern.permute.xlu0 %v1972_v15 }
  0x41   : > { %vm715_vm0 = vcmp.gt.f32.partialorder %v2128_v6, 0.5  ;;  %v727_v8 = vrot.slane %v2128_v6, %v2122_v4  ;;  %v2140_v10 = vld [vmem:[%s2119_s23 + $0x6] sm:$0x1]  ;;  %vm868_vm1 = vcmp.gt.f32.partialorder %v2131_v7, 0.5  ;;  %v880_v11 = vrot.slane %v2131_v7, %v2122_v4  ;;  %v2149_v13 = vld [vmem:[%s2119_s23 + $0x7] sm:$0x1]  ;;  %262 = vperm.xlu1 %1813, %v247_v5   ;;  %271 = vperm.xlu0 %1811, %v247_v5  }
  0x42   : > { %vm1021_vm2 = vcmp.gt.f32.partialorder %v2137_v9, 0.5  ;;  %v1033_v12 = vrot.slane %v2137_v9, %v2122_v4  ;;  %vm1174_vm3 = vcmp.gt.f32.partialorder %v2140_v10, 0.5  ;;  %v1186_v16 = vrot.slane %v2140_v10, %v2122_v4  ;;  %v252_v32 = vld [vmem:[%s2119_s23] sm:$0x1]  ;;  %v561_v33 = vld [vmem:[%s2119_s23 + $0x2] sm:$0x1] }
  0x43   : > { %vm1327_vm4 = vcmp.gt.f32.partialorder %v2149_v13, 0.5  ;;  %v1339_v17 = vrot.slane %v2149_v13, %v2122_v4  ;;  %v716_v18 = vsel %vm715_vm0, 1, %v1970_v1  ;;  %v869_v20 = vsel %vm868_vm1, 1, %v1970_v1  ;;  %s1587_s10 = scalar_lea.sflag [#allocation4], %s2100_s13  ;;  %s1870_s11 = scalar_lea.vmem %s3304_s14, 16 }
  0x44   : > { %v720_v19 = vrot.slane %v716_v18, %v2122_v4  ;;  %v1022_v21 = vsel %vm1021_vm2, 1, %v1970_v1  ;;  %v1175_v22 = vsel %vm1174_vm3, 1, %v1970_v1  ;;  %v1328_v23 = vsel %vm1327_vm4, 1, %v1970_v1  ;;  %p1871_p12 = scmp.ne.s32.totalorder %s3304_s14, %s1870_s11  ;;  %s1976_s12 = smov [#allocation5]  }
  0x45   : > { %1814 = vset.pattern.permute.xlu1 %v1973_v24  ;;  %1815 = vset.pattern.permute.xlu0 %v1970_v1  ;;  %v873_v26 = vrot.slane %v869_v20, %v2122_v4  ;;  %v1026_v27 = vrot.slane %v1022_v21, %v2122_v4  ;;  %v1179_v28 = vrot.slane %v1175_v22, %v2122_v4  ;;  %vm253_vm5 = vcmp.gt.f32.partialorder %v252_v32, 0.5 }
  0x46   : > { %266 = vperm.xlu1 %1814, %v247_v5   ;;  %293 = vperm.xlu0 %1815, %v246_v25   ;;  %v1332_v29 = vrot.slane %v1328_v23, %v2122_v4  ;;  %vm562_vm6 = vcmp.gt.f32.partialorder %v561_v33, 0.5  ;;  %v254_v34 = vsel %vm253_vm5, 1, %v1970_v1  ;;  %v282_v37 = vrot.slane %v252_v32, %v2122_v4  ;;  %p1872_p4 = pnand %p1871_p12, %p3671_p13 }
  0x47   : > { %v563_v35 = vsel %vm562_vm6, 1, %v1970_v1  ;;  %v258_v36 = vrot.slane %v254_v34, %v2122_v4  ;;  %v574_v38 = vrot.slane %v561_v33, %v2122_v4  ;;  %vm2219_vm9 = vcmp.eq.s32.totalorder %v720_v19, 1  ;;  %v2300_v19 = vld [vmem:[%s2119_s23 + $0x1] sm:$0x1]  ;;  %s1874_s23 = sshll.u32 %s1976_s12, 4  ;;  %s1875_s23 = int_to_ptr.vmem [resolvable:$false] %s1874_s23 }
  0x48   : > { %v567_v39 = vrot.slane %v563_v35, %v2122_v4  ;;  %vm2225_vm10 = vcmp.eq.s32.totalorder %v873_v26, 1  ;;  %vm2229_vm11 = vcmp.eq.s32.totalorder %v1026_v27, 1  ;;  %vm2233_vm12 = vcmp.eq.s32.totalorder %v1179_v28, 1  ;;  %p1873_p5 = pneg %p1872_p4  ;;  %s1876_s26 = scalar_lea.vmem %s1875_s23, 32 }
  0x49   : > { %vm2199_vm7 = vcmp.eq.s32.totalorder %v258_v36, 1  ;;  %vm2237_vm13 = vcmp.eq.s32.totalorder %v1332_v29, 1  ;;  %vm409_vm14 = vcmp.gt.f32.partialorder %v2300_v19, 0.5  ;;  %vm248_vm0 = vcmp.eq.s32.totalorder %v2114_v3, 4  ;;  %p1877_p7 = scmp.lt.s32.totalorder %s3304_s14, %s1875_s23  ;;  %p1878_p8 = scmp.lt.s32.totalorder %s1876_s26, %s1870_s11 }
  0x4a   : > { %1816 = vset.pattern.permute.xlu1 %v1971_v14  ;;  %1818 = vset.pattern.permute.xlu0 %v1973_v24  ;;  %vm2215_vm8 = vcmp.eq.s32.totalorder %v567_v39, 1  ;;  %v410_v27 = vsel %vm409_vm14, 1, %v1970_v1  ;;  %v1975_v35 = vmov -10000000.0   ;;  %vm310_vm2 = vcmp.eq.s32.totalorder %v2114_v3, 0 }
  0x4b   : > { %313 = vperm.xlu1 %1816, %v246_v25   ;;  %332 = vperm.xlu0 %1818, %v246_v25   ;;  %v250_v36 = vsel %vm249_vm15, -10000.0, %v1975_v35  ;;  %vm329_vm3 = vcmp.eq.s32.totalorder %v2114_v3, 1  ;;  %vm348_vm4 = vcmp.eq.s32.totalorder %v2114_v3, 2  ;;  %vm367_vm5 = vcmp.eq.s32.totalorder %v2114_v3, 3  ;;  %p1879_p10 = por %p1878_p8, %p1877_p7 }
  0x4c   : > { %v2350_v53 = vsel %vm248_vm0, 0.0, %v250_v36  ;;  %vm404_vm6 = vcmp.eq.s32.totalorder %v2114_v3, 5 }
  0x4d   : > { %p1880_p0 = pnand %p1879_p10, %p1873_p5 }
  0x4f   : > { %1817 = vset.pattern.permute.xlu1 %v1970_v1  ;;  %337 = vperm.xlu0 %1818, %v245_v30   ;;  %v414_v1 = vrot.slane %v410_v27, %v2122_v4 }
  0x50   : > { %299 = vperm.xlu1 %1817, %v245_v30  }
  0x51   : > { %vm2390_vm1 = vcmp.eq.s32.totalorder %v414_v1, 1 }
  0x53   : > { %1822 = vset.pattern.permute.xlu0 %v1972_v15 }
  0x54   : > { %1819 = vset.pattern.permute.xlu1 %v1971_v14  ;;  %356 = vperm.xlu0 %1822, %v245_v30  }
  0x55   : > { %318 = vperm.xlu1 %1819, %v245_v30  }
  0x58   : > { %1825 = vset.pattern.permute.xlu0 %v1974_v31 }
  0x59   : > { %1820 = vset.pattern.permute.xlu1 %v1972_v15  ;;  %393 = vperm.xlu0 %1825, %v245_v30  }
  0x5a   : > { %351 = vperm.xlu1 %1820, %v246_v25  }
  0x5e   : > { %1821 = vset.pattern.permute.xlu1 %v1969_v0 }
  0x5f   : > { %370 = vperm.xlu1 %1821, %v246_v25  }
  0x63   : > { %1823 = vset.pattern.permute.xlu1 %v1974_v31 }
  0x64   : > { %388 = vperm.xlu1 %1823, %v246_v25  }
  0x68   : > { %1824 = vset.pattern.permute.xlu1 %v1969_v0 }
  0x69   : > { %375 = vperm.xlu1 %1824, %v245_v30  }
  0xb7   : > { %v2191_v40 = vpop.permute.xlu1 %275  ;;  %v2193_v41 = vpop.permute.xlu0 %284 }
  0xb8   : > { %v728_v42 = vmul.f32 %v727_v8, %v2193_v41  ;;  %v881_v44 = vmul.f32 %v880_v11, %v2193_v41  ;;  %v1034_v45 = vmul.f32 %v1033_v12, %v2193_v41  ;;  %v1187_v46 = vmul.f32 %v1186_v16, %v2193_v41 }
  0xb9   : > { %v1340_v47 = vmul.f32 %v1339_v17, %v2193_v41  ;;  %v287_v48 = vmul.f32 %v2193_v41, %v282_v37  ;;  %v575_v49 = vmul.f32 %v574_v38, %v2193_v41 }
  0xbc   : > { %v2223_v52 = vpop.permute.xlu1 %262  ;;  %v2241_v57 = vpop.permute.xlu0 %271 }
  0xbd   : > { %v278_v58 = vsel %vm2199_vm7, %v2241_v57, %v2191_v40  ;;  %v570_v59 = vsel %vm2215_vm8, %v2241_v57, %v2191_v40  ;;  %v723_v60 = vsel %vm2219_vm9, %v2241_v57, %v2191_v40  ;;  %v876_v0 = vsel %vm2225_vm10, %v2241_v57, %v2191_v40 }
  0xbe   : > { %v288_v61 = vadd.f32 %v287_v48, %v278_v58  ;;  %v576_v62 = vadd.f32 %v575_v49, %v570_v59  ;;  %v729_v63 = vadd.f32 %v728_v42, %v723_v60  ;;  %v1029_v2 = vsel %vm2229_vm11, %v2241_v57, %v2191_v40 }
  0xbf   : > { %v1182_v5 = vsel %vm2233_vm12, %v2241_v57, %v2191_v40  ;;  %v1335_v6 = vsel %vm2237_vm13, %v2241_v57, %v2191_v40  ;;  %v882_v7 = vadd.f32 %v881_v44, %v876_v0  ;;  %v1035_v8 = vadd.f32 %v1034_v45, %v1029_v2 }
  0xc0   : > { %1826 = vtanh.f32 %v288_v61  ;;  %v1188_v9 = vadd.f32 %v1187_v46, %v1182_v5  ;;  %v1341_v10 = vadd.f32 %v1340_v47, %v1335_v6 }
  0xc1   : > { %v2271_v11 = vpop.permute.xlu1 %266  ;;  %1828 = vtanh.f32 %v576_v62  ;;  %v2311_v24 = vpop.permute.xlu0 %293 }
  0xc2   : > { %v569_v12 = vsel %vm2215_vm8, %v2223_v52, %v2271_v11  ;;  %1830 = vtanh.f32 %v729_v63  ;;  %v722_v13 = vsel %vm2219_vm9, %v2223_v52, %v2271_v11  ;;  %v875_v14 = vsel %vm2225_vm10, %v2223_v52, %v2271_v11 }
  0xc3   : > { %v1028_v15 = vsel %vm2229_vm11, %v2223_v52, %v2271_v11  ;;  %1832 = vtanh.f32 %v882_v7  ;;  %v1181_v16 = vsel %vm2233_vm12, %v2223_v52, %v2271_v11  ;;  %v1334_v17 = vsel %vm2237_vm13, %v2223_v52, %v2271_v11 }
  0xc4   : > { %1834 = vtanh.f32 %v1035_v8  ;;  %v269_v22 = vsel %vm2199_vm7, %v2223_v52, %v2271_v11 }
  0xc5   : > { %1836 = vtanh.f32 %v1188_v9 }
  0xc6   : > { %v2297_v18 = vpop.permute.xlu1 %313  ;;  %1838 = vtanh.f32 %v1341_v10  ;;  %v2340_v48 = vpop.permute.xlu0 %332  ;;  %v421_v10 = vrot.slane %v2300_v19, %v2122_v4 }
  0xcb   : > { %v2302_v20 = vpop.permute.xlu1 %299 }
  0xcd   : > { %v1827_v21 = vpop.eup %1826 }
  0xce   : > { %v2309_v23 = vmul.f32 %v1827_v21, %v269_v22  ;;  %v1829_v25 = vpop.eup %1828 }
  0xcf   : > { %v1831_v26 = vpop.eup %1830  ;;  %v2315_v28 = vmul.f32 %v1829_v25, %v569_v12 }
  0xd0   : > { %v296_v29 = vmul.f32 %v2311_v24, %v2309_v23  ;;  %v1833_v30 = vpop.eup %1832  ;;  %v2319_v31 = vmul.f32 %v1831_v26, %v722_v13  ;;  %v2321_v32 = vpop.permute.xlu1 %318  ;;  %v316_v54 = vmul.f32 %v2297_v18, %v2309_v23 }
  0xd1   : > { %v1835_v33 = vpop.eup %1834  ;;  %v2323_v34 = vmul.f32 %v1833_v30, %v875_v14  ;;  %v422_v30 = vmul.f32 %v421_v10, %v2193_v41 }
  0xd2   : > { %v1837_v37 = vpop.eup %1836  ;;  %v2327_v38 = vmul.f32 %v1835_v33, %v1028_v15  ;;  %v754_v39 = vmul.f32 %v2319_v31, %v2297_v18  ;;  %v732_v42 = vmul.f32 %v2319_v31, %v2311_v24  ;;  %v302_v47 = vadd.f32 %v2302_v20, %v296_v29  ;;  %v2397_v15 = vpop.permute.xlu0 %337 }
  0xd3   : > { %v1839_v43 = vpop.eup %1838  ;;  %v2333_v44 = vmul.f32 %v1837_v37, %v1181_v16  ;;  %v907_v45 = vmul.f32 %v2323_v34, %v2297_v18  ;;  %v885_v46 = vmul.f32 %v2323_v34, %v2311_v24  ;;  %v776_v5 = vmul.f32 %v2319_v31, %v2340_v48 }
  0xd4   : > { %v2342_v49 = vmul.f32 %v1839_v43, %v1334_v17  ;;  %v1060_v50 = vmul.f32 %v2327_v38, %v2297_v18  ;;  %v1038_v51 = vmul.f32 %v2327_v38, %v2311_v24  ;;  %v2359_v58 = vadd.f32 %v732_v42, %v2302_v20 }
  0xd5   : > { %v1213_v55 = vmul.f32 %v2333_v44, %v2297_v18  ;;  %v1191_v56 = vmul.f32 %v2333_v44, %v2311_v24  ;;  %v2366_v61 = vadd.f32 %v885_v46, %v2302_v20  ;;  %v2371_v63 = vpop.permute.xlu1 %351  ;;  %v303_v0 = vadd.f32 %v302_v47, %v2350_v53 }
  0xd6   : > { %v1366_v59 = vmul.f32 %v2342_v49, %v2297_v18  ;;  %v1344_v60 = vmul.f32 %v2342_v49, %v2311_v24  ;;  %v2369_v62 = vadd.f32 %v1038_v51, %v2302_v20  ;;  %v929_v7 = vmul.f32 %v2323_v34, %v2340_v48  ;;  %v2442_v43 = vpop.permute.xlu0 %356 }
  0xd7   : > { %v2375_v2 = vadd.f32 %v1191_v56, %v2302_v20  ;;  %v1082_v8 = vmul.f32 %v2327_v38, %v2340_v48  ;;  %v1235_v9 = vmul.f32 %v2333_v44, %v2340_v48  ;;  %v1388_v13 = vmul.f32 %v2342_v49, %v2340_v48 }
  0xd8   : > { %v2380_v6 = vadd.f32 %v1344_v60, %v2302_v20  ;;  %v321_v14 = vadd.f32 %v2321_v32, %v316_v54  ;;  %v335_v16 = vmul.f32 %v2340_v48, %v2309_v23  ;;  %v2402_v17 = vadd.f32 %v754_v39, %v2321_v32 }
  0xd9   : > { %3589 = vst [vmem:[#allocation11_spill] sm:$0xff] %v2375_v2  ;;  %v2405_v21 = vadd.f32 %v907_v45, %v2321_v32  ;;  %v2408_v4 = vadd.f32 %v1060_v50, %v2321_v32  ;;  %v304_v19 = vrot.slane %v303_v0, 4  ;;  %v2411_v22 = vadd.f32 %v1213_v55, %v2321_v32 }
  0xda   : > { %3590 = vst [vmem:[#allocation12_spill] sm:$0xff] %v2380_v6  ;;  %v2414_v25 = vadd.f32 %v1366_v59, %v2321_v32  ;;  %v322_v26 = vadd.f32 %v321_v14, %v2350_v53  ;;  %v2418_v27 = vadd.f32 %v776_v5, %v2397_v15  ;;  %v2420_v29 = vpop.permute.xlu1 %370  ;;  %v417_v33 = vsel %vm2390_vm1, %v2241_v57, %v2191_v40  ;;  %v2476_v14 = vpop.permute.xlu0 %393 }
  0xdb   : > { %3593 = vst [vmem:[#allocation13_spill] sm:$0xff] %v2411_v22  ;;  %v2428_v35 = vadd.f32 %v929_v7, %v2397_v15  ;;  %v2431_v36 = vadd.f32 %v1082_v8, %v2397_v15  ;;  %v340_v37 = vadd.f32 %v2397_v15, %v335_v16  ;;  %v2435_v1 = vadd.f32 %v1235_v9, %v2397_v15 }
  0xdc   : > { %3594 = vst [vmem:[#allocation14_spill] sm:$0xff] %v2414_v25  ;;  %v2438_v39 = vadd.f32 %v1388_v13, %v2397_v15  ;;  %v354_v41 = vmul.f32 %v2371_v63, %v2309_v23  ;;  %v305_v42 = vmax.f32 %v303_v0, %v304_v19  ;;  %v323_v40 = vrot.slane %v322_v26, 4 }
  0xdd   : > { %3595 = vst [vmem:[#allocation15_spill] sm:$0xff] %v2435_v1  ;;  %v798_v57 = vmul.f32 %v2319_v31, %v2371_v63  ;;  %v951_v45 = vmul.f32 %v2323_v34, %v2371_v63  ;;  %v1104_v46 = vmul.f32 %v2327_v38, %v2371_v63  ;;  %v423_v47 = vadd.f32 %v422_v30, %v417_v33 }
  0xde   : > { %3596 = vst [vmem:[#allocation16_spill] sm:$0xff] %v2438_v39  ;;  %v1257_v50 = vmul.f32 %v2333_v44, %v2371_v63  ;;  %v1410_v51 = vmul.f32 %v2342_v49, %v2371_v63  ;;  %v341_v54 = vadd.f32 %v340_v37, %v2350_v53  ;;  %v359_v55 = vadd.f32 %v2442_v43, %v354_v41 }
  0xdf   : > { %v2456_v56 = vpop.permute.xlu1 %388  ;;  %v306_v59 = vrot.slane %v305_v42, 2  ;;  %v2459_v60 = vadd.f32 %v798_v57, %v2442_v43  ;;  %v2462_v0 = vadd.f32 %v951_v45, %v2442_v43  ;;  %v2465_v5 = vadd.f32 %v1104_v46, %v2442_v43 }
  0xe0   : > { %v324_v7 = vmax.f32 %v322_v26, %v323_v40  ;;  %v360_v8 = vadd.f32 %v359_v55, %v2350_v53  ;;  %v2469_v9 = vadd.f32 %v1257_v50, %v2442_v43  ;;  %v2472_v10 = vadd.f32 %v1410_v51, %v2442_v43 }
  0xe1   : > { %3597 = vst [vmem:[#allocation17_spill] sm:$0xff] %v2465_v5  ;;  %1840 = vtanh.f32 %v423_v47  ;;  %v391_v13 = vmul.f32 %v2456_v56, %v2309_v23  ;;  %v342_v16 = vrot.slane %v341_v54, 4  ;;  %v2480_v30 = vmul.f32 %v2319_v31, %v2456_v56 }
  0xe2   : > { %3598 = vst [vmem:[#allocation18_spill] sm:$0xff] %v2469_v9  ;;  %3599 = vst [vmem:[#allocation19_spill] sm:$0xff] %v2472_v10  ;;  %v361_v19 = vrot.slane %v360_v8, 4  ;;  %v2484_v26 = vmul.f32 %v2323_v34, %v2456_v56  ;;  %v307_v33 = vmax.f32 %v305_v42, %v306_v59  ;;  %v2488_v37 = vmul.f32 %v2327_v38, %v2456_v56 }
  0xe3   : > { %v2492_v41 = vmul.f32 %v2333_v44, %v2456_v56  ;;  %v2496_v40 = vmul.f32 %v2342_v49, %v2456_v56  ;;  %v325_v57 = vrot.slane %v324_v7, 2  ;;  %v396_v46 = vadd.f32 %v2476_v14, %v391_v13 }
  0xe4   : > { %v362_v45 = vmax.f32 %v360_v8, %v361_v19  ;;  %v343_v47 = vmax.f32 %v341_v54, %v342_v16  ;;  %v308_v42 = vrot.slane %v307_v33, 1  ;;  %v2500_v51 = vpop.permute.xlu1 %375  ;;  %v373_v39 = vmul.f32 %v2420_v29, %v2309_v23 }
  0xe5   : > { %3600 = vst [vmem:[#allocation20_spill] sm:$0xff] %v2492_v41  ;;  %3601 = vst [vmem:[#allocation21_spill] sm:$0xff] %v2496_v40  ;;  %v397_v50 = vadd.f32 %v396_v46, %v2350_v53  ;;  %v326_v55 = vmax.f32 %v324_v7, %v325_v57  ;;  %v820_v25 = vmul.f32 %v2319_v31, %v2420_v29 }
  0xe6   : > { %v363_v59 = vrot.slane %v362_v45, 2  ;;  %v973_v8 = vmul.f32 %v2323_v34, %v2420_v29  ;;  %v1126_v54 = vmul.f32 %v2327_v38, %v2420_v29  ;;  %v1279_v13 = vmul.f32 %v2333_v44, %v2420_v29 }
  0xe7   : > { %v398_v10 = vrot.slane %v397_v50, 4  ;;  %v344_v16 = vrot.slane %v343_v47, 2  ;;  %v1432_v7 = vmul.f32 %v2342_v49, %v2420_v29  ;;  %v378_v57 = vadd.f32 %v2500_v51, %v373_v39 }
  0xe8   : > { %v2516_v23 = vadd.f32 %v820_v25, %v2500_v51  ;;  %v2519_v31 = vadd.f32 %v973_v8, %v2500_v51  ;;  %v327_v34 = vrot.slane %v326_v55, 1  ;;  %v2523_v38 = vadd.f32 %v1126_v54, %v2500_v51 }
  0xe9   : > { %v399_v19 = vmax.f32 %v397_v50, %v398_v10  ;;  %v379_v46 = vadd.f32 %v378_v57, %v2350_v53  ;;  %v364_v44 = vmax.f32 %v362_v45, %v363_v59  ;;  %v2526_v10 = vadd.f32 %v1279_v13, %v2500_v51 }
  0xea   : > { %3602 = vst [vmem:[#allocation22_spill] sm:$0xff] %v2523_v38  ;;  %v2529_v49 = vadd.f32 %v1432_v7, %v2500_v51  ;;  %v309_v25 = vmax.f32 %v307_v33, %v308_v42  ;;  %v345_v50 = vmax.f32 %v343_v47, %v344_v16  ;;  %v328_v53 = vmax.f32 %v326_v55, %v327_v34 }
  0xeb   : > { %v400_v6 = vrot.slane %v399_v19, 2  ;;  %3603 = vst [vmem:[#allocation23_spill] sm:$0xff] %v2526_v10  ;;  %v380_v9 = vrot.slane %v379_v46, 4  ;;  %v365_v54 = vrot.slane %v364_v44, 1  ;;  %v416_v45 = vsel %vm2390_vm1, %v2223_v52, %v2271_v11 }
  0xec   : > { %3604 = vst [vmem:[#allocation24_spill] sm:$0xff] %v2529_v49  ;;  %v311_v59 = vsel %vm310_vm2, %v309_v25, -10000000.0  ;;  %v346_v13 = vrot.slane %v345_v50, 1 }
  0xed   : > { %v381_v8 = vmax.f32 %v379_v46, %v380_v9  ;;  %v401_v57 = vmax.f32 %v399_v19, %v400_v6  ;;  %v330_v9 = vsel %vm329_vm3, %v328_v53, %v311_v59  ;;  %v366_v55 = vmax.f32 %v364_v44, %v365_v54 }
  0xee   : > { %v1841_v39 = vpop.eup %1840  ;;  %v347_v16 = vmax.f32 %v345_v50, %v346_v13  ;;  %v406_v50 = vld [vmem:[%s2104_s22] sm:$0xff] }
  0xef   : > { %v382_v33 = vrot.slane %v381_v8, 2  ;;  %v425_v47 = vmul.f32 %v1841_v39, %v416_v45  ;;  %v402_v6 = vrot.slane %v401_v57, 1 }
  0xf0   : > { %v349_v7 = vsel %vm348_vm4, %v347_v16, %v330_v9 }
  0xf1   : > { %v383_v42 = vmax.f32 %v381_v8, %v382_v33  ;;  %v448_v52 = vmul.f32 %v425_v47, %v2297_v18  ;;  %v426_v11 = vmul.f32 %v425_v47, %v2311_v24  ;;  %v470_v19 = vmul.f32 %v425_v47, %v2340_v48 }
  0xf2   : > { %v492_v34 = vmul.f32 %v425_v47, %v2371_v63  ;;  %v536_v44 = vmul.f32 %v425_v47, %v2456_v56  ;;  %v403_v39 = vmax.f32 %v401_v57, %v402_v6  ;;  %v368_v25 = vsel %vm367_vm5, %v366_v55, %v349_v7 }
  0xf3   : > { %v384_v12 = vrot.slane %v383_v42, 1  ;;  %v427_v53 = vadd.f32 %v426_v11, %v2302_v20  ;;  %v514_v54 = vmul.f32 %v425_v47, %v2420_v29  ;;  %v449_v59 = vadd.f32 %v448_v52, %v2321_v32 }
  0xf4   : > { %v471_v13 = vadd.f32 %v470_v19, %v2397_v15  ;;  %v493_v57 = vadd.f32 %v492_v34, %v2442_v43 }
  0xf5   : > { %v385_v46 = vmax.f32 %v383_v42, %v384_v12  ;;  %v537_v42 = vadd.f32 %v536_v44, %v2476_v14  ;;  %v515_v9 = vadd.f32 %v514_v54, %v2500_v51  ;;  %v579_v54 = vmul.f32 %v2315_v28, %v2311_v24 }
  0xf7   : > { %v386_v8 = vsel %vm248_vm0, %v385_v46, %v368_v25 }
  0xf8   : > { %v405_v45 = vsel %vm404_vm6, %v403_v39, %v386_v8 }
  0xf9   : > { %v407_v33 = vadd.f32 %v406_v50, %v405_v45 }
  0xfb   : > { %v428_v55 = vadd.f32 %v427_v53, %v407_v33  ;;  %v450_v6 = vadd.f32 %v449_v59, %v407_v33  ;;  %v472_v16 = vadd.f32 %v471_v13, %v407_v33  ;;  %v2565_v12 = vadd.f32 %v493_v57, %v407_v33 }
  0xfc   : > { %v2567_v47 = vadd.f32 %v515_v9, %v407_v33  ;;  %v2569_v11 = vadd.f32 %v537_v42, %v407_v33  ;;  %v601_v53 = vmul.f32 %v2315_v28, %v2297_v18  ;;  %v623_v9 = vmul.f32 %v2315_v28, %v2340_v48 }
  0xfd   : > { %v429_v7 = vrot.slane %v428_v55, 4  ;;  %v451_v52 = vrot.slane %v450_v6, 4  ;;  %v473_v46 = vrot.slane %v472_v16, 4  ;;  %v495_v19 = vrot.slane %v2565_v12, 4 }
  0xfe   : > { %v517_v34 = vrot.slane %v2567_v47, 4  ;;  %v539_v44 = vrot.slane %v2569_v11, 4  ;;  %v602_v41 = vadd.f32 %v601_v53, %v2321_v32  ;;  %v624_v48 = vadd.f32 %v623_v9, %v2397_v15 }
  0xff   : > { %v430_v39 = vmax.f32 %v428_v55, %v429_v7  ;;  %v452_v25 = vmax.f32 %v450_v6, %v451_v52  ;;  %v474_v50 = vmax.f32 %v472_v16, %v473_v46  ;;  %v496_v8 = vmax.f32 %v2565_v12, %v495_v19 }
 0x100   : > { %v518_v45 = vmax.f32 %v2567_v47, %v517_v34  ;;  %v540_v59 = vmax.f32 %v2569_v11, %v539_v44  ;;  %v645_v7 = vmul.f32 %v2315_v28, %v2371_v63  ;;  %v580_v34 = vadd.f32 %v579_v54, %v2302_v20 }
 0x101   : > { %v431_v13 = vrot.slane %v430_v39, 2  ;;  %v453_v57 = vrot.slane %v452_v25, 2  ;;  %v475_v33 = vrot.slane %v474_v50, 2  ;;  %v497_v42 = vrot.slane %v496_v8, 2 }
 0x102   : > { %v519_v52 = vrot.slane %v518_v45, 2  ;;  %v541_v46 = vrot.slane %v540_v59, 2  ;;  %v646_v5 = vadd.f32 %v645_v7, %v2442_v43  ;;  %v689_v20 = vmul.f32 %v2315_v28, %v2456_v56 }
 0x103   : > { %v432_v18 = vmax.f32 %v430_v39, %v431_v13  ;;  %v454_v19 = vmax.f32 %v452_v25, %v453_v57  ;;  %v476_v49 = vmax.f32 %v474_v50, %v475_v33  ;;  %v498_v24 = vmax.f32 %v496_v8, %v497_v42 }
 0x104   : > { %v520_v10 = vmax.f32 %v518_v45, %v519_v52  ;;  %v542_v44 = vmax.f32 %v540_v59, %v541_v46  ;;  %v667_v15 = vmul.f32 %v2315_v28, %v2420_v29  ;;  %v2625_v53 = vadd.f32 %v2480_v30, %v2476_v14 }
 0x105   : > { %v433_v1 = vrot.slane %v432_v18, 1  ;;  %v455_v22 = vrot.slane %v454_v19, 1  ;;  %v477_v2 = vrot.slane %v476_v49, 1  ;;  %v499_v40 = vrot.slane %v498_v24, 1 }
 0x106   : > { %v521_v38 = vrot.slane %v520_v10, 1  ;;  %v543_v63 = vrot.slane %v542_v44, 1  ;;  %v668_v13 = vadd.f32 %v667_v15, %v2500_v51 }
 0x107   : > { %v434_v39 = vmax.f32 %v432_v18, %v433_v1  ;;  %v456_v25 = vmax.f32 %v454_v19, %v455_v22  ;;  %v478_v50 = vmax.f32 %v476_v49, %v477_v2  ;;  %v500_v8 = vmax.f32 %v498_v24, %v499_v40 }
 0x108   : > { %v522_v54 = vmax.f32 %v520_v10, %v521_v38  ;;  %v2591_v45 = vmax.f32 %v542_v44, %v543_v63  ;;  %v1737_v10 = vld [vmem:[%s2104_s22 + $0x8] sm:$0xff] }
 0x109   : > { %vm435_vm7 = vcmp.eq.f32.partialorder %v428_v55, %v434_v39  ;;  %v446_v32 = vsel %vm310_vm2, %v434_v39, -10000000.0  ;;  %vm457_vm8 = vcmp.eq.f32.partialorder %v450_v6, %v456_v25  ;;  %vm479_vm9 = vcmp.eq.f32.partialorder %v472_v16, %v478_v50 }
 0x10a   : > { %v436_v22 = vsel %vm435_vm7, %v2114_v3, 8  ;;  %v458_v2 = vsel %vm457_vm8, %v2114_v3, 8  ;;  %v468_v1 = vsel %vm329_vm3, %v456_v25, %v446_v32  ;;  %v2602_v40 = vsel %vm479_vm9, %v2114_v3, 8 }
 0x10b   : > { %v437_v43 = vrot.slane %v436_v22, 4  ;;  %v459_v56 = vrot.slane %v458_v2, 4  ;;  %v490_v38 = vsel %vm348_vm4, %v478_v50, %v468_v1  ;;  %vm501_vm10 = vcmp.eq.f32.partialorder %v2565_v12, %v500_v8 }
 0x10c   : > { %v512_v28 = vsel %vm367_vm5, %v500_v8, %v490_v38  ;;  %vm523_vm11 = vcmp.eq.f32.partialorder %v2567_v47, %v522_v54  ;;  %vm545_vm12 = vcmp.eq.f32.partialorder %v2569_v11, %v2591_v45  ;;  %v2614_v29 = vsel %vm501_vm10, %v2114_v3, 8 }
 0x10d   : > { %vm438_vm13 = vcmp.lt.s32.totalorder %v436_v22, %v437_v43  ;;  %v524_v49 = vsel %vm523_vm11, %v2114_v3, 8  ;;  %v534_v55 = vsel %vm248_vm0, %v522_v54, %v512_v28  ;;  %v690_v6 = vadd.f32 %v689_v20, %v2476_v14 }
 0x10e   : > { %v525_v16 = vrot.slane %v524_v49, 4  ;;  %v556_v12 = vsel %vm404_vm6, %v2591_v45, %v534_v55  ;;  %v439_v47 = vsel %vm438_vm13, %v436_v22, %v437_v43  ;;  %v481_v33 = vrot.slane %v2602_v40, 4 }
 0x10f   : > { %v560_v59 = vadd.f32 %v1737_v10, %v556_v12  ;;  %v440_v57 = vrot.slane %v439_v47, 2  ;;  %v503_v42 = vrot.slane %v2614_v29, 4  ;;  %vm2630_vm15 = vcmp.lt.s32.totalorder %v458_v2, %v459_v56 }
 0x110   : > { %vm526_vm14 = vcmp.lt.s32.totalorder %v524_v49, %v525_v16  ;;  %vm2657_vm8 = vcmp.lt.s32.totalorder %v2602_v40, %v481_v33 }
 0x111   : > { %v527_v7 = vsel %vm526_vm14, %v524_v49, %v525_v16  ;;  %v2634_v52 = vadd.f32 %v580_v34, %v560_v59  ;;  %v2636_v46 = vadd.f32 %v602_v41, %v560_v59  ;;  %v2638_v30 = vadd.f32 %v624_v48, %v560_v59 }
 0x112   : > { %v528_v18 = vrot.slane %v527_v7, 2  ;;  %v2640_v19 = vadd.f32 %v646_v5, %v560_v59  ;;  %v669_v51 = vadd.f32 %v668_v13, %v560_v59  ;;  %v2642_v24 = vadd.f32 %v690_v6, %v560_v59 }
 0x113   : > { %v582_v44 = vrot.slane %v2634_v52, 4  ;;  %v604_v63 = vrot.slane %v2636_v46, 4  ;;  %v626_v39 = vrot.slane %v2638_v30, 4  ;;  %vm2647_vm1 = vcmp.lt.s32.totalorder %v439_v47, %v440_v57 }
 0x114   : > { %vm529_vm7 = vcmp.lt.s32.totalorder %v527_v7, %v528_v18  ;;  %v648_v41 = vrot.slane %v2640_v19, 4  ;;  %v670_v34 = vrot.slane %v669_v51, 4  ;;  %v692_v5 = vrot.slane %v2642_v24, 4 }
 0x115   : > { %v583_v48 = vmax.f32 %v2634_v52, %v582_v44  ;;  %v605_v50 = vmax.f32 %v2636_v46, %v604_v63  ;;  %v627_v20 = vmax.f32 %v2638_v30, %v626_v39  ;;  %v530_v54 = vsel %vm529_vm7, %v527_v7, %v528_v18 }
 0x116   : > { %v649_v32 = vmax.f32 %v2640_v19, %v648_v41  ;;  %v671_v15 = vmax.f32 %v669_v51, %v670_v34  ;;  %v693_v22 = vmax.f32 %v2642_v24, %v692_v5  ;;  %v442_v10 = vsel %vm2647_vm1, %v439_v47, %v440_v57 }
 0x117   : > { %v584_v1 = vrot.slane %v583_v48, 2  ;;  %v606_v43 = vrot.slane %v605_v50, 2  ;;  %v628_v38 = vrot.slane %v627_v20, 2  ;;  %v461_v6 = vsel %vm2630_vm15, %v458_v2, %v459_v56 }
 0x118   : > { %v650_v28 = vrot.slane %v649_v32, 2  ;;  %v672_v49 = vrot.slane %v671_v15, 2  ;;  %v694_v55 = vrot.slane %v693_v22, 2  ;;  %v531_v16 = vrot.slane %v530_v54, 1 }
 0x119   : > { %v585_v12 = vmax.f32 %v583_v48, %v584_v1  ;;  %v607_v59 = vmax.f32 %v605_v50, %v606_v43  ;;  %v629_v13 = vmax.f32 %v627_v20, %v628_v38  ;;  %v443_v63 = vrot.slane %v442_v10, 1  ;;  %v1738_v38 = vld [vmem:[%s2104_s22 + $0x10] sm:$0xff] }
 0x11a   : > { %v651_v7 = vmax.f32 %v649_v32, %v650_v28  ;;  %v673_v18 = vmax.f32 %v671_v15, %v672_v49  ;;  %v695_v44 = vmax.f32 %v693_v22, %v694_v55  ;;  %v483_v47 = vsel %vm2657_vm8, %v2602_v40, %v481_v33 }
 0x11b   : > { %v586_v39 = vrot.slane %v585_v12, 1  ;;  %v608_v41 = vrot.slane %v607_v59, 1  ;;  %v630_v34 = vrot.slane %v629_v13, 1  ;;  %v462_v9 = vrot.slane %v461_v6, 2 }
 0x11c   : > { %v652_v57 = vrot.slane %v651_v7, 1  ;;  %v674_v25 = vrot.slane %v673_v18, 1  ;;  %v696_v5 = vrot.slane %v695_v44, 1  ;;  %vm444_vm9 = vcmp.lt.s32.totalorder %v442_v10, %v443_v63 }
 0x11d   : > { %v587_v2 = vmax.f32 %v585_v12, %v586_v39  ;;  %v2670_v56 = vmax.f32 %v607_v59, %v608_v41  ;;  %v2672_v48 = vmax.f32 %v629_v13, %v630_v34  ;;  %vm2674_vm10 = vcmp.lt.s32.totalorder %v530_v54, %v531_v16 }
 0x11e   : > { %v2678_v20 = vmax.f32 %v651_v7, %v652_v57  ;;  %v675_v32 = vmax.f32 %v673_v18, %v674_v25  ;;  %vm2683_vm11 = vcmp.lt.s32.totalorder %v2614_v29, %v503_v42  ;;  %v445_v15 = vsel %vm444_vm9, %v442_v10, %v443_v63 }
 0x11f   : > { %vm588_vm13 = vcmp.eq.f32.partialorder %v2634_v52, %v587_v2  ;;  %v599_v33 = vsel %vm310_vm2, %v587_v2, -10000000.0  ;;  %vm610_vm14 = vcmp.eq.f32.partialorder %v2636_v46, %v2670_v56  ;;  %vm632_vm15 = vcmp.eq.f32.partialorder %v2638_v30, %v2672_v48 }
 0x120   : > { %v621_v8 = vsel %vm329_vm3, %v2670_v56, %v599_v33  ;;  %vm654_vm1 = vcmp.eq.f32.partialorder %v2640_v19, %v2678_v20  ;;  %vm676_vm7 = vcmp.eq.f32.partialorder %v669_v51, %v675_v32  ;;  %v2703_v43 = vmax.f32 %v695_v44, %v696_v5 }
 0x121   : > { %v643_v22 = vsel %vm348_vm4, %v2672_v48, %v621_v8  ;;  %v677_v1 = vsel %vm676_vm7, %v2114_v3, 8  ;;  %vm463_vm8 = vcmp.lt.s32.totalorder %v461_v6, %v462_v9  ;;  %v484_v12 = vrot.slane %v483_v47, 2 }
 0x122   : > { %v665_v28 = vsel %vm367_vm5, %v2678_v20, %v643_v22  ;;  %v678_v49 = vrot.slane %v677_v1, 4  ;;  %v464_v55 = vsel %vm463_vm8, %v461_v6, %v462_v9  ;;  %v2711_v51 = vsel %vm2674_vm10, %v530_v54, %v531_v16 }
 0x123   : > { %v2716_v10 = vsel %vm588_vm13, %v2114_v3, 8  ;;  %v687_v59 = vsel %vm248_vm0, %v675_v32, %v665_v28  ;;  %v465_v13 = vrot.slane %v464_v55, 1  ;;  %v447_v6 = vsel %vm310_vm2, %v445_v15, 8 }
 0x124   : > { %vm679_vm9 = vcmp.lt.s32.totalorder %v677_v1, %v678_v49  ;;  %v709_v7 = vsel %vm404_vm6, %v2703_v43, %v687_v59  ;;  %vm485_vm7 = vcmp.lt.s32.totalorder %v483_v47, %v484_v12  ;;  %v505_v52 = vsel %vm2683_vm11, %v2614_v29, %v503_v42 }
 0x125   : > { %v713_v54 = vadd.f32 %v1738_v38, %v709_v7  ;;  %vm466_vm10 = vcmp.lt.s32.totalorder %v464_v55, %v465_v13  ;;  %v486_v16 = vsel %vm485_vm7, %v483_v47, %v484_v12  ;;  %v590_v18 = vrot.slane %v2716_v10, 4 }
 0x126   : > { %v2731_v44 = vsel %vm679_vm9, %v677_v1, %v678_v49  ;;  %v467_v63 = vsel %vm466_vm10, %v464_v55, %v465_v13  ;;  %v487_v39 = vrot.slane %v486_v16, 1 }
 0x127   : > { %v2734_v41 = vadd.f32 %v2359_v58, %v713_v54  ;;  %v2737_v34 = vadd.f32 %v2402_v17, %v713_v54  ;;  %v2740_v47 = vadd.f32 %v2418_v27, %v713_v54  ;;  %v2743_v57 = vadd.f32 %v2459_v60, %v713_v54 }
 0x128   : > { %v2746_v29 = vadd.f32 %v2516_v23, %v713_v54  ;;  %v2749_v42 = vadd.f32 %v2625_v53, %v713_v54  ;;  %v469_v25 = vsel %vm329_vm3, %v467_v63, %v447_v6  ;;  %v506_v58 = vrot.slane %v505_v52, 2 }
 0x129   : > { %v735_v5 = vrot.slane %v2734_v41, 4  ;;  %v757_v17 = vrot.slane %v2737_v34, 4  ;;  %v779_v27 = vrot.slane %v2740_v47, 4  ;;  %v546_v60 = vsel %vm545_vm12, %v2114_v3, 8 }
 0x12a   : > { %v681_v23 = vrot.slane %v2731_v44, 2  ;;  %v801_v53 = vrot.slane %v2743_v57, 4  ;;  %v823_v9 = vrot.slane %v2746_v29, 4  ;;  %v845_v2 = vrot.slane %v2749_v42, 4 }
 0x12b   : > { %v736_v50 = vmax.f32 %v2734_v41, %v735_v5  ;;  %v758_v32 = vmax.f32 %v2737_v34, %v757_v17  ;;  %v780_v40 = vmax.f32 %v2740_v47, %v779_v27  ;;  %vm488_vm11 = vcmp.lt.s32.totalorder %v486_v16, %v487_v39 }
 0x12c   : > { %v802_v33 = vmax.f32 %v2743_v57, %v801_v53  ;;  %v824_v11 = vmax.f32 %v2746_v29, %v823_v9  ;;  %v846_v45 = vmax.f32 %v2749_v42, %v845_v2  ;;  %vm507_vm12 = vcmp.lt.s32.totalorder %v505_v52, %v506_v58 }
 0x12d   : > { %v737_v8 = vrot.slane %v736_v50, 2  ;;  %v759_v15 = vrot.slane %v758_v32, 2  ;;  %v781_v22 = vrot.slane %v780_v40, 2  ;;  %v489_v1 = vsel %vm488_vm11, %v486_v16, %v487_v39 }
 0x12e   : > { %v803_v38 = vrot.slane %v802_v33, 2  ;;  %v825_v28 = vrot.slane %v824_v11, 2  ;;  %v847_v49 = vrot.slane %v846_v45, 2  ;;  %v491_v55 = vsel %vm348_vm4, %v489_v1, %v469_v25 }
 0x12f   : > { %v738_v12 = vmax.f32 %v736_v50, %v737_v8  ;;  %v760_v59 = vmax.f32 %v758_v32, %v759_v15  ;;  %v782_v13 = vmax.f32 %v780_v40, %v781_v22  ;;  %v508_v7 = vsel %vm507_vm12, %v505_v52, %v506_v58 }
 0x130   : > { %v804_v6 = vmax.f32 %v802_v33, %v803_v38  ;;  %v826_v54 = vmax.f32 %v824_v11, %v825_v28  ;;  %v848_v63 = vmax.f32 %v846_v45, %v847_v49  ;;  %v509_v5 = vrot.slane %v508_v7, 1  ;;  %v1739_v28 = vld [vmem:[%s2104_s22 + $0x18] sm:$0xff] }
 0x131   : > { %v739_v17 = vrot.slane %v738_v12, 1  ;;  %v761_v27 = vrot.slane %v760_v59, 1  ;;  %v783_v53 = vrot.slane %v782_v13, 1  ;;  %v547_v9 = vrot.slane %v546_v60, 4 }
 0x132   : > { %vm2773_vm13 = vcmp.lt.s32.totalorder %v2731_v44, %v681_v23  ;;  %v805_v39 = vrot.slane %v804_v6, 1  ;;  %v827_v2 = vrot.slane %v826_v54, 1  ;;  %vm510_vm8 = vcmp.lt.s32.totalorder %v508_v7, %v509_v5 }
 0x133   : > { %v2777_v25 = vmax.f32 %v738_v12, %v739_v17  ;;  %v2779_v50 = vmax.f32 %v760_v59, %v761_v27  ;;  %v849_v52 = vrot.slane %v848_v63, 1  ;;  %v511_v58 = vsel %vm510_vm8, %v508_v7, %v509_v5 }
 0x134   : > { %v2781_v32 = vmax.f32 %v782_v13, %v783_v53  ;;  %v2783_v40 = vmax.f32 %v804_v6, %v805_v39  ;;  %v828_v33 = vmax.f32 %v826_v54, %v827_v2  ;;  %v513_v11 = vsel %vm367_vm5, %v511_v58, %v491_v55 }
 0x135   : > { %vm741_vm9 = vcmp.eq.f32.partialorder %v2734_v41, %v2777_v25  ;;  %v752_v45 = vsel %vm310_vm2, %v2777_v25, -10000000.0  ;;  %v535_v8 = vsel %vm248_vm0, %v2711_v51, %v513_v11  ;;  %vm548_vm7 = vcmp.lt.s32.totalorder %v546_v60, %v547_v9 }
 0x136   : > { %v774_v15 = vsel %vm329_vm3, %v2779_v50, %v752_v45  ;;  %vm829_vm10 = vcmp.eq.f32.partialorder %v2746_v29, %v828_v33  ;;  %v549_v22 = vsel %vm548_vm7, %v546_v60, %v547_v9  ;;  %vm591_vm11 = vcmp.lt.s32.totalorder %v2716_v10, %v590_v18 }
 0x137   : > { %v796_v1 = vsel %vm348_vm4, %v2781_v32, %v774_v15  ;;  %v550_v38 = vrot.slane %v549_v22, 2  ;;  %v592_v51 = vsel %vm591_vm11, %v2716_v10, %v590_v18  ;;  %v2812_v49 = vsel %vm2773_vm13, %v2731_v44, %v681_v23 }
 0x138   : > { %v818_v29 = vsel %vm367_vm5, %v2783_v40, %v796_v1  ;;  %v2817_v60 = vmax.f32 %v848_v63, %v849_v52  ;;  %v593_v55 = vrot.slane %v592_v51, 2  ;;  %v2820_v12 = vsel %vm829_vm10, %v2114_v3, 8 }
 0x139   : > { %v840_v59 = vsel %vm248_vm0, %v828_v33, %v818_v29  ;;  %vm551_vm12 = vcmp.lt.s32.totalorder %v549_v22, %v550_v38  ;;  %v611_v10 = vsel %vm610_vm14, %v2114_v3, 8  ;;  %v996_v23 = vadd.f32 %v2484_v26, %v2476_v14 }
 0x13a   : > { %v862_v18 = vsel %vm404_vm6, %v2817_v60, %v840_v59  ;;  %v552_v44 = vsel %vm551_vm12, %v549_v22, %v550_v38  ;;  %vm594_vm13 = vcmp.lt.s32.totalorder %v592_v51, %v593_v55  ;;  %v684_v6 = vrot.slane %v2812_v49, 1 }
 0x13b   : > { %v866_v13 = vadd.f32 %v1739_v28, %v862_v18  ;;  %v553_v7 = vrot.slane %v552_v44, 1  ;;  %v595_v63 = vsel %vm594_vm13, %v592_v51, %v593_v55  ;;  %v612_v5 = vrot.slane %v611_v10, 4 }
 0x13c   : > { %v596_v16 = vrot.slane %v595_v63, 1  ;;  %vm2905_vm12 = vcmp.lt.s32.totalorder %v2812_v49, %v684_v6 }
 0x13d   : > { %v2836_v46 = vadd.f32 %v2366_v61, %v866_v13  ;;  %v2839_v56 = vadd.f32 %v2405_v21, %v866_v13  ;;  %v2842_v17 = vadd.f32 %v2428_v35, %v866_v13  ;;  %v2845_v27 = vadd.f32 %v2462_v0, %v866_v13 }
 0x13e   : > { %v2848_v26 = vadd.f32 %v2519_v31, %v866_v13  ;;  %v2850_v53 = vadd.f32 %v996_v23, %v866_v13  ;;  %vm554_vm14 = vcmp.lt.s32.totalorder %v552_v44, %v553_v7  ;;  %v633_v61 = vsel %vm632_vm15, %v2114_v3, 8 }
 0x13f   : > { %v888_v21 = vrot.slane %v2836_v46, 4  ;;  %v910_v9 = vrot.slane %v2839_v56, 4  ;;  %v932_v35 = vrot.slane %v2842_v17, 4  ;;  %v954_v0 = vrot.slane %v2845_v27, 4 }
 0x140   : > { %3617 = vst [vmem:[#allocation25_spill] sm:$0xff] %v2850_v53  ;;  %v976_v31 = vrot.slane %v2848_v26, 4  ;;  %v998_v39 = vrot.slane %v2850_v53, 4  ;;  %vm2862_vm8 = vcmp.lt.s32.totalorder %v611_v10, %v612_v5  ;;  %v555_v58 = vsel %vm554_vm14, %v552_v44, %v553_v7 }
 0x141   : > { %v889_v30 = vmax.f32 %v2836_v46, %v888_v21  ;;  %v911_v48 = vmax.f32 %v2839_v56, %v910_v9  ;;  %v933_v52 = vmax.f32 %v2842_v17, %v932_v35  ;;  %v955_v33 = vmax.f32 %v2845_v27, %v954_v0 }
 0x142   : > { %v977_v11 = vmax.f32 %v2848_v26, %v976_v31  ;;  %v999_v45 = vmax.f32 %v2850_v53, %v998_v39  ;;  %v2874_v15 = vsel %vm404_vm6, %v555_v58, %v535_v8  ;;  %vm597_vm15 = vcmp.lt.s32.totalorder %v595_v63, %v596_v16 }
 0x143   : > { %3620 = vst [vmem:[#allocation26_spill] sm:$0xff] %v2874_v15  ;;  %v890_v22 = vrot.slane %v889_v30, 2  ;;  %v912_v1 = vrot.slane %v911_v48, 2  ;;  %v934_v38 = vrot.slane %v933_v52, 2  ;;  %v956_v51 = vrot.slane %v955_v33, 2 }
 0x144   : > { %v978_v28 = vrot.slane %v977_v11, 2  ;;  %v1000_v29 = vrot.slane %v999_v45, 2  ;;  %v634_v55 = vrot.slane %v633_v61, 4  ;;  %v598_v23 = vsel %vm597_vm15, %v595_v63, %v596_v16 }
 0x145   : > { %v891_v59 = vmax.f32 %v889_v30, %v890_v22  ;;  %v913_v18 = vmax.f32 %v911_v48, %v912_v1  ;;  %v935_v44 = vmax.f32 %v933_v52, %v934_v38  ;;  %v957_v13 = vmax.f32 %v955_v33, %v956_v51 }
 0x146   : > { %v979_v7 = vmax.f32 %v977_v11, %v978_v28  ;;  %v1001_v21 = vmax.f32 %v999_v45, %v1000_v29  ;;  %v614_v9 = vsel %vm2862_vm8, %v611_v10, %v612_v5  ;;  %v600_v54 = vsel %vm310_vm2, %v598_v23, 8  ;;  %v1740_v28 = vld [vmem:[%s2104_s22 + $0x20] sm:$0xff] }
 0x147   : > { %v892_v8 = vrot.slane %v891_v59, 1  ;;  %v914_v35 = vrot.slane %v913_v18, 1  ;;  %v936_v0 = vrot.slane %v935_v44, 1  ;;  %v615_v31 = vrot.slane %v614_v9, 2 }
 0x148   : > { %v958_v39 = vrot.slane %v957_v13, 1  ;;  %v980_v58 = vrot.slane %v979_v7, 1  ;;  %vm635_vm7 = vcmp.lt.s32.totalorder %v633_v61, %v634_v55  ;;  %v1002_v63 = vrot.slane %v1001_v21, 1 }
 0x149   : > { %v2880_v30 = vmax.f32 %v891_v59, %v892_v8  ;;  %v2882_v48 = vmax.f32 %v913_v18, %v914_v35  ;;  %vm616_vm10 = vcmp.lt.s32.totalorder %v614_v9, %v615_v31  ;;  %v2884_v16 = vmax.f32 %v935_v44, %v936_v0 }
 0x14a   : > { %v2886_v10 = vmax.f32 %v957_v13, %v958_v39  ;;  %v2888_v5 = vmax.f32 %v979_v7, %v980_v58  ;;  %v617_v2 = vsel %vm616_vm10, %v614_v9, %v615_v31  ;;  %v636_v11 = vsel %vm635_vm7, %v633_v61, %v634_v55  ;;  %v3628_v39 = vld [vmem:[#allocation17_spill] sm:$0xff]  ;;  %v3629_v58 = vld [vmem:[#allocation22_spill] sm:$0xff] }
 0x14b   : > { %v905_v52 = vsel %vm310_vm2, %v2880_v30, -10000000.0  ;;  %v618_v33 = vrot.slane %v617_v2, 1  ;;  %v655_v45 = vsel %vm654_vm1, %v2114_v3, 8  ;;  %v637_v1 = vrot.slane %v636_v11, 2 }
 0x14c   : > { %v927_v22 = vsel %vm329_vm3, %v2882_v48, %v905_v52  ;;  %vm982_vm11 = vcmp.eq.f32.partialorder %v2848_v26, %v2888_v5  ;;  %v656_v38 = vrot.slane %v655_v45, 4  ;;  %v3623_v61 = vrot.slane %v2820_v12, 4 }
 0x14d   : > { %v949_v20 = vsel %vm348_vm4, %v2884_v16, %v927_v22  ;;  %vm619_vm13 = vcmp.lt.s32.totalorder %v617_v2, %v618_v33  ;;  %v2923_v55 = vmax.f32 %v1001_v21, %v1002_v63  ;;  %vm638_vm14 = vcmp.lt.s32.totalorder %v636_v11, %v637_v1 }
 0x14e   : > { %vm2912_vm1 = vcmp.lt.s32.totalorder %v2820_v12, %v3623_v61  ;;  %v971_v29 = vsel %vm367_vm5, %v2886_v10, %v949_v20  ;;  %v620_v59 = vsel %vm619_vm13, %v617_v2, %v618_v33  ;;  %v639_v23 = vsel %vm638_vm14, %v636_v11, %v637_v1 }
 0x14f   : > { %3626 = vst [vmem:[#allocation27_spill] sm:$0xff] %v2923_v55  ;;  %v993_v18 = vsel %vm248_vm0, %v2888_v5, %v971_v29  ;;  %v622_v44 = vsel %vm329_vm3, %v620_v59, %v600_v54  ;;  %vm657_vm8 = vcmp.lt.s32.totalorder %v655_v45, %v656_v38  ;;  %v640_v7 = vrot.slane %v639_v23, 1 }
 0x150   : > { %v1015_v13 = vsel %vm404_vm6, %v2923_v55, %v993_v18  ;;  %v658_v9 = vsel %vm657_vm8, %v655_v45, %v656_v38  ;;  %v1149_v21 = vadd.f32 %v2488_v37, %v2476_v14  ;;  %vm698_vm15 = vcmp.eq.f32.partialorder %v2642_v24, %v2703_v43 }
 0x151   : > { %v1019_v8 = vadd.f32 %v1740_v28, %v1015_v13  ;;  %v3627_v35 = vmov %v3623_v61  ;;  %vm641_vm7 = vcmp.lt.s32.totalorder %v639_v23, %v640_v7  ;;  %v659_v0 = vrot.slane %v658_v9, 2 }
 0x152   : > { %v2942_v54 = vsel %vm2912_vm1, %v2820_v12, %v3627_v35  ;;  %v686_v31 = vsel %vm2905_vm12, %v2812_v49, %v684_v6  ;;  %v642_v52 = vsel %vm641_vm7, %v639_v23, %v640_v7  ;;  %v699_v49 = vsel %vm698_vm15, %v2114_v3, 8 }
 0x153   : > { %v2950_v37 = vadd.f32 %v2369_v62, %v1019_v8  ;;  %v2953_v24 = vadd.f32 %v2408_v4, %v1019_v8  ;;  %v2956_v43 = vadd.f32 %v2431_v36, %v1019_v8  ;;  %v2959_v12 = vadd.f32 %v3628_v39, %v1019_v8 }
 0x154   : > { %v2962_v63 = vadd.f32 %v3629_v58, %v1019_v8  ;;  %v2964_v2 = vadd.f32 %v1149_v21, %v1019_v8  ;;  %v644_v45 = vsel %vm348_vm4, %v642_v52, %v622_v44  ;;  %vm660_vm10 = vcmp.lt.s32.totalorder %v658_v9, %v659_v0 }
 0x155   : > { %v1041_v62 = vrot.slane %v2950_v37, 4  ;;  %v1063_v6 = vrot.slane %v2953_v24, 4  ;;  %v1085_v4 = vrot.slane %v2956_v43, 4  ;;  %v1107_v36 = vrot.slane %v2959_v12, 4 }
 0x156   : > { %3630 = vst [vmem:[#allocation17_spill] sm:$0xff] %v2964_v2  ;;  %v1129_v33 = vrot.slane %v2962_v63, 4  ;;  %v1151_v11 = vrot.slane %v2964_v2, 4  ;;  %v661_v20 = vsel %vm660_vm10, %v658_v9, %v659_v0  ;;  %v700_v28 = vrot.slane %v699_v49, 4 }
 0x157   : > { %v1042_v22 = vmax.f32 %v2950_v37, %v1041_v62  ;;  %v1064_v1 = vmax.f32 %v2953_v24, %v1063_v6  ;;  %v1086_v38 = vmax.f32 %v2956_v43, %v1085_v4  ;;  %v1108_v51 = vmax.f32 %v2959_v12, %v1107_v36 }
 0x158   : > { %v1130_v61 = vmax.f32 %v2962_v63, %v1129_v33  ;;  %v1152_v19 = vmax.f32 %v2964_v2, %v1151_v11  ;;  %v662_v7 = vrot.slane %v661_v20, 1  ;;  %vm701_vm12 = vcmp.lt.s32.totalorder %v699_v49, %v700_v28 }
 0x159   : > { %v1043_v29 = vrot.slane %v1042_v22, 2  ;;  %v1065_v59 = vrot.slane %v1064_v1, 2  ;;  %v1087_v18 = vrot.slane %v1086_v38, 2  ;;  %v1109_v23 = vrot.slane %v1108_v51, 2 }
 0x15a   : > { %v1131_v44 = vrot.slane %v1130_v61, 2  ;;  %v1153_v13 = vrot.slane %v1152_v19, 2  ;;  %vm663_vm1 = vcmp.lt.s32.totalorder %v661_v20, %v662_v7  ;;  %v702_v62 = vsel %vm701_vm12, %v699_v49, %v700_v28 }
 0x15b   : > { %v1044_v21 = vmax.f32 %v1042_v22, %v1043_v29  ;;  %v1066_v8 = vmax.f32 %v1064_v1, %v1065_v59  ;;  %v1088_v35 = vmax.f32 %v1086_v38, %v1087_v18  ;;  %v1110_v39 = vmax.f32 %v1108_v51, %v1109_v23  ;;  %v1741_v23 = vld [vmem:[%s2104_s22 + $0x28] sm:$0xff] }
 0x15c   : > { %v1132_v58 = vmax.f32 %v1130_v61, %v1131_v44  ;;  %v1154_v52 = vmax.f32 %v1152_v19, %v1153_v13  ;;  %v703_v11 = vrot.slane %v702_v62, 2  ;;  %v742_v15 = vsel %vm741_vm9, %v2114_v3, 8 }
 0x15d   : > { %v1045_v6 = vrot.slane %v1044_v21, 1  ;;  %v1067_v4 = vrot.slane %v1066_v8, 1  ;;  %v1089_v9 = vrot.slane %v1088_v35, 1  ;;  %v1111_v0 = vrot.slane %v1110_v39, 1 }
 0x15e   : > { %v1133_v36 = vrot.slane %v1132_v58, 1  ;;  %v1155_v33 = vrot.slane %v1154_v52, 1  ;;  %v664_v51 = vsel %vm663_vm1, %v661_v20, %v662_v7  ;;  %vm704_vm13 = vcmp.lt.s32.totalorder %v702_v62, %v703_v11 }
 0x15f   : > { %v2985_v22 = vmax.f32 %v1044_v21, %v1045_v6  ;;  %v2987_v1 = vmax.f32 %v1066_v8, %v1067_v4  ;;  %v2989_v38 = vmax.f32 %v1088_v35, %v1089_v9  ;;  %v2991_v49 = vmax.f32 %v1110_v39, %v1111_v0  ;;  %v3635_v0 = vld [vmem:[#allocation11_spill] sm:$0xff] }
 0x160   : > { %v2993_v61 = vmax.f32 %v1132_v58, %v1133_v36  ;;  %v666_v19 = vsel %vm367_vm5, %v664_v51, %v644_v45  ;;  %v705_v28 = vsel %vm704_vm13, %v702_v62, %v703_v11  ;;  %v743_v29 = vrot.slane %v742_v15, 4  ;;  %v3638_v51 = vld [vmem:[#allocation15_spill] sm:$0xff] }
 0x161   : > { %v1058_v41 = vsel %vm310_vm2, %v2985_v22, -10000000.0  ;;  %v688_v25 = vsel %vm248_vm0, %v686_v31, %v666_v19  ;;  %v706_v59 = vrot.slane %v705_v28, 1  ;;  %vm763_vm14 = vcmp.eq.f32.partialorder %v2737_v34, %v2779_v50 }
 0x162   : > { %v1080_v20 = vsel %vm329_vm3, %v2987_v1, %v1058_v41  ;;  %vm1135_vm9 = vcmp.eq.f32.partialorder %v2962_v63, %v2993_v61  ;;  %v3013_v45 = vsel %vm982_vm11, %v2114_v3, 8  ;;  %vm744_vm8 = vcmp.lt.s32.totalorder %v742_v15, %v743_v29  ;;  %v3640_v41 = vld [vmem:[#allocation18_spill] sm:$0xff] }
 0x163   : > { %v1102_v31 = vsel %vm348_vm4, %v2989_v38, %v1080_v20  ;;  %v764_v18 = vsel %vm763_vm14, %v2114_v3, 8  ;;  %v3023_v13 = vmax.f32 %v1154_v52, %v1155_v33  ;;  %vm707_vm15 = vcmp.lt.s32.totalorder %v705_v28, %v706_v59  ;;  %v3634_v52 = vld [vmem:[#allocation21_spill] sm:$0xff] }
 0x164   : > { %v1124_v44 = vsel %vm367_vm5, %v2991_v49, %v1102_v31  ;;  %v745_v34 = vsel %vm744_vm8, %v742_v15, %v743_v29  ;;  %v708_v26 = vsel %vm707_vm15, %v705_v28, %v706_v59  ;;  %v765_v7 = vrot.slane %v764_v18, 4  ;;  %v3633_v15 = vld [vmem:[#allocation20_spill] sm:$0xff]  ;;  %v3636_v33 = vld [vmem:[#allocation13_spill] sm:$0xff]  ;;  %v3644_v29 = vld [vmem:[#allocation23_spill] sm:$0xff] }
 0x165   : > { %3631 = vst [vmem:[#allocation22_spill] sm:$0xff] %v3023_v13  ;;  %v1146_v50 = vsel %vm248_vm0, %v2993_v61, %v1124_v44  ;;  %v746_v5 = vrot.slane %v745_v34, 2  ;;  %v834_v21 = vrot.slane %v2942_v54, 2  ;;  %v3034_v35 = vsel %vm404_vm6, %v708_v26, %v688_v25 }
 0x166   : > { %v1168_v8 = vsel %vm404_vm6, %v3023_v13, %v1146_v50  ;;  %3632 = vst [vmem:[#allocation28_spill] sm:$0xff] %v3034_v35  ;;  %vm785_vm11 = vcmp.eq.f32.partialorder %v2740_v47, %v2781_v32  ;;  %v1302_v39 = vadd.f32 %v3633_v15, %v2476_v14  ;;  %vm766_vm10 = vcmp.lt.s32.totalorder %v764_v18, %v765_v7 }
 0x167   : > { %v1172_v58 = vadd.f32 %v1741_v23, %v1168_v8  ;;  %vm747_vm7 = vcmp.lt.s32.totalorder %v745_v34, %v746_v5  ;;  %v3042_v62 = vadd.f32 %v3634_v52, %v2476_v14  ;;  %v767_v9 = vsel %vm766_vm10, %v764_v18, %v765_v7 }
 0x168   : > { %v748_v4 = vsel %vm747_vm7, %v745_v34, %v746_v5  ;;  %vm3058_vm12 = vcmp.lt.s32.totalorder %v2942_v54, %v834_v21  ;;  %v768_v18 = vrot.slane %v767_v9, 2 }
 0x169   : > { %v3046_v36 = vadd.f32 %v3635_v0, %v1172_v58  ;;  %v3049_v11 = vadd.f32 %v3636_v33, %v1172_v58  ;;  %v3052_v19 = vadd.f32 %v3638_v51, %v1172_v58  ;;  %v3055_v25 = vadd.f32 %v3640_v41, %v1172_v58 }
 0x16a   : > { %v3063_v20 = vadd.f32 %v3644_v29, %v1172_v58  ;;  %v3065_v59 = vadd.f32 %v1302_v39, %v1172_v58  ;;  %v749_v31 = vrot.slane %v748_v4, 1  ;;  %vm769_vm13 = vcmp.lt.s32.totalorder %v767_v9, %v768_v18 }
 0x16b   : > { %3637 = vst [vmem:[#allocation20_spill] sm:$0xff] %v3049_v11  ;;  %3639 = vst [vmem:[#allocation21_spill] sm:$0xff] %v3052_v19  ;;  %v1194_v23 = vrot.slane %v3046_v36, 4  ;;  %v1216_v44 = vrot.slane %v3049_v11, 4  ;;  %v1238_v34 = vrot.slane %v3052_v19, 4  ;;  %v1260_v50 = vrot.slane %v3055_v25, 4 }
 0x16c   : > { %3641 = vst [vmem:[#allocation11_spill] sm:$0xff] %v3055_v25  ;;  %3645 = vst [vmem:[#allocation13_spill] sm:$0xff] %v3065_v59  ;;  %v1282_v26 = vrot.slane %v3063_v20, 4  ;;  %v1304_v5 = vrot.slane %v3065_v59, 4  ;;  %vm3073_vm1 = vcmp.lt.s32.totalorder %v748_v4, %v749_v31  ;;  %v770_v33 = vsel %vm769_vm13, %v767_v9, %v768_v18 }
 0x16d   : > { %v1195_v8 = vmax.f32 %v3046_v36, %v1194_v23  ;;  %v1217_v15 = vmax.f32 %v3049_v11, %v1216_v44  ;;  %v1239_v39 = vmax.f32 %v3052_v19, %v1238_v34  ;;  %v1261_v58 = vmax.f32 %v3055_v25, %v1260_v50 }
 0x16e   : > { %v1283_v52 = vmax.f32 %v3063_v20, %v1282_v26  ;;  %v1305_v0 = vmax.f32 %v3065_v59, %v1304_v5  ;;  %v786_v51 = vsel %vm785_vm11, %v2114_v3, 8  ;;  %v751_v34 = vsel %vm3073_vm1, %v748_v4, %v749_v31 }
 0x16f   : > { %v1196_v41 = vrot.slane %v1195_v8, 2  ;;  %v1218_v29 = vrot.slane %v1217_v15, 2  ;;  %v1240_v6 = vrot.slane %v1239_v39, 2  ;;  %v1262_v23 = vrot.slane %v1261_v58, 2 }
 0x170   : > { %v1284_v35 = vrot.slane %v1283_v52, 2  ;;  %v1306_v44 = vrot.slane %v1305_v0, 2  ;;  %v771_v50 = vrot.slane %v770_v33, 1  ;;  %v787_v2 = vrot.slane %v786_v51, 4 }
 0x171   : > { %v1197_v53 = vmax.f32 %v1195_v8, %v1196_v41  ;;  %v1219_v26 = vmax.f32 %v1217_v15, %v1218_v29  ;;  %v1241_v55 = vmax.f32 %v1239_v39, %v1240_v6  ;;  %v1263_v5 = vmax.f32 %v1261_v58, %v1262_v23 }
 0x172   : > { %v1285_v9 = vmax.f32 %v1283_v52, %v1284_v35  ;;  %v1307_v18 = vmax.f32 %v1305_v0, %v1306_v44  ;;  %vm772_vm14 = vcmp.lt.s32.totalorder %v770_v33, %v771_v50  ;;  %v753_v59 = vsel %vm310_vm2, %v751_v34, 8 }
 0x173   : > { %v1198_v47 = vrot.slane %v1197_v53, 1  ;;  %v1220_v32 = vrot.slane %v1219_v26, 1  ;;  %v1242_v13 = vrot.slane %v1241_v55, 1  ;;  %v1264_v25 = vrot.slane %v1263_v5, 1 }
 0x174   : > { %v1286_v19 = vrot.slane %v1285_v9, 1  ;;  %v773_v11 = vsel %vm772_vm14, %v770_v33, %v771_v50  ;;  %vm788_vm8 = vcmp.lt.s32.totalorder %v786_v51, %v787_v2  ;;  %v3094_v4 = vsel %vm3058_vm12, %v2942_v54, %v834_v21  ;;  %v3652_v50 = vld [vmem:[#allocation24_spill] sm:$0xff] }
 0x175   : > { %v3648_v35 = vrot.slane %v3013_v45, 4  ;;  %v3099_v6 = vmax.f32 %v1197_v53, %v1198_v47  ;;  %v3101_v31 = vmax.f32 %v1219_v26, %v1220_v32  ;;  %v1308_v8 = vrot.slane %v1307_v18, 1  ;;  %v3657_v32 = vld [vmem:[#allocation16_spill] sm:$0xff] }
 0x176   : > { %v3103_v7 = vmax.f32 %v1285_v9, %v1286_v19  ;;  %v775_v15 = vsel %vm329_vm3, %v773_v11, %v753_v59  ;;  %v789_v39 = vsel %vm788_vm8, %v786_v51, %v787_v2  ;;  %v3110_v21 = vmax.f32 %v1241_v55, %v1242_v13  ;;  %v1742_v13 = vld [vmem:[%s2104_s22 + $0x30] sm:$0xff] }
 0x177   : > { %vm985_vm15 = vcmp.lt.s32.totalorder %v3013_v45, %v3648_v35  ;;  %v1211_v54 = vsel %vm310_vm2, %v3099_v6, -10000000.0  ;;  %v790_v28 = vrot.slane %v789_v39, 2  ;;  %vm807_vm11 = vcmp.eq.f32.partialorder %v2743_v57, %v2783_v40 }
 0x178   : > { %v1233_v53 = vsel %vm329_vm3, %v3101_v31, %v1211_v54  ;;  %v3117_v19 = vmax.f32 %v1263_v5, %v1264_v25  ;;  %vm1288_vm7 = vcmp.eq.f32.partialorder %v3063_v20, %v3103_v7  ;;  %v808_v2 = vsel %vm807_vm11, %v2114_v3, 8  ;;  %v3653_v5 = vld [vmem:[#allocation12_spill] sm:$0xff] }
 0x179   : > { %v3649_v11 = vmov %v3648_v35  ;;  %v1255_v57 = vsel %vm348_vm4, %v3110_v21, %v1233_v53  ;;  %vm791_vm10 = vcmp.lt.s32.totalorder %v789_v39, %v790_v28  ;;  %v809_v40 = vrot.slane %v808_v2, 4 }
 0x17a   : > { %v3125_v55 = vsel %vm985_vm15, %v3013_v45, %v3649_v11  ;;  %v1277_v25 = vsel %vm367_vm5, %v3117_v19, %v1255_v57  ;;  %v3134_v59 = vmax.f32 %v1307_v18, %v1308_v8  ;;  %v792_v58 = vsel %vm791_vm10, %v789_v39, %v790_v28  ;;  %v3655_v18 = vld [vmem:[#allocation14_spill] sm:$0xff]  ;;  %v3659_v8 = vld [vmem:[#allocation19_spill] sm:$0xff] }
 0x17b   : > { %vm851_vm12 = vcmp.eq.f32.partialorder %v2749_v42, %v2817_v60  ;;  %v1299_v45 = vsel %vm248_vm0, %v3103_v7, %v1277_v25  ;;  %v793_v52 = vrot.slane %v792_v58, 1  ;;  %vm810_vm1 = vcmp.lt.s32.totalorder %v808_v2, %v809_v40 }
 0x17c   : > { %v852_v0 = vsel %vm851_vm12, %v2114_v3, 8  ;;  %v3563_v33 = vrot.slane %v3094_v4, 1  ;;  %v1321_v51 = vsel %vm404_vm6, %v3134_v59, %v1299_v45  ;;  %v811_v41 = vsel %vm810_vm1, %v808_v2, %v809_v40 }
 0x17d   : > { %v853_v29 = vrot.slane %v852_v0, 4  ;;  %v1325_v23 = vadd.f32 %v1742_v13, %v1321_v51  ;;  %vm794_vm13 = vcmp.lt.s32.totalorder %v792_v58, %v793_v52  ;;  %v812_v44 = vrot.slane %v811_v41, 2 }
 0x17e   : > { %vm894_vm14 = vcmp.eq.f32.partialorder %v2836_v46, %v2880_v30  ;;  %v795_v60 = vsel %vm794_vm13, %v792_v58, %v793_v52  ;;  %vm916_vm15 = vcmp.eq.f32.partialorder %v2839_v56, %v2882_v48  ;;  %vm3178_vm10 = vcmp.lt.s32.totalorder %v3094_v4, %v3563_v33 }
 0x17f   : > { %vm3149_vm8 = vcmp.lt.s32.totalorder %v852_v0, %v853_v29  ;;  %v3156_v26 = vadd.f32 %v3652_v50, %v1325_v23  ;;  %v3159_v9 = vadd.f32 %v3653_v5, %v1325_v23  ;;  %v3162_v47 = vadd.f32 %v3655_v18, %v1325_v23 }
 0x180   : > { %v3165_v35 = vadd.f32 %v3657_v32, %v1325_v23  ;;  %v3168_v39 = vadd.f32 %v3659_v8, %v1325_v23  ;;  %v3171_v54 = vadd.f32 %v3042_v62, %v1325_v23  ;;  %v797_v28 = vsel %vm348_vm4, %v795_v60, %v775_v15 }
 0x181   : > { %3654 = vst [vmem:[#allocation15_spill] sm:$0xff] %v3159_v9  ;;  %3656 = vst [vmem:[#allocation18_spill] sm:$0xff] %v3162_v47  ;;  %vm813_vm11 = vcmp.lt.s32.totalorder %v811_v41, %v812_v44  ;;  %v1435_v2 = vrot.slane %v3156_v26, 4  ;;  %v1347_v11 = vrot.slane %v3159_v9, 4  ;;  %v1369_v57 = vrot.slane %v3162_v47, 4 }
 0x182   : > { %3658 = vst [vmem:[#allocation23_spill] sm:$0xff] %v3165_v35  ;;  %3660 = vst [vmem:[#allocation24_spill] sm:$0xff] %v3168_v39  ;;  %v1391_v62 = vrot.slane %v3165_v35, 4  ;;  %v1413_v40 = vrot.slane %v3168_v39, 4  ;;  %v1457_v15 = vrot.slane %v3171_v54, 4  ;;  %v814_v13 = vsel %vm813_vm11, %v811_v41, %v812_v44 }
 0x183   : > { %3661 = vst [vmem:[#allocation12_spill] sm:$0xff] %v3171_v54  ;;  %v855_v25 = vsel %vm3149_vm8, %v852_v0, %v853_v29  ;;  %v1436_v58 = vmax.f32 %v3156_v26, %v1435_v2  ;;  %v1348_v45 = vmax.f32 %v3159_v9, %v1347_v11  ;;  %v1370_v52 = vmax.f32 %v3162_v47, %v1369_v57 }
 0x184   : > { %v1392_v51 = vmax.f32 %v3165_v35, %v1391_v62  ;;  %v1414_v23 = vmax.f32 %v3168_v39, %v1413_v40  ;;  %v1458_v60 = vmax.f32 %v3171_v54, %v1457_v15  ;;  %v815_v50 = vrot.slane %v814_v13, 1 }
 0x185   : > { %v856_v5 = vrot.slane %v855_v25, 2  ;;  %v1437_v18 = vrot.slane %v1436_v58, 2  ;;  %v1349_v32 = vrot.slane %v1348_v45, 2  ;;  %v1371_v41 = vrot.slane %v1370_v52, 2 }
 0x186   : > { %v1393_v44 = vrot.slane %v1392_v51, 2  ;;  %v1415_v34 = vrot.slane %v1414_v23, 2  ;;  %v1459_v0 = vrot.slane %v1458_v60, 2  ;;  %vm816_vm12 = vcmp.lt.s32.totalorder %v814_v13, %v815_v50 }
 0x187   : > { %vm857_vm1 = vcmp.lt.s32.totalorder %v855_v25, %v856_v5  ;;  %v1438_v29 = vmax.f32 %v1436_v58, %v1437_v18  ;;  %v1350_v8 = vmax.f32 %v1348_v45, %v1349_v32  ;;  %v1372_v2 = vmax.f32 %v1370_v52, %v1371_v41  ;;  %v1743_v18 = vld [vmem:[%s2104_s22 + $0x38] sm:$0xff] }
 0x188   : > { %v1394_v11 = vmax.f32 %v1392_v51, %v1393_v44  ;;  %v1416_v57 = vmax.f32 %v1414_v23, %v1415_v34  ;;  %v1460_v62 = vmax.f32 %v1458_v60, %v1459_v0  ;;  %v817_v42 = vsel %vm816_vm12, %v814_v13, %v815_v50 }
 0x189   : > { %v858_v40 = vsel %vm857_vm1, %v855_v25, %v856_v5  ;;  %v1439_v33 = vrot.slane %v1438_v29, 1  ;;  %v1351_v15 = vrot.slane %v1350_v8, 1  ;;  %v1373_v54 = vrot.slane %v1372_v2, 1 }
 0x18a   : > { %v1395_v39 = vrot.slane %v1394_v11, 1  ;;  %v1417_v35 = vrot.slane %v1416_v57, 1  ;;  %v819_v47 = vsel %vm367_vm5, %v817_v42, %v797_v28  ;;  %v859_v9 = vrot.slane %v858_v40, 1 }
 0x18b   : > { %v895_v58 = vsel %vm894_vm14, %v2114_v3, 8  ;;  %v3202_v45 = vmax.f32 %v1350_v8, %v1351_v15  ;;  %v3204_v52 = vmax.f32 %v1372_v2, %v1373_v54  ;;  %v1461_v13 = vrot.slane %v1460_v62, 1 }
 0x18c   : > { %v3664_v25 = vrot.slane %v3094_v4, 1  ;;  %v3665_v23 = vrot.slane %v3125_v55, 2  ;;  %v3218_v46 = vmax.f32 %v1438_v29, %v1439_v33  ;;  %vm860_vm14 = vcmp.lt.s32.totalorder %v858_v40, %v859_v9 }
 0x18d   : > { %v1364_v54 = vsel %vm310_vm2, %v3202_v45, -10000000.0  ;;  %v3225_v28 = vmax.f32 %v1394_v11, %v1395_v39  ;;  %v896_v53 = vrot.slane %v895_v58, 4  ;;  %v3230_v50 = vmax.f32 %v1416_v57, %v1417_v35 }
 0x18e   : > { %v839_v51 = vsel %vm3178_vm10, %v3094_v4, %v3664_v25  ;;  %vm3214_vm13 = vcmp.lt.s32.totalorder %v3125_v55, %v3665_v23  ;;  %v861_v4 = vsel %vm860_vm14, %v858_v40, %v859_v9  ;;  %v1386_v60 = vsel %vm329_vm3, %v3204_v52, %v1364_v54 }
 0x18f   : > { %v841_v30 = vsel %vm248_vm0, %v839_v51, %v819_v47  ;;  %v917_v47 = vsel %vm916_vm15, %v2114_v3, 8  ;;  %v1408_v9 = vsel %vm348_vm4, %v3225_v28, %v1386_v60  ;;  %v3243_v39 = vmax.f32 %v1460_v62, %v1461_v13 }
 0x190   : > { %v3234_v33 = vsel %vm404_vm6, %v861_v4, %v841_v30  ;;  %vm897_vm8 = vcmp.lt.s32.totalorder %v895_v58, %v896_v53  ;;  %v918_v5 = vrot.slane %v917_v47, 4  ;;  %v1430_v35 = vsel %vm367_vm5, %v3230_v50, %v1408_v9 }
 0x191   : > { %v898_v32 = vsel %vm897_vm8, %v895_v58, %v896_v53  ;;  %vm938_vm11 = vcmp.eq.f32.partialorder %v2842_v17, %v2884_v16  ;;  %vm960_vm15 = vcmp.eq.f32.partialorder %v2845_v27, %v2886_v10  ;;  %v1452_v56 = vsel %vm248_vm0, %v3218_v46, %v1430_v35 }
 0x192   : > { %v899_v48 = vrot.slane %v898_v32, 2  ;;  %vm919_vm10 = vcmp.lt.s32.totalorder %v917_v47, %v918_v5  ;;  %v939_v41 = vsel %vm938_vm11, %v2114_v3, 8  ;;  %v1474_v44 = vsel %vm404_vm6, %v3243_v39, %v1452_v56 }
 0x193   : > { %v920_v34 = vsel %vm919_vm10, %v917_v47, %v918_v5  ;;  %v940_v0 = vrot.slane %v939_v41, 4  ;;  %v961_v29 = vsel %vm960_vm15, %v2114_v3, 8  ;;  %v1478_v17 = vadd.f32 %v1743_v18, %v1474_v44 }
 0x194   : > { %vm900_vm12 = vcmp.lt.s32.totalorder %v898_v32, %v899_v48  ;;  %v921_v16 = vrot.slane %v920_v34, 2  ;;  %v962_v27 = vrot.slane %v961_v29, 4  ;;  %v3668_v8 = vmov %v3665_v23 }
 0x195   : > { %v901_v10 = vsel %vm900_vm12, %v898_v32, %v899_v48  ;;  %vm941_vm1 = vcmp.lt.s32.totalorder %v939_v41, %v940_v0  ;;  %v989_v2 = vsel %vm3214_vm13, %v3125_v55, %v3668_v8  ;;  %v3267_v11 = vadd.f32 %v1478_v17, %v2476_v14 }
 0x196   : > { %v902_v57 = vrot.slane %v901_v10, 1  ;;  %vm922_vm14 = vcmp.lt.s32.totalorder %v920_v34, %v921_v16  ;;  %v942_v62 = vsel %vm941_vm1, %v939_v41, %v940_v0  ;;  %v1136_v40 = vsel %vm1135_vm9, %v2114_v3, 8 }
 0x197   : > { %v923_v15 = vsel %vm922_vm14, %v920_v34, %v921_v16  ;;  %v943_v58 = vrot.slane %v942_v62, 2  ;;  %vm963_vm8 = vcmp.lt.s32.totalorder %v961_v29, %v962_v27  ;;  %v1480_v13 = vrot.slane %v3267_v11, 4 }
 0x198   : > { %vm903_vm11 = vcmp.lt.s32.totalorder %v901_v10, %v902_v57  ;;  %v924_v25 = vrot.slane %v923_v15, 1  ;;  %v964_v51 = vsel %vm963_vm8, %v961_v29, %v962_v27  ;;  %v990_v23 = vrot.slane %v989_v2, 1 }
 0x199   : > { %v904_v55 = vsel %vm903_vm11, %v901_v10, %v902_v57  ;;  %vm944_vm13 = vcmp.lt.s32.totalorder %v942_v62, %v943_v58  ;;  %v965_v14 = vrot.slane %v964_v51, 2  ;;  %v1481_v42 = vmax.f32 %v3267_v11, %v1480_v13 }
 0x19a   : > { %v906_v30 = vsel %vm310_vm2, %v904_v55, 8  ;;  %vm925_vm15 = vcmp.lt.s32.totalorder %v923_v15, %v924_v25  ;;  %v945_v63 = vsel %vm944_vm13, %v942_v62, %v943_v58  ;;  %v1137_v4 = vrot.slane %v1136_v40, 4 }
 0x19b   : > { %v926_v61 = vsel %vm925_vm15, %v923_v15, %v924_v25  ;;  %v946_v54 = vrot.slane %v945_v63, 1  ;;  %vm966_vm9 = vcmp.lt.s32.totalorder %v964_v51, %v965_v14  ;;  %v1482_v53 = vrot.slane %v1481_v42, 2 }
 0x19c   : > { %v928_v60 = vsel %vm329_vm3, %v926_v61, %v906_v30  ;;  %v967_v47 = vsel %vm966_vm9, %v964_v51, %v965_v14  ;;  %vm3279_vm12 = vcmp.lt.s32.totalorder %v989_v2, %v990_v23  ;;  %vm1047_vm1 = vcmp.eq.f32.partialorder %v2950_v37, %v2985_v22 }
 0x19d   : > { %vm947_vm10 = vcmp.lt.s32.totalorder %v945_v63, %v946_v54  ;;  %v968_v9 = vrot.slane %v967_v47, 1  ;;  %v1483_v35 = vmax.f32 %v1481_v42, %v1482_v53  ;;  %v1048_v32 = vsel %vm1047_vm1, %v2114_v3, 8 }
 0x19e   : > { %v948_v18 = vsel %vm947_vm10, %v945_v63, %v946_v54  ;;  %vm1069_vm14 = vcmp.eq.f32.partialorder %v2953_v24, %v2987_v1  ;;  %v1049_v48 = vrot.slane %v1048_v32, 4  ;;  %vm1138_vm11 = vcmp.lt.s32.totalorder %v1136_v40, %v1137_v4 }
 0x19f   : > { %v950_v56 = vsel %vm348_vm4, %v948_v18, %v928_v60  ;;  %vm969_vm8 = vcmp.lt.s32.totalorder %v967_v47, %v968_v9  ;;  %v1484_v41 = vrot.slane %v1483_v35, 1  ;;  %v1070_v37 = vsel %vm1069_vm14, %v2114_v3, 8 }
 0x1a0   : > { %v970_v44 = vsel %vm969_vm8, %v967_v47, %v968_v9  ;;  %v992_v34 = vsel %vm3279_vm12, %v989_v2, %v990_v23  ;;  %vm1050_vm13 = vcmp.lt.s32.totalorder %v1048_v32, %v1049_v48  ;;  %v1071_v24 = vrot.slane %v1070_v37, 4 }
 0x1a1   : > { %v972_v22 = vsel %vm367_vm5, %v970_v44, %v950_v56  ;;  %v3297_v1 = vmax.f32 %v1483_v35, %v1484_v41  ;;  %v1051_v29 = vsel %vm1050_vm13, %v1048_v32, %v1049_v48  ;;  %vm1091_vm15 = vcmp.eq.f32.partialorder %v2956_v43, %v2989_v38 }
 0x1a2   : > { %v3308_v0 = vsel %vm248_vm0, %v992_v34, %v972_v22  ;;  %v1139_v17 = vsel %vm1138_vm11, %v1136_v40, %v1137_v4  ;;  %v1052_v16 = vrot.slane %v1051_v29, 2  ;;  %vm1072_vm9 = vcmp.lt.s32.totalorder %v1070_v37, %v1071_v24 }
 0x1a3   : > { %v1092_v27 = vsel %vm1091_vm15, %v2114_v3, 8  ;;  %1497 = vst [vmem:[%s231_s9] sm:$0x1] %v3297_v1  ;;  %v1073_v10 = vsel %vm1072_vm9, %v1070_v37, %v1071_v24 }
 0x1a4   : > { %v1093_v8 = vrot.slane %v1092_v27, 4 }
 0x1a5   : > { %1883 = shalt.err (!%p1880_p0)
}
 0x1a6   : > { %s1884_s25 = scalar_lea.hbm %s3302_s8, 16  ;;  %s1888_s5 = scalar_lea.hbm %s3551_s3, 32 }
 0x1a7   : > { %p1885_p2 = scmp.ne.s32.totalorder %s3302_s8, %s1884_s25  ;;  %p1889_p3 = scmp.lt.s32.totalorder %s3302_s8, %s3551_s3 }
 0x1a8   : > { %p1890_p6 = scmp.lt.s32.totalorder %s1888_s5, %s1884_s25 }
 0x1a9   : > { %p1886_p9 = pnand %p1885_p2, %p3671_p13 }
 0x1aa   : > { %p1891_p11 = por %p1890_p6, %p1889_p3 }
 0x1ab   : > { %p1887_p1 = pneg %p1886_p9 }
 0x1ad   : > { %p1892_p12 = pnand %p1891_p11, %p1887_p1 }
 0x1af   : > { %1895 = shalt.err (!%p1892_p12)
}
 0x1b0   : > { %1752 = dma.vmem_to_hbm [thread:$0]  (%p3671_p13), %s3304_s14, 16, %s3302_s8, %s1587_s10   ;;  %vm1053_vm10 = vcmp.lt.s32.totalorder %v1051_v29, %v1052_v16  ;;  %v1074_v43 = vrot.slane %v1073_v10, 2  ;;  %v1140_v38 = vrot.slane %v1139_v17, 2  ;;  %vm1094_vm12 = vcmp.lt.s32.totalorder %v1092_v27, %v1093_v8  ;;  %v3674_v9 = vld [vmem:[#allocation20_spill] sm:$0xff]  ;;  %v3675_v5 = vld [vmem:[#allocation21_spill] sm:$0xff] }
 0x1b1   : > { %v1054_v2 = vsel %vm1053_vm10, %v1051_v29, %v1052_v16  ;;  %vm1113_vm1 = vcmp.eq.f32.partialorder %v2959_v12, %v2991_v49  ;;  %v1095_v62 = vsel %vm1094_vm12, %v1092_v27, %v1093_v8  ;;  %v3341_v40 = vsel %vm1288_vm7, %v2114_v3, 8  ;;  %s1735_s9 = sshll.u32 %s2100_s13, 3  ;;  %s1746_s14 = sshll.u32 %s2024_s19, 7 }
 0x1b2   : > { %v1055_v57 = vrot.slane %v1054_v2, 1  ;;  %vm1075_vm14 = vcmp.lt.s32.totalorder %v1073_v10, %v1074_v43  ;;  %v1096_v58 = vrot.slane %v1095_v62, 2  ;;  %v1114_v25 = vsel %vm1113_vm1, %v2114_v3, 8  ;;  %s238_s20 = scalar_lea.vmem [#allocation6], %s1735_s9  ;;  %s3510_s11 = scalar_lea.hbm %s3552_s4, %s1746_s14 }
 0x1b3   : > { %v1076_v15 = vsel %vm1075_vm14, %v1073_v10, %v1074_v43  ;;  %v1115_v55 = vrot.slane %v1114_v25, 4  ;;  %vm1141_vm13 = vcmp.lt.s32.totalorder %v1139_v17, %v1140_v38  ;;  %v1290_v12 = vrot.slane %v3341_v40, 4  ;;  %s1617_s22 = sshll.u32 %s238_s20, 4  ;;  %s1591_s19 = scalar_lea.sflag [#allocation7], %s2100_s13  ;;  %s1618_s22 = int_to_ptr.vmem [resolvable:$true] %s1617_s22 }
 0x1b4   : > { %vm1056_vm8 = vcmp.lt.s32.totalorder %v1054_v2, %v1055_v57  ;;  %v1077_v13 = vrot.slane %v1076_v15, 1  ;;  %vm1097_vm11 = vcmp.lt.s32.totalorder %v1095_v62, %v1096_v58  ;;  %v1142_v23 = vsel %vm1141_vm13, %v1139_v17, %v1140_v38  ;;  %s1896_s12 = scalar_lea.vmem %s1618_s22, 128  ;;  %s1977_s23 = smov [#allocation6]  }
 0x1b5   : > { %v1057_v51 = vsel %vm1056_vm8, %v1054_v2, %v1055_v57  ;;  %v1098_v14 = vsel %vm1097_vm11, %v1095_v62, %v1096_v58  ;;  %vm1116_vm7 = vcmp.lt.s32.totalorder %v1114_v25, %v1115_v55  ;;  %vm1200_vm9 = vcmp.eq.f32.partialorder %v3046_v36, %v3099_v6  ;;  %p1897_p4 = scmp.ne.s32.totalorder %s1618_s22, %s1896_s12  ;;  %s1900_s26 = sshll.u32 %s1977_s23, 4  ;;  %s1901_s26 = int_to_ptr.vmem [resolvable:$false] %s1900_s26 }
 0x1b6   : > { %v1059_v49 = vsel %vm310_vm2, %v1057_v51, 8  ;;  %vm1078_vm15 = vcmp.lt.s32.totalorder %v1076_v15, %v1077_v13  ;;  %v1099_v7 = vrot.slane %v1098_v14, 1  ;;  %v1117_v30 = vsel %vm1116_vm7, %v1114_v25, %v1115_v55  ;;  %v3677_v55 = vld [vmem:[#allocation13_spill] sm:$0xff]  ;;  %s1902_s25 = scalar_lea.vmem %s1901_s26, 256  ;;  %p1903_p8 = scmp.lt.s32.totalorder %s1618_s22, %s1901_s26 }
 0x1b7   : > { %v1079_v20 = vsel %vm1078_vm15, %v1076_v15, %v1077_v13  ;;  %v1118_v63 = vrot.slane %v1117_v30, 2  ;;  %vm3352_vm12 = vcmp.lt.s32.totalorder %v3341_v40, %v1290_v12  ;;  %v1143_v4 = vrot.slane %v1142_v23, 1  ;;  %p1898_p5 = pnand %p1897_p4, %p3671_p13  ;;  %p1904_p10 = scmp.lt.s32.totalorder %s1902_s25, %s1896_s12 }
 0x1b8   : > { %v1081_v42 = vsel %vm329_vm3, %v1079_v20, %v1059_v49  ;;  %vm1100_vm10 = vcmp.lt.s32.totalorder %v1098_v14, %v1099_v7  ;;  %v1201_v53 = vsel %vm1200_vm9, %v2114_v3, 8  ;;  %vm1222_vm14 = vcmp.eq.f32.partialorder %v3674_v9, %v3101_v31  ;;  %v3676_v31 = vld [vmem:[#allocation11_spill] sm:$0xff] }
 0x1b9   : > { %v1101_v54 = vsel %vm1100_vm10, %v1098_v14, %v1099_v7  ;;  %vm1119_vm1 = vcmp.lt.s32.totalorder %v1117_v30, %v1118_v63  ;;  %v1202_v47 = vrot.slane %v1201_v53, 4  ;;  %vm1441_vm8 = vcmp.eq.f32.partialorder %v3156_v26, %v3218_v46  ;;  %v3678_v49 = vld [vmem:[#allocation15_spill] sm:$0xff]  ;;  %p1899_p7 = pneg %p1898_p5  ;;  %p1905_p0 = por %p1904_p10, %p1903_p8 }
 0x1ba   : > { %v1103_v60 = vsel %vm348_vm4, %v1101_v54, %v1081_v42  ;;  %v1120_v36 = vsel %vm1119_vm1, %v1117_v30, %v1118_v63  ;;  %v1223_v6 = vsel %vm1222_vm14, %v2114_v3, 8  ;;  %vm1244_vm11 = vcmp.eq.f32.partialorder %v3675_v5, %v3110_v21 }
 0x1bb   : > { %vm1486_vm13 = vcmp.eq.f32.partialorder %v3267_v11, %v3297_v1  ;;  %v1121_v35 = vrot.slane %v1120_v36, 1  ;;  %vm1203_vm15 = vcmp.lt.s32.totalorder %v1201_v53, %v1202_v47  ;;  %v1224_v18 = vrot.slane %v1223_v6, 4  ;;  %p1906_p2 = pnand %p1905_p0, %p1899_p7 }
 0x1bc   : > { %vm1144_vm7 = vcmp.lt.s32.totalorder %v1142_v23, %v1143_v4  ;;  %v1204_v32 = vsel %vm1203_vm15, %v1201_v53, %v1202_v47  ;;  %v1245_v56 = vsel %vm1244_vm11, %v2114_v3, 8  ;;  %vm1266_vm9 = vcmp.eq.f32.partialorder %v3676_v31, %v3117_v19 }
 0x1bd   : > { %vm1122_vm10 = vcmp.lt.s32.totalorder %v1120_v36, %v1121_v35  ;;  %v1205_v48 = vrot.slane %v1204_v32, 2  ;;  %vm1225_vm1 = vcmp.lt.s32.totalorder %v1223_v6, %v1224_v18  ;;  %v1246_v41 = vrot.slane %v1245_v56, 4 }
 0x1be   : > { %v3375_v21 = vsel %vm1441_vm8, %v2114_v3, 8  ;;  %v1123_v44 = vsel %vm1122_vm10, %v1120_v36, %v1121_v35  ;;  %v1226_v37 = vsel %vm1225_vm1, %v1223_v6, %v1224_v18  ;;  %v1267_v22 = vsel %vm1266_vm9, %v2114_v3, 8 }
 0x1bf   : > { %v1125_v34 = vsel %vm367_vm5, %v1123_v44, %v1103_v60  ;;  %v1145_v24 = vsel %vm1144_vm7, %v1142_v23, %v1143_v4  ;;  %vm1206_vm14 = vcmp.lt.s32.totalorder %v1204_v32, %v1205_v48  ;;  %v1227_v19 = vrot.slane %v1226_v37, 2  ;;  %v3679_v4 = vld [vmem:[#allocation18_spill] sm:$0xff] }
 0x1c0   : > { %v3384_v29 = vsel %vm1486_vm13, %v2114_v3, 8  ;;  %v3388_v26 = vsel %vm248_vm0, %v1145_v24, %v1125_v34  ;;  %v1207_v46 = vsel %vm1206_vm14, %v1204_v32, %v1205_v48  ;;  %vm1247_vm8 = vcmp.lt.s32.totalorder %v1245_v56, %v1246_v41 }
 0x1c1   : > { %v1208_v17 = vrot.slane %v1207_v46, 1  ;;  %vm1228_vm11 = vcmp.lt.s32.totalorder %v1226_v37, %v1227_v19  ;;  %v1248_v16 = vsel %vm1247_vm8, %v1245_v56, %v1246_v41  ;;  %v1268_v27 = vrot.slane %v1267_v22, 4  ;;  %v3683_v56 = vld [vmem:[#allocation24_spill] sm:$0xff] }
 0x1c2   : > { %v1443_v10 = vrot.slane %v3375_v21, 4  ;;  %v1229_v8 = vsel %vm1228_vm11, %v1226_v37, %v1227_v19  ;;  %v1249_v43 = vrot.slane %v1248_v16, 2  ;;  %v1292_v11 = vsel %vm3352_vm12, %v3341_v40, %v1290_v12 }
 0x1c3   : > { %vm1209_vm15 = vcmp.lt.s32.totalorder %v1207_v46, %v1208_v17  ;;  %v1230_v38 = vrot.slane %v1229_v8, 1  ;;  %vm1269_vm7 = vcmp.lt.s32.totalorder %v1267_v22, %v1268_v27  ;;  %v1488_v1 = vrot.slane %v3384_v29, 4 }
 0x1c4   : > { %v1210_v2 = vsel %vm1209_vm15, %v1207_v46, %v1208_v17  ;;  %vm1250_vm13 = vcmp.lt.s32.totalorder %v1248_v16, %v1249_v43  ;;  %v1270_v57 = vsel %vm1269_vm7, %v1267_v22, %v1268_v27  ;;  %v1293_v51 = vrot.slane %v1292_v11, 2 }
 0x1c5   : > { %v1212_v62 = vsel %vm310_vm2, %v1210_v2, 8  ;;  %vm1231_vm9 = vcmp.lt.s32.totalorder %v1229_v8, %v1230_v38  ;;  %v1251_v15 = vsel %vm1250_vm13, %v1248_v16, %v1249_v43  ;;  %v1271_v58 = vrot.slane %v1270_v57, 2 }
 0x1c6   : > { %v1232_v13 = vsel %vm1231_vm9, %v1229_v8, %v1230_v38  ;;  %v1252_v25 = vrot.slane %v1251_v15, 1  ;;  %vm1310_vm10 = vcmp.eq.f32.partialorder %v3677_v55, %v3134_v59  ;;  %vm1353_vm1 = vcmp.eq.f32.partialorder %v3678_v49, %v3202_v45  ;;  %v3680_v45 = vld [vmem:[#allocation23_spill] sm:$0xff] }
 0x1c7   : > { %v1234_v40 = vsel %vm329_vm3, %v1232_v13, %v1212_v62  ;;  %vm1272_vm12 = vcmp.lt.s32.totalorder %v1270_v57, %v1271_v58  ;;  %v1311_v12 = vsel %vm1310_vm10, %v2114_v3, 8  ;;  %vm1294_vm8 = vcmp.lt.s32.totalorder %v1292_v11, %v1293_v51  ;;  %v3684_v62 = vld [vmem:[#allocation12_spill] sm:$0xff] }
 0x1c8   : > { %vm1253_vm14 = vcmp.lt.s32.totalorder %v1251_v15, %v1252_v25  ;;  %v1273_v14 = vsel %vm1272_vm12, %v1270_v57, %v1271_v58  ;;  %v1312_v20 = vrot.slane %v1311_v12, 4  ;;  %v1295_v42 = vsel %vm1294_vm8, %v1292_v11, %v1293_v51 }
 0x1c9   : > { %v1254_v7 = vsel %vm1253_vm14, %v1251_v15, %v1252_v25  ;;  %v1274_v23 = vrot.slane %v1273_v14, 1  ;;  %v1354_v30 = vsel %vm1353_vm1, %v2114_v3, 8  ;;  %v1296_v63 = vrot.slane %v1295_v42, 1 }
 0x1ca   : > { %v1256_v59 = vsel %vm348_vm4, %v1254_v7, %v1234_v40  ;;  %vm1313_vm11 = vcmp.lt.s32.totalorder %v1311_v12, %v1312_v20  ;;  %v1355_v61 = vrot.slane %v1354_v30, 4  ;;  %vm1375_vm7 = vcmp.eq.f32.partialorder %v3679_v4, %v3204_v52 }
 0x1cb   : > { %vm1275_vm15 = vcmp.lt.s32.totalorder %v1273_v14, %v1274_v23  ;;  %v1314_v54 = vsel %vm1313_vm11, %v1311_v12, %v1312_v20  ;;  %vm1397_vm13 = vcmp.eq.f32.partialorder %v3680_v45, %v3225_v28  ;;  %vm1297_vm9 = vcmp.lt.s32.totalorder %v1295_v42, %v1296_v63 }
 0x1cc   : > { %v1276_v53 = vsel %vm1275_vm15, %v1273_v14, %v1274_v23  ;;  %v1315_v60 = vrot.slane %v1314_v54, 2  ;;  %vm1356_vm10 = vcmp.lt.s32.totalorder %v1354_v30, %v1355_v61  ;;  %v1298_v9 = vsel %vm1297_vm9, %v1295_v42, %v1296_v63  ;;  %v3685_v42 = vld [vmem:[#allocation22_spill] sm:$0xff] }
 0x1cd   : > { %v1278_v47 = vsel %vm367_vm5, %v1276_v53, %v1256_v59  ;;  %v1357_v36 = vsel %vm1356_vm10, %v1354_v30, %v1355_v61  ;;  %v1376_v6 = vsel %vm1375_vm7, %v2114_v3, 8  ;;  %vm3417_vm12 = vcmp.lt.s32.totalorder %v3384_v29, %v1488_v1  ;;  %v3686_v30 = vld [vmem:[#allocation17_spill] sm:$0xff] }
 0x1ce   : > { %v1300_v52 = vsel %vm248_vm0, %v1298_v9, %v1278_v47  ;;  %vm1316_vm1 = vcmp.lt.s32.totalorder %v1314_v54, %v1315_v60  ;;  %v1358_v28 = vrot.slane %v1357_v36, 2  ;;  %v1377_v35 = vrot.slane %v1376_v6, 4 }
 0x1cf   : > { %v1317_v18 = vsel %vm1316_vm1, %v1314_v54, %v1315_v60  ;;  %v1398_v32 = vsel %vm1397_vm13, %v2114_v3, 8  ;;  %vm1419_vm14 = vcmp.eq.f32.partialorder %v3683_v56, %v3230_v50  ;;  %vm1444_vm8 = vcmp.lt.s32.totalorder %v3375_v21, %v1443_v10 }
 0x1d0   : > { %v1318_v31 = vrot.slane %v1317_v18, 1  ;;  %vm1359_vm11 = vcmp.lt.s32.totalorder %v1357_v36, %v1358_v28  ;;  %vm1378_vm15 = vcmp.lt.s32.totalorder %v1376_v6, %v1377_v35  ;;  %v1399_v48 = vrot.slane %v1398_v32, 4 }
 0x1d1   : > { %v1360_v41 = vsel %vm1359_vm11, %v1357_v36, %v1358_v28  ;;  %v1379_v44 = vsel %vm1378_vm15, %v1376_v6, %v1377_v35  ;;  %v1420_v37 = vsel %vm1419_vm14, %v2114_v3, 8  ;;  %v1445_v22 = vsel %vm1444_vm8, %v3375_v21, %v1443_v10 }
 0x1d2   : > { %vm1319_vm7 = vcmp.lt.s32.totalorder %v1317_v18, %v1318_v31  ;;  %v1361_v34 = vrot.slane %v1360_v41, 1  ;;  %v1380_v24 = vrot.slane %v1379_v44, 2  ;;  %vm1400_vm13 = vcmp.lt.s32.totalorder %v1398_v32, %v1399_v48 }
 0x1d3   : > { %v1320_v50 = vsel %vm1319_vm7, %v1317_v18, %v1318_v31  ;;  %v1401_v19 = vsel %vm1400_vm13, %v1398_v32, %v1399_v48  ;;  %v1421_v46 = vrot.slane %v1420_v37, 4  ;;  %v1446_v17 = vrot.slane %v1445_v22, 2  ;;  %v3687_v18 = vld [vmem:[#allocation27_spill] sm:$0xff]  ;;  %v3688_v32 = vld [vmem:[#allocation25_spill] sm:$0xff] }
 0x1d4   : > { %v3435_v16 = vsel %vm404_vm6, %v1320_v50, %v1300_v52  ;;  %vm1362_vm9 = vcmp.lt.s32.totalorder %v1360_v41, %v1361_v34  ;;  %vm1381_vm10 = vcmp.lt.s32.totalorder %v1379_v44, %v1380_v24  ;;  %v1402_v27 = vrot.slane %v1401_v19, 2 }
 0x1d5   : > { %v1363_v8 = vsel %vm1362_vm9, %v1360_v41, %v1361_v34  ;;  %v1382_v43 = vsel %vm1381_vm10, %v1379_v44, %v1380_v24  ;;  %vm1422_vm1 = vcmp.lt.s32.totalorder %v1420_v37, %v1421_v46  ;;  %vm1447_vm14 = vcmp.lt.s32.totalorder %v1445_v22, %v1446_v17 }
 0x1d6   : > { %v1365_v21 = vsel %vm310_vm2, %v1363_v8, 8  ;;  %v1383_v10 = vrot.slane %v1382_v43, 1  ;;  %vm1403_vm8 = vcmp.lt.s32.totalorder %v1401_v19, %v1402_v27  ;;  %v1423_v38 = vsel %vm1422_vm1, %v1420_v37, %v1421_v46 }
 0x1d7   : > { %v1404_v11 = vsel %vm1403_vm8, %v1401_v19, %v1402_v27  ;;  %v1424_v2 = vrot.slane %v1423_v38, 2  ;;  %v1448_v57 = vsel %vm1447_vm14, %v1445_v22, %v1446_v17  ;;  %vm1463_vm11 = vcmp.eq.f32.partialorder %v3684_v62, %v3243_v39 }
 0x1d8   : > { %vm1384_vm15 = vcmp.lt.s32.totalorder %v1382_v43, %v1383_v10  ;;  %v1405_v15 = vrot.slane %v1404_v11, 1  ;;  %v1449_v58 = vrot.slane %v1448_v57, 1  ;;  %v1464_v13 = vsel %vm1463_vm11, %v2114_v3, 8 }
 0x1d9   : > { %v1385_v25 = vsel %vm1384_vm15, %v1382_v43, %v1383_v10  ;;  %vm1425_vm7 = vcmp.lt.s32.totalorder %v1423_v38, %v1424_v2  ;;  %v1465_v51 = vrot.slane %v1464_v13, 4  ;;  %v1490_v55 = vsel %vm3417_vm12, %v3384_v29, %v1488_v1 }
 0x1da   : > { %v1387_v40 = vsel %vm329_vm3, %v1385_v25, %v1365_v21  ;;  %vm1406_vm13 = vcmp.lt.s32.totalorder %v1404_v11, %v1405_v15  ;;  %v1426_v12 = vsel %vm1425_vm7, %v1423_v38, %v1424_v2  ;;  %vm1450_vm10 = vcmp.lt.s32.totalorder %v1448_v57, %v1449_v58 }
 0x1db   : > { %v1407_v39 = vsel %vm1406_vm13, %v1404_v11, %v1405_v15  ;;  %v1427_v49 = vrot.slane %v1426_v12, 1  ;;  %vm1466_vm9 = vcmp.lt.s32.totalorder %v1464_v13, %v1465_v51  ;;  %v1491_v7 = vrot.slane %v1490_v55, 2 }
 0x1dc   : > { %v1409_v14 = vsel %vm348_vm4, %v1407_v39, %v1387_v40  ;;  %v1467_v20 = vsel %vm1466_vm9, %v1464_v13, %v1465_v51  ;;  %vm1157_vm14 = vcmp.eq.f32.partialorder %v3686_v30, %v3685_v42  ;;  %v1451_v59 = vsel %vm1450_vm10, %v1448_v57, %v1449_v58 }
 0x1dd   : > { %vm1428_vm1 = vcmp.lt.s32.totalorder %v1426_v12, %v1427_v49  ;;  %v1468_v23 = vrot.slane %v1467_v20, 2  ;;  %vm1492_vm12 = vcmp.lt.s32.totalorder %v1490_v55, %v1491_v7  ;;  %v1158_v53 = vsel %vm1157_vm14, %v2114_v3, 8 }
 0x1de   : > { %v1429_v29 = vsel %vm1428_vm1, %v1426_v12, %v1427_v49  ;;  %v1493_v63 = vsel %vm1492_vm12, %v1490_v55, %v1491_v7  ;;  %v1159_v9 = vrot.slane %v1158_v53, 4  ;;  %vm1004_vm10 = vcmp.eq.f32.partialorder %v3688_v32, %v3687_v18 }
 0x1df   : > { %v1431_v1 = vsel %vm367_vm5, %v1429_v29, %v1409_v14  ;;  %vm1469_vm8 = vcmp.lt.s32.totalorder %v1467_v20, %v1468_v23  ;;  %v1494_v4 = vrot.slane %v1493_v63, 1  ;;  %v1005_v41 = vsel %vm1004_vm10, %v2114_v3, 8 }
 0x1e0   : > { %v1453_v61 = vsel %vm248_vm0, %v1451_v59, %v1431_v1  ;;  %v1470_v54 = vsel %vm1469_vm8, %v1467_v20, %v1468_v23  ;;  %vm1160_vm13 = vcmp.lt.s32.totalorder %v1158_v53, %v1159_v9  ;;  %v1006_v37 = vrot.slane %v1005_v41, 4  ;;  %v3689_v59 = vld [vmem:[#allocation28_spill] sm:$0xff] }
 0x1e1   : > { %v1471_v45 = vrot.slane %v1470_v54, 1  ;;  %vm1495_vm11 = vcmp.lt.s32.totalorder %v1493_v63, %v1494_v4  ;;  %v1161_v35 = vsel %vm1160_vm13, %v1158_v53, %v1159_v9 }
 0x1e2   : > { %v3458_v60 = vsel %vm1495_vm11, %v1493_v63, %v1494_v4  ;;  %v1162_v31 = vrot.slane %v1161_v35, 2  ;;  %vm1007_vm11 = vcmp.lt.s32.totalorder %v1005_v41, %v1006_v37 }
 0x1e3   : > { %vm1472_vm15 = vcmp.lt.s32.totalorder %v1470_v54, %v1471_v45  ;;  %vm1498_vm7 = vcmp.eq.s32.totalorder %v2114_v3, %v3458_v60  ;;  %v1008_v17 = vsel %vm1007_vm11, %v1005_v41, %v1006_v37 }
 0x1e4   : > { %v1473_v47 = vsel %vm1472_vm15, %v1470_v54, %v1471_v45  ;;  %vm1163_vm12 = vcmp.lt.s32.totalorder %v1161_v35, %v1162_v31  ;;  %v1009_v8 = vrot.slane %v1008_v17, 2 }
 0x1e5   : > { %v1475_v36 = vsel %vm404_vm6, %v1473_v47, %v1453_v61  ;;  %v1164_v24 = vsel %vm1163_vm12, %v1161_v35, %v1162_v31  ;;  %v3690_v47 = vld [vmem:[#allocation26_spill] sm:$0xff] }
 0x1e6   : > { %v1499_v6 = vsel %vm1498_vm7, %v1475_v36, 8  ;;  %v1165_v19 = vrot.slane %v1164_v24, 1  ;;  %vm1010_vm10 = vcmp.lt.s32.totalorder %v1008_v17, %v1009_v8 }
 0x1e7   : > { %v1500_v5 = vrot.slane %v1499_v6, 4  ;;  %v1011_v2 = vsel %vm1010_vm10, %v1008_v17, %v1009_v8 }
 0x1e8   : > { %vm1166_vm13 = vcmp.lt.s32.totalorder %v1164_v24, %v1165_v19  ;;  %v1012_v62 = vrot.slane %v1011_v2, 1 }
 0x1e9   : > { %vm1501_vm9 = vcmp.lt.s32.totalorder %v1499_v6, %v1500_v5  ;;  %v1167_v21 = vsel %vm1166_vm13, %v1164_v24, %v1165_v19 }
 0x1ea   : > { %v1502_v52 = vsel %vm1501_vm9, %v1499_v6, %v1500_v5 }
 0x1eb   : > { %v1503_v28 = vrot.slane %v1502_v52, 2 }
 0x1ed   : > { %vm1504_vm1 = vcmp.lt.s32.totalorder %v1502_v52, %v1503_v28 }
 0x1ee   : > { %v1505_v56 = vsel %vm1504_vm1, %v1502_v52, %v1503_v28 }
 0x1ef   : > { %v1506_v48 = vrot.slane %v1505_v56, 1 }
 0x1f1   : > { %vm1507_vm14 = vcmp.lt.s32.totalorder %v1505_v56, %v1506_v48 }
 0x1f2   : > { %v3467_v44 = vsel %vm1507_vm14, %v1505_v56, %v1506_v48 }
 0x1f3   : > { %vm1509_vm8 = vcmp.eq.s32.totalorder %v2114_v3, %v3467_v44 }
 0x1f4   : > { %v1510_v22 = vsel %vm1509_vm8, %v3435_v16, 8  ;;  %v1169_v16 = vsel %vm404_vm6, %v1167_v21, %v3388_v26  ;;  %vm1013_vm8 = vcmp.lt.s32.totalorder %v1011_v2, %v1012_v62 }
 0x1f5   : > { %v1511_v34 = vrot.slane %v1510_v22, 4  ;;  %v1014_v25 = vsel %vm1013_vm8, %v1011_v2, %v1012_v62 }
 0x1f6   : > { %v1016_v26 = vsel %vm404_vm6, %v1014_v25, %v3308_v0 }
 0x1f7   : > { %vm1512_vm15 = vcmp.lt.s32.totalorder %v1510_v22, %v1511_v34 }
 0x1f8   : > { %v1513_v50 = vsel %vm1512_vm15, %v1510_v22, %v1511_v34 }
 0x1f9   : > { %v1514_v46 = vrot.slane %v1513_v50, 2 }
 0x1fb   : > { %vm1515_vm7 = vcmp.lt.s32.totalorder %v1513_v50, %v1514_v46 }
 0x1fc   : > { %v1516_v27 = vsel %vm1515_vm7, %v1513_v50, %v1514_v46 }
 0x1fd   : > { %v1517_v43 = vrot.slane %v1516_v27, 1 }
 0x1ff   : > { %vm1518_vm9 = vcmp.lt.s32.totalorder %v1516_v27, %v1517_v43 }
 0x200   : > { %v3472_v10 = vsel %vm1518_vm9, %v1516_v27, %v1517_v43 }
 0x201   : > { %vm1520_vm1 = vcmp.eq.s32.totalorder %v2114_v3, %v3472_v10 }
 0x202   : > { %v1521_v38 = vsel %vm1520_vm1, %v1169_v16, 8 }
 0x203   : > { %v1522_v11 = vrot.slane %v1521_v38, 4 }
 0x205   : > { %vm1523_vm14 = vcmp.lt.s32.totalorder %v1521_v38, %v1522_v11 }
 0x206   : > { %v1524_v57 = vsel %vm1523_vm14, %v1521_v38, %v1522_v11 }
 0x207   : > { %v1525_v15 = vrot.slane %v1524_v57, 2 }
 0x209   : > { %vm1526_vm12 = vcmp.lt.s32.totalorder %v1524_v57, %v1525_v15 }
 0x20a   : > { %v1527_v58 = vsel %vm1526_vm12, %v1524_v57, %v1525_v15 }
 0x20b   : > { %v1528_v13 = vrot.slane %v1527_v58, 1 }
 0x20d   : > { %vm1529_vm11 = vcmp.lt.s32.totalorder %v1527_v58, %v1528_v13 }
 0x20e   : > { %v1530_v51 = vsel %vm1529_vm11, %v1527_v58, %v1528_v13 }
 0x20f   : > { %vm1531_vm15 = vcmp.eq.s32.totalorder %v2114_v3, %v1530_v51 }
 0x210   : > { %v1532_v55 = vsel %vm1531_vm15, %v1016_v26, 8 }
 0x211   : > { %v1533_v40 = vrot.slane %v1532_v55, 4 }
 0x213   : > { %vm1534_vm7 = vcmp.lt.s32.totalorder %v1532_v55, %v1533_v40 }
 0x214   : > { %v1535_v12 = vsel %vm1534_vm7, %v1532_v55, %v1533_v40 }
 0x215   : > { %v1536_v39 = vrot.slane %v1535_v12, 2 }
 0x217   : > { %vm1537_vm13 = vcmp.lt.s32.totalorder %v1535_v12, %v1536_v39 }
 0x218   : > { %v1538_v49 = vsel %vm1537_vm13, %v1535_v12, %v1536_v39 }
 0x219   : > { %v1539_v14 = vrot.slane %v1538_v49, 1 }
 0x21b   : > { %vm1540_vm9 = vcmp.lt.s32.totalorder %v1538_v49, %v1539_v14 }
 0x21c   : > { %v1541_v20 = vsel %vm1540_vm9, %v1538_v49, %v1539_v14 }
 0x21d   : > { %vm1542_vm10 = vcmp.eq.s32.totalorder %v2114_v3, %v1541_v20 }
 0x21e   : > { %v1543_v7 = vsel %vm1542_vm10, %v3234_v33, 8 }
 0x21f   : > { %v1544_v23 = vrot.slane %v1543_v7, 4 }
 0x221   : > { %vm1545_vm1 = vcmp.lt.s32.totalorder %v1543_v7, %v1544_v23 }
 0x222   : > { %v1546_v42 = vsel %vm1545_vm1, %v1543_v7, %v1544_v23 }
 0x223   : > { %v1547_v0 = vrot.slane %v1546_v42, 2 }
 0x225   : > { %vm1548_vm14 = vcmp.lt.s32.totalorder %v1546_v42, %v1547_v0 }
 0x226   : > { %v1549_v30 = vsel %vm1548_vm14, %v1546_v42, %v1547_v0  ;;  %vm1581_vm14 = vcmp.eq.s32.totalorder %v2114_v3, 6 }
 0x227   : > { %v1550_v29 = vrot.slane %v1549_v30, 1 }
 0x229   : > { %vm1551_vm12 = vcmp.lt.s32.totalorder %v1549_v30, %v1550_v29 }
 0x22a   : > { %v1552_v1 = vsel %vm1551_vm12, %v1549_v30, %v1550_v29 }
 0x22b   : > { %vm1553_vm8 = vcmp.eq.s32.totalorder %v2114_v3, %v1552_v1 }
 0x22c   : > { %v1554_v63 = vsel %vm1553_vm8, %v3689_v59, 8 }
 0x22d   : > { %v1555_v61 = vrot.slane %v1554_v63, 4 }
 0x22f   : > { %vm1556_vm11 = vcmp.lt.s32.totalorder %v1554_v63, %v1555_v61 }
 0x230   : > { %v1557_v54 = vsel %vm1556_vm11, %v1554_v63, %v1555_v61 }
 0x231   : > { %v1558_v4 = vrot.slane %v1557_v54, 2 }
 0x233   : > { %vm1559_vm15 = vcmp.lt.s32.totalorder %v1557_v54, %v1558_v4 }
 0x234   : > { %v1560_v33 = vsel %vm1559_vm15, %v1557_v54, %v1558_v4 }
 0x235   : > { %v1561_v45 = vrot.slane %v1560_v33, 1 }
 0x237   : > { %vm1562_vm7 = vcmp.lt.s32.totalorder %v1560_v33, %v1561_v45 }
 0x238   : > { %v1563_v53 = vsel %vm1562_vm7, %v1560_v33, %v1561_v45 }
 0x239   : > { %vm1564_vm13 = vcmp.eq.s32.totalorder %v2114_v3, %v1563_v53 }
 0x23a   : > { %v1565_v9 = vsel %vm1564_vm13, %v3690_v47, 8 }
 0x23b   : > { %v1566_v36 = vrot.slane %v1565_v9, 4 }
 0x23d   : > { %vm1567_vm9 = vcmp.lt.s32.totalorder %v1565_v9, %v1566_v36 }
 0x23e   : > { %v1568_v6 = vsel %vm1567_vm9, %v1565_v9, %v1566_v36 }
 0x23f   : > { %v1569_v5 = vrot.slane %v1568_v6, 2 }
 0x241   : > { %vm1570_vm10 = vcmp.lt.s32.totalorder %v1568_v6, %v1569_v5 }
 0x242   : > { %v1571_v52 = vsel %vm1570_vm10, %v1568_v6, %v1569_v5 }
 0x243   : > { %v1572_v28 = vrot.slane %v1571_v52, 1 }
 0x245   : > { %vm1573_vm1 = vcmp.lt.s32.totalorder %v1571_v52, %v1572_v28 }
 0x246   : > { %v1574_v35 = vsel %vm1573_vm1, %v1571_v52, %v1572_v28 }
 0x247   : > { %v1575_v18 = vsel %vm310_vm2, %v1574_v35, 0  ;;  %vm1583_vm2 = vcmp.eq.s32.totalorder %v2114_v3, 7 }
 0x248   : > { %v1576_v32 = vsel %vm329_vm3, %v1563_v53, %v1575_v18 }
 0x249   : > { %v1577_v56 = vsel %vm348_vm4, %v1552_v1, %v1576_v32 }
 0x24a   : > { %v1578_v31 = vsel %vm367_vm5, %v1541_v20, %v1577_v56 }
 0x24b   : > { %v1579_v48 = vsel %vm248_vm0, %v1530_v51, %v1578_v31 }
 0x24c   : > { %v1580_v41 = vsel %vm404_vm6, %v3472_v10, %v1579_v48 }
 0x24d   : > { %v1582_v37 = vsel %vm1581_vm14, %v3467_v44, %v1580_v41 }
 0x24e   : > { %v1584_v22 = vsel %vm1583_vm2, %v3458_v60, %v1582_v37 }
 0x24f   : > { %1585 = vst [vmem:[%s238_s20] sm:$0xff] %v1584_v22 }
 0x250   : > { %1909 = shalt.err (!%p1906_p2)
}
 0x251   : > { %s1910_s29 = scalar_lea.hbm %s3510_s11, 128  ;;  %s1914_s5 = scalar_lea.hbm %s3552_s4, 256 }
 0x252   : > { %p1911_p9 = scmp.ne.s32.totalorder %s3510_s11, %s1910_s29  ;;  %p1915_p6 = scmp.lt.s32.totalorder %s3510_s11, %s3552_s4 }
 0x253   : > { %p1916_p11 = scmp.lt.s32.totalorder %s1914_s5, %s1910_s29 }
 0x254   : > { %p1912_p1 = pnand %p1911_p9, %p3671_p13 }
 0x255   : > { %p1917_p12 = por %p1916_p11, %p1915_p6 }
 0x256   : > { %p1913_p3 = pneg %p1912_p1 }
 0x258   : > { %p1918_p4 = pnand %p1917_p12, %p1913_p3 }
 0x25a   : > { %1921 = shalt.err (!%p1918_p4)
}
 0x25b   : > { %1753 = dma.vmem_to_hbm [thread:$0]  (%p3671_p13), %s1618_s22, 128, %s3510_s11, %s1591_s19  }
 0x25c PF: > { %s1629_s9 = sand.u32 1, %s1952_s15   ;;  %p3691_p5 = scmp.ne.s32.totalorder %s3572_s28, 0 }
 0x25d   : > { %p3692_p7 = scmp.ge.s32.totalorder %s1964_s18, 2  ;;  %s1630_s14 = scalar_lea.sflag [#allocation4], %s1629_s9 }
 0x25f   : > { %p1761_p8 = pnand %p3692_p7, %p3691_p5 }
 0x261   : > { %p1762_p10 = pneg %p1761_p8 }
 0x263   : > { %1943 = dma.done.wait (%p1762_p10), %s1630_s14, 16  }
 0x264   : > { %1945 = vsyncadd (%p1762_p10), %s1630_s14, 4294967280  ;;  %s1638_s20 = scalar_lea.sflag [#allocation7], %s1629_s9 }
 0x265   : > { %1947 = dma.done.wait (%p1762_p10), %s1638_s20, 128  }
 0x266   : > { %1949 = vsyncadd (%p1762_p10), %s1638_s20, 4294967168  ;;  %p21_p13 = scmp.ge.s32.totalorder %s2028_s21, 4   ;;  %s3693_s15 = smov %s1956_s16 }
 0x267   : > { %s3694_s16 = smov %s1960_s17  ;;  %s3695_s17 = smov %s2040_s24 }
 0x268   : > { %s3696_s18 = smov %s2028_s21  ;;  %23 = sbr.rel (!%p21_p13) target bundleno = 7 (0x7), region = 104 }
 0x26d   :  { %1643 = vsyncpa [#allocation3], 1 }
 0x26e   :  { %1645 = vsyncpa [#allocation3 + $0x1], 1 }
 0x26f   :  { %1646 = vsyncpa [#allocation4], 1 }
 0x270   :  { %1648 = vsyncpa [#allocation4 + $0x1], 1 }
 0x271   :  { %1649 = vsyncpa [#allocation7], 1 }
 0x272   :  { %1651 = vsyncpa [#allocation7 + $0x1], 1 }

</bundles_post_ra>
